<compile_context>
chip_gen: v7x
topology: tpu7x:2x2x1
jax: 0.10.0
libtpu: 0.0.40
codegen_flags: <defaults>
</compile_context>

<pallas_src>
import functools

import jax
import jax.numpy as jnp
from jax.experimental import pallas as pl
from jax.experimental.pallas import tpu as pltpu


def lap_kernel(lxt_ref, w3t_ref, b3_ref, w1_ref, b1_ref, w9t_ref, b9_ref,
               out_ref, att_ref, *, L):
    """One tile of TM spatial positions (positions on the lane axis).

    lxt_ref : (1, LL, C, TM)  local windows, window-pixel major, channels on sublanes
    w3t_ref : (9, 32, C)      conv3d (1,3,3) taps  (tap, out_ch, in_ch)
    b3_ref  : (32, 1)
    w1_ref  : (32, 1)         conv3d 1x1x1 weight as a column
    b1_ref  : (1, 1)
    w9t_ref : (LL, C, C)      conv3d (1,L,L) taps  (window_pixel, out_ch, in_ch)
    b9_ref  : (C, 1)
    out_ref : (1, C, TM)
    att_ref : (1, LL, TM)
    """
    LL = L * L
    C = lxt_ref.shape[2]
    TM = lxt_ref.shape[3]
    cdt = lxt_ref.dtype

    # Load each of the LL window-pixel slabs once: (C, TM) each.
    chunks = [lxt_ref[0, p] for p in range(LL)]

    acc = jnp.zeros((C, TM), jnp.float32)      # transposed output accumulator (f32)
    att_rows = []

    for p in range(LL):
        ph, pw = p // L, p % L

        # --- conv3d (1,3,3), zero-padded inside the LxL window: C -> 32 on the MXU.
        k1 = None
        for dy in (-1, 0, 1):
            qh = ph + dy
            if qh < 0 or qh >= L:
                continue
            for dx in (-1, 0, 1):
                qw = pw + dx
                if qw < 0 or qw >= L:
                    continue
                t = (dy + 1) * 3 + (dx + 1)
                part = jnp.dot(w3t_ref[t], chunks[qh * L + qw],
                               preferred_element_type=jnp.float32)    # (32, TM)
                k1 = part if k1 is None else k1 + part
        k1 = k1 + b3_ref[...]                                         # (32, TM) f32

        # --- conv3d 1x1x1 (32 -> 1): VPU multiply + sublane reduction (no MXU).
        k2 = jnp.sum(k1 * w1_ref[...], axis=0, keepdims=True) + b1_ref[...]  # (1, TM)
        att_p = jax.nn.sigmoid(k2)                                    # (1, TM) f32
        att_rows.append(att_p)

        # --- gate: local_x * att + local_x (sublane broadcast of att over channels).
        att_x = (chunks[p].astype(jnp.float32) * (1.0 + att_p)).astype(cdt)

        # --- conv3d (1,L,L): accumulate the C -> C contraction for this window pixel.
        acc = acc + jnp.dot(w9t_ref[p], att_x, preferred_element_type=jnp.float32)

    out_ref[0] = (acc + b9_ref[...]).astype(out_ref.dtype)
    att_ref[0] = jnp.concatenate(att_rows, axis=0).astype(att_ref.dtype)


def local_attention_sliding_window(x, params, local_scale, *,
                                   tile_positions=512, compute_dtype=None):
    B, C, H, W = x.shape
    L = local_scale
    assert L % 2 == 1, "sliding_window path only well-defined for odd local_scale"
    assert tile_positions % 128 == 0, "keep the lane (position) dim a multiple of 128"
    pad = L // 2
    D = H * W
    LL = L * L
    N = B * D
    cdt = x.dtype if compute_dtype is None else compute_dtype

    w3, b3, w1, b1, w9, b9 = (params[k] for k in ("w3", "b3", "w1", "b1", "w9", "b9"))

    # ---- glue: transposed local-window slab  lxt[t, p, c, m] = xpad[b, c, h+ph, w+pw]
    #      with p = ph*L + pw and flat position n = t*TM + m over (b, h, w). ----
    xp = jnp.pad(x, ((0, 0), (0, 0), (pad, pad), (pad, pad)))
    wins = jnp.stack([xp[:, :, ph:ph + H, pw:pw + W]
                      for ph in range(L) for pw in range(L)], axis=0)   # (LL,B,C,H,W)
    wins = wins.transpose(0, 2, 1, 3, 4).reshape(LL, C, N)              # (LL, C, N)

    TM = tile_positions
    num_tiles = -(-N // TM)
    Np = num_tiles * TM
    if Np != N:                         # remainder positions handled by zero padding
        wins = jnp.pad(wins, ((0, 0), (0, 0), (0, Np - N)))
    lxt = wins.reshape(LL, C, num_tiles, TM).transpose(2, 0, 1, 3)      # (T,LL,C,TM)
    lxt = lxt.astype(cdt)

    # ---- small per-tap weight tensors (KB-scale; no kron / block-diagonal). ----
    w3t = w3[:, :, 0].transpose(2, 3, 0, 1).reshape(9, 32, C).astype(cdt)    # (9,32,C)
    w9t = w9[:, :, 0].transpose(2, 3, 0, 1).reshape(LL, C, C).astype(cdt)    # (LL,C,C)
    b3c = b3.reshape(32, 1).astype(jnp.float32)
    w1c = w1.reshape(32, 1).astype(jnp.float32)
    b1c = b1.reshape(1, 1).astype(jnp.float32)
    b9c = b9.reshape(C, 1).astype(jnp.float32)

    kernel = functools.partial(lap_kernel, L=L)
    out_t, att_t = pl.pallas_call(
        kernel,
        out_shape=(jax.ShapeDtypeStruct((num_tiles, C, TM), x.dtype),
                   jax.ShapeDtypeStruct((num_tiles, LL, TM), jnp.float32)),
        grid_spec=pltpu.PrefetchScalarGridSpec(
            num_scalar_prefetch=0,
            grid=(num_tiles,),
            in_specs=[
                pl.BlockSpec((1, LL, C, TM), lambda i: (i, 0, 0, 0)),
                pl.BlockSpec((9, 32, C), lambda i: (0, 0, 0)),
                pl.BlockSpec((32, 1), lambda i: (0, 0)),
                pl.BlockSpec((32, 1), lambda i: (0, 0)),
                pl.BlockSpec((1, 1), lambda i: (0, 0)),
                pl.BlockSpec((LL, C, C), lambda i: (0, 0, 0)),
                pl.BlockSpec((C, 1), lambda i: (0, 0)),
            ],
            out_specs=[
                pl.BlockSpec((1, C, TM), lambda i: (i, 0, 0)),
                pl.BlockSpec((1, LL, TM), lambda i: (i, 0, 0)),
            ],
        ),
        compiler_params=pltpu.CompilerParams(
            dimension_semantics=("parallel",),   # independent tiles -> both TCs on v7x
            vmem_limit_bytes=32 * 1024 * 1024,   # explicit budget; usage is ~100s of KB
        ),
    )(lxt, w3t, b3c, w1c, b1c, w9t, b9c)

    # ---- glue: back to NCHW / (B, 1, D, L, L). ----
    out_rows = out_t.transpose(0, 2, 1).reshape(Np, C)[:N]              # (N, C)
    output = out_rows.reshape(B, H, W, C).transpose(0, 3, 1, 2)         # (B, C, H, W)
    att_rows = att_t.transpose(0, 2, 1).reshape(Np, LL)[:N]             # (N, LL)
    att_mp = att_rows.reshape(B, D, L, L)[:, None]                      # (B,1,D,L,L)
    return output, att_mp


def reference(x, params, L):
    """Plain-JAX reproduction of the PyTorch sliding_window forward."""
    B, C, H, W = x.shape
    pad = L // 2
    D = H * W
    w3, b3, w1, b1, w9, b9 = (params[k] for k in ("w3", "b3", "w1", "b1", "w9", "b9"))
    xp = jnp.pad(x, ((0, 0), (0, 0), (pad, pad), (pad, pad)))
    cols = [xp[:, :, ph:ph + H, pw:pw + W] for ph in range(L) for pw in range(L)]
    local_x = jnp.stack(cols, axis=-1).reshape(B, C, H, W, L, L).reshape(B, C, D, L, L)
    lwp = jnp.pad(local_x, ((0, 0), (0, 0), (0, 0), (1, 1), (1, 1)))
    k1 = jnp.zeros((B, 32, D, L, L), x.dtype)
    for dy in range(3):
        for dx in range(3):
            k1 = k1 + jnp.einsum('bcdhw,oc->bodhw',
                                 lwp[:, :, :, dy:dy + L, dx:dx + L], w3[:, :, 0, dy, dx])
    k1 = k1 + b3[None, :, None, None, None]
    k2 = jnp.einsum('bodhw,po->bpdhw', k1, w1[:, :, 0, 0, 0]) + b1[None, :, None, None, None]
    att = jax.nn.sigmoid(k2)
    att_x = local_x * att + local_x
    out = jnp.einsum('bcdhw,ochw->bod', att_x, w9[:, :, 0]) + b9[None, :, None]
    return out.reshape(B, C, H, W), att


if __name__ == "__main__":
    def make_inputs(B, C, H, W, L, key):
        ks = jax.random.split(key, 7)
        x = jax.random.normal(ks[0], (B, C, H, W), jnp.float32)
        params = dict(
            w3=0.1 * jax.random.normal(ks[1], (32, C, 1, 3, 3), jnp.float32),  # conv3d3x3
            b3=0.1 * jax.random.normal(ks[2], (32,), jnp.float32),
            b1=0.1 * jax.random.normal(ks[4], (1,), jnp.float32),
            w1=0.1 * jax.random.normal(ks[3], (1, 32, 1, 1, 1), jnp.float32),  # conv3d1x1
            w9=0.1 * jax.random.normal(ks[5], (C, C, 1, L, L), jnp.float32),   # conv3d9x9x1
            b9=0.1 * jax.random.normal(ks[6], (C,), jnp.float32),
        )
        return x, params

    L = 3  # local_scale
    key0, key1 = jax.random.split(jax.random.PRNGKey(0), 2)

    # --- main test: (2, 4, 16, 16), float32 compute path (single grid step) ---
    B, C, H, W = 2, 4, 16, 16
    x, params = make_inputs(B, C, H, W, L, key0)
    out, att_mp = local_attention_sliding_window(x, params, L)
    out = jax.block_until_ready(out)
    att_mp = jax.block_until_ready(att_mp)
    out_ref, att_ref = reference(x, params, L)
    assert out.shape == (B, C, H, W)
    assert att_mp.shape == (B, 1, H * W, L, L)
    assert jnp.allclose(out, out_ref, atol=5e-3, rtol=5e-3)
    assert jnp.allclose(att_mp, att_ref, atol=5e-3, rtol=5e-3)

    # --- bf16 compute path (matmul operands bf16, f32 accumulation / sigmoid) ---
    out_bf, att_bf = local_attention_sliding_window(x, params, L,
                                                    compute_dtype=jnp.bfloat16)
    out_bf = jax.block_until_ready(out_bf)
    att_bf = jax.block_until_ready(att_bf)
    assert jnp.allclose(out_bf, out_ref, atol=7e-2, rtol=7e-2)
    assert jnp.allclose(att_bf, att_ref, atol=3e-2, rtol=3e-2)

    # --- multi-tile grid + remainder handling (N = 720 -> 2 tiles of 512) ---
    x2, params2 = make_inputs(4, 4, 18, 10, L, key1)
    out2, att2 = local_attention_sliding_window(x2, params2, L)
    out2 = jax.block_until_ready(out2)
    att2 = jax.block_until_ready(att2)
    out2_ref, att2_ref = reference(x2, params2, L)
    assert jnp.allclose(out2, out2_ref, atol=5e-3, rtol=5e-3)
    assert jnp.allclose(att2, att2_ref, atol=5e-3, rtol=5e-3)

    print("KERNEL_OK")
</pallas_src>

<mosaic_0001>
module attributes {stable_mosaic.version = 11 : i64} {
  func.func @lap_kernel(%arg0: i32, %arg1: memref<1x9x4x512xf32, #tpu.memory_space<vmem>>, %arg2: memref<9x32x4xf32, #tpu.memory_space<vmem>>, %arg3: memref<32x1xf32, #tpu.memory_space<vmem>>, %arg4: memref<32x1xf32, #tpu.memory_space<vmem>>, %arg5: memref<1x1xf32, #tpu.memory_space<vmem>>, %arg6: memref<9x4x4xf32, #tpu.memory_space<vmem>>, %arg7: memref<4x1xf32, #tpu.memory_space<vmem>>, %arg8: memref<1x4x512xf32, #tpu.memory_space<vmem>>, %arg9: memref<1x9x512xf32, #tpu.memory_space<vmem>>) attributes {dimension_semantics = [#tpu.dimension_semantics<parallel>], iteration_bounds = array<i64: 1>, scalar_prefetch = 0 : i64, scratch_operands = 0 : i64, tpu.core_type = #tpu.core_type<tc>, window_params = [{transform_indices = @transform_0, window_bounds = array<i64: 1, 9, 4, 512>}, {pipeline_mode = #tpu.pipeline_mode<synchronous>, transform_indices = @transform_1, window_bounds = array<i64: 9, 32, 4>}, {pipeline_mode = #tpu.pipeline_mode<synchronous>, transform_indices = @transform_2, window_bounds = array<i64: 32, 1>}, {pipeline_mode = #tpu.pipeline_mode<synchronous>, transform_indices = @transform_3, window_bounds = array<i64: 32, 1>}, {pipeline_mode = #tpu.pipeline_mode<synchronous>, transform_indices = @transform_4, window_bounds = array<i64: 1, 1>}, {pipeline_mode = #tpu.pipeline_mode<synchronous>, transform_indices = @transform_5, window_bounds = array<i64: 9, 4, 4>}, {pipeline_mode = #tpu.pipeline_mode<synchronous>, transform_indices = @transform_6, window_bounds = array<i64: 4, 1>}, {transform_indices = @transform_7, window_bounds = array<i64: 1, 4, 512>}, {transform_indices = @transform_8, window_bounds = array<i64: 1, 9, 512>}]} {
    %c0 = arith.constant 0 : index
    %c0_0 = arith.constant 0 : index
    %c0_1 = arith.constant 0 : index
    %c0_2 = arith.constant 0 : index
    %0 = vector.load %arg1[%c0, %c0_0, %c0_1, %c0_2] : memref<1x9x4x512xf32, #tpu.memory_space<vmem>>, vector<1x1x4x512xf32>
    %1 = vector.shape_cast %0 : vector<1x1x4x512xf32> to vector<4x512xf32>
    %c0_3 = arith.constant 0 : index
    %c1 = arith.constant 1 : index
    %c0_4 = arith.constant 0 : index
    %c0_5 = arith.constant 0 : index
    %2 = vector.load %arg1[%c0_3, %c1, %c0_4, %c0_5] : memref<1x9x4x512xf32, #tpu.memory_space<vmem>>, vector<1x1x4x512xf32>
    %3 = vector.shape_cast %2 : vector<1x1x4x512xf32> to vector<4x512xf32>
    %c0_6 = arith.constant 0 : index
    %c2 = arith.constant 2 : index
    %c0_7 = arith.constant 0 : index
    %c0_8 = arith.constant 0 : index
    %4 = vector.load %arg1[%c0_6, %c2, %c0_7, %c0_8] : memref<1x9x4x512xf32, #tpu.memory_space<vmem>>, vector<1x1x4x512xf32>
    %5 = vector.shape_cast %4 : vector<1x1x4x512xf32> to vector<4x512xf32>
    %c0_9 = arith.constant 0 : index
    %c3 = arith.constant 3 : index
    %c0_10 = arith.constant 0 : index
    %c0_11 = arith.constant 0 : index
    %6 = vector.load %arg1[%c0_9, %c3, %c0_10, %c0_11] : memref<1x9x4x512xf32, #tpu.memory_space<vmem>>, vector<1x1x4x512xf32>
    %7 = vector.shape_cast %6 : vector<1x1x4x512xf32> to vector<4x512xf32>
    %c0_12 = arith.constant 0 : index
    %c4 = arith.constant 4 : index
    %c0_13 = arith.constant 0 : index
    %c0_14 = arith.constant 0 : index
    %8 = vector.load %arg1[%c0_12, %c4, %c0_13, %c0_14] : memref<1x9x4x512xf32, #tpu.memory_space<vmem>>, vector<1x1x4x512xf32>
    %9 = vector.shape_cast %8 : vector<1x1x4x512xf32> to vector<4x512xf32>
    %c0_15 = arith.constant 0 : index
    %c5 = arith.constant 5 : index
    %c0_16 = arith.constant 0 : index
    %c0_17 = arith.constant 0 : index
    %10 = vector.load %arg1[%c0_15, %c5, %c0_16, %c0_17] : memref<1x9x4x512xf32, #tpu.memory_space<vmem>>, vector<1x1x4x512xf32>
    %11 = vector.shape_cast %10 : vector<1x1x4x512xf32> to vector<4x512xf32>
    %c0_18 = arith.constant 0 : index
    %c6 = arith.constant 6 : index
    %c0_19 = arith.constant 0 : index
    %c0_20 = arith.constant 0 : index
    %12 = vector.load %arg1[%c0_18, %c6, %c0_19, %c0_20] : memref<1x9x4x512xf32, #tpu.memory_space<vmem>>, vector<1x1x4x512xf32>
    %13 = vector.shape_cast %12 : vector<1x1x4x512xf32> to vector<4x512xf32>
    %c0_21 = arith.constant 0 : index
    %c7 = arith.constant 7 : index
    %c0_22 = arith.constant 0 : index
    %c0_23 = arith.constant 0 : index
    %14 = vector.load %arg1[%c0_21, %c7, %c0_22, %c0_23] : memref<1x9x4x512xf32, #tpu.memory_space<vmem>>, vector<1x1x4x512xf32>
    %15 = vector.shape_cast %14 : vector<1x1x4x512xf32> to vector<4x512xf32>
    %c0_24 = arith.constant 0 : index
    %c8 = arith.constant 8 : index
    %c0_25 = arith.constant 0 : index
    %c0_26 = arith.constant 0 : index
    %16 = vector.load %arg1[%c0_24, %c8, %c0_25, %c0_26] : memref<1x9x4x512xf32, #tpu.memory_space<vmem>>, vector<1x1x4x512xf32>
    %17 = vector.shape_cast %16 : vector<1x1x4x512xf32> to vector<4x512xf32>
    %cst = arith.constant 0.000000e+00 : f32
    %18 = vector.broadcast %cst : f32 to vector<4x512xf32>
    %c4_27 = arith.constant 4 : index
    %c0_28 = arith.constant 0 : index
    %c0_29 = arith.constant 0 : index
    %19 = vector.load %arg2[%c4_27, %c0_28, %c0_29] : memref<9x32x4xf32, #tpu.memory_space<vmem>>, vector<1x32x4xf32>
    %20 = vector.shape_cast %19 : vector<1x32x4xf32> to vector<32x4xf32>
    %cst_30 = arith.constant dense<0.000000e+00> : vector<32x512xf32>
    %21 = tpu.matmul %20, %1, %cst_30 {dimension_numbers = #tpu.dot_dimension_numbers<[1], [0], [0], [1], [0, 0, 1, 1], [], []>} : vector<32x4xf32>, vector<4x512xf32>, vector<32x512xf32> -> vector<32x512xf32>
    %c5_31 = arith.constant 5 : index
    %c0_32 = arith.constant 0 : index
    %c0_33 = arith.constant 0 : index
    %22 = vector.load %arg2[%c5_31, %c0_32, %c0_33] : memref<9x32x4xf32, #tpu.memory_space<vmem>>, vector<1x32x4xf32>
    %23 = vector.shape_cast %22 : vector<1x32x4xf32> to vector<32x4xf32>
    %cst_34 = arith.constant dense<0.000000e+00> : vector<32x512xf32>
    %24 = tpu.matmul %23, %3, %cst_34 {dimension_numbers = #tpu.dot_dimension_numbers<[1], [0], [0], [1], [0, 0, 1, 1], [], []>} : vector<32x4xf32>, vector<4x512xf32>, vector<32x512xf32> -> vector<32x512xf32>
    %25 = arith.addf %21, %24 : vector<32x512xf32>
    %c7_35 = arith.constant 7 : index
    %c0_36 = arith.constant 0 : index
    %c0_37 = arith.constant 0 : index
    %26 = vector.load %arg2[%c7_35, %c0_36, %c0_37] : memref<9x32x4xf32, #tpu.memory_space<vmem>>, vector<1x32x4xf32>
    %27 = vector.shape_cast %26 : vector<1x32x4xf32> to vector<32x4xf32>
    %cst_38 = arith.constant dense<0.000000e+00> : vector<32x512xf32>
    %28 = tpu.matmul %27, %7, %cst_38 {dimension_numbers = #tpu.dot_dimension_numbers<[1], [0], [0], [1], [0, 0, 1, 1], [], []>} : vector<32x4xf32>, vector<4x512xf32>, vector<32x512xf32> -> vector<32x512xf32>
    %29 = arith.addf %25, %28 : vector<32x512xf32>
    %c8_39 = arith.constant 8 : index
    %c0_40 = arith.constant 0 : index
    %c0_41 = arith.constant 0 : index
    %30 = vector.load %arg2[%c8_39, %c0_40, %c0_41] : memref<9x32x4xf32, #tpu.memory_space<vmem>>, vector<1x32x4xf32>
    %31 = vector.shape_cast %30 : vector<1x32x4xf32> to vector<32x4xf32>
    %cst_42 = arith.constant dense<0.000000e+00> : vector<32x512xf32>
    %32 = tpu.matmul %31, %9, %cst_42 {dimension_numbers = #tpu.dot_dimension_numbers<[1], [0], [0], [1], [0, 0, 1, 1], [], []>} : vector<32x4xf32>, vector<4x512xf32>, vector<32x512xf32> -> vector<32x512xf32>
    %33 = arith.addf %29, %32 : vector<32x512xf32>
    %c0_43 = arith.constant 0 : index
    %c0_44 = arith.constant 0 : index
    %34 = vector.load %arg3[%c0_43, %c0_44] : memref<32x1xf32, #tpu.memory_space<vmem>>, vector<32x1xf32>
    %35 = vector.broadcast %34 : vector<32x1xf32> to vector<32x512xf32>
    %36 = arith.addf %33, %35 : vector<32x512xf32>
    %c0_45 = arith.constant 0 : index
    %c0_46 = arith.constant 0 : index
    %37 = vector.load %arg4[%c0_45, %c0_46] : memref<32x1xf32, #tpu.memory_space<vmem>>, vector<32x1xf32>
    %38 = vector.broadcast %37 : vector<32x1xf32> to vector<32x512xf32>
    %39 = arith.mulf %36, %38 : vector<32x512xf32>
    %cst_47 = arith.constant dense<0.000000e+00> : vector<512xf32>
    %40 = vector.multi_reduction <add>, %39, %cst_47 [0] : vector<32x512xf32> to vector<512xf32>
    %41 = vector.shape_cast %40 : vector<512xf32> to vector<1x512xf32>
    %c0_48 = arith.constant 0 : index
    %c0_49 = arith.constant 0 : index
    %42 = vector.load %arg5[%c0_48, %c0_49] : memref<1x1xf32, #tpu.memory_space<vmem>>, vector<1x1xf32>
    %43 = vector.broadcast %42 : vector<1x1xf32> to vector<1x512xf32>
    %44 = arith.addf %41, %43 : vector<1x512xf32>
    %45 = arith.negf %44 : vector<1x512xf32>
    %46 = math.exp %45 : vector<1x512xf32>
    %cst_50 = arith.constant 1.000000e+00 : f32
    %47 = vector.broadcast %cst_50 : f32 to vector<1x512xf32>
    %48 = arith.addf %47, %46 : vector<1x512xf32>
    %49 = arith.divf %47, %48 : vector<1x512xf32>
    %cst_51 = arith.constant 1.000000e+00 : f32
    %50 = vector.broadcast %cst_51 : f32 to vector<1x512xf32>
    %51 = arith.addf %50, %49 : vector<1x512xf32>
    %52 = vector.broadcast %51 : vector<1x512xf32> to vector<4x512xf32>
    %53 = arith.mulf %1, %52 : vector<4x512xf32>
    %c0_52 = arith.constant 0 : index
    %c0_53 = arith.constant 0 : index
    %c0_54 = arith.constant 0 : index
    %54 = vector.load %arg6[%c0_52, %c0_53, %c0_54] : memref<9x4x4xf32, #tpu.memory_space<vmem>>, vector<1x4x4xf32>
    %55 = vector.shape_cast %54 : vector<1x4x4xf32> to vector<4x4xf32>
    %cst_55 = arith.constant dense<0.000000e+00> : vector<4x512xf32>
    %56 = tpu.matmul %55, %53, %cst_55 {dimension_numbers = #tpu.dot_dimension_numbers<[1], [0], [0], [1], [0, 0, 1, 1], [], []>} : vector<4x4xf32>, vector<4x512xf32>, vector<4x512xf32> -> vector<4x512xf32>
    %57 = arith.addf %18, %56 : vector<4x512xf32>
    %c3_56 = arith.constant 3 : index
    %c0_57 = arith.constant 0 : index
    %c0_58 = arith.constant 0 : index
    %58 = vector.load %arg2[%c3_56, %c0_57, %c0_58] : memref<9x32x4xf32, #tpu.memory_space<vmem>>, vector<1x32x4xf32>
    %59 = vector.shape_cast %58 : vector<1x32x4xf32> to vector<32x4xf32>
    %cst_59 = arith.constant dense<0.000000e+00> : vector<32x512xf32>
    %60 = tpu.matmul %59, %1, %cst_59 {dimension_numbers = #tpu.dot_dimension_numbers<[1], [0], [0], [1], [0, 0, 1, 1], [], []>} : vector<32x4xf32>, vector<4x512xf32>, vector<32x512xf32> -> vector<32x512xf32>
    %c4_60 = arith.constant 4 : index
    %c0_61 = arith.constant 0 : index
    %c0_62 = arith.constant 0 : index
    %61 = vector.load %arg2[%c4_60, %c0_61, %c0_62] : memref<9x32x4xf32, #tpu.memory_space<vmem>>, vector<1x32x4xf32>
    %62 = vector.shape_cast %61 : vector<1x32x4xf32> to vector<32x4xf32>
    %cst_63 = arith.constant dense<0.000000e+00> : vector<32x512xf32>
    %63 = tpu.matmul %62, %3, %cst_63 {dimension_numbers = #tpu.dot_dimension_numbers<[1], [0], [0], [1], [0, 0, 1, 1], [], []>} : vector<32x4xf32>, vector<4x512xf32>, vector<32x512xf32> -> vector<32x512xf32>
    %64 = arith.addf %60, %63 : vector<32x512xf32>
    %c5_64 = arith.constant 5 : index
    %c0_65 = arith.constant 0 : index
    %c0_66 = arith.constant 0 : index
    %65 = vector.load %arg2[%c5_64, %c0_65, %c0_66] : memref<9x32x4xf32, #tpu.memory_space<vmem>>, vector<1x32x4xf32>
    %66 = vector.shape_cast %65 : vector<1x32x4xf32> to vector<32x4xf32>
    %cst_67 = arith.constant dense<0.000000e+00> : vector<32x512xf32>
    %67 = tpu.matmul %66, %5, %cst_67 {dimension_numbers = #tpu.dot_dimension_numbers<[1], [0], [0], [1], [0, 0, 1, 1], [], []>} : vector<32x4xf32>, vector<4x512xf32>, vector<32x512xf32> -> vector<32x512xf32>
    %68 = arith.addf %64, %67 : vector<32x512xf32>
    %c6_68 = arith.constant 6 : index
    %c0_69 = arith.constant 0 : index
    %c0_70 = arith.constant 0 : index
    %69 = vector.load %arg2[%c6_68, %c0_69, %c0_70] : memref<9x32x4xf32, #tpu.memory_space<vmem>>, vector<1x32x4xf32>
    %70 = vector.shape_cast %69 : vector<1x32x4xf32> to vector<32x4xf32>
    %cst_71 = arith.constant dense<0.000000e+00> : vector<32x512xf32>
    %71 = tpu.matmul %70, %7, %cst_71 {dimension_numbers = #tpu.dot_dimension_numbers<[1], [0], [0], [1], [0, 0, 1, 1], [], []>} : vector<32x4xf32>, vector<4x512xf32>, vector<32x512xf32> -> vector<32x512xf32>
    %72 = arith.addf %68, %71 : vector<32x512xf32>
    %c7_72 = arith.constant 7 : index
    %c0_73 = arith.constant 0 : index
    %c0_74 = arith.constant 0 : index
    %73 = vector.load %arg2[%c7_72, %c0_73, %c0_74] : memref<9x32x4xf32, #tpu.memory_space<vmem>>, vector<1x32x4xf32>
    %74 = vector.shape_cast %73 : vector<1x32x4xf32> to vector<32x4xf32>
    %cst_75 = arith.constant dense<0.000000e+00> : vector<32x512xf32>
    %75 = tpu.matmul %74, %9, %cst_75 {dimension_numbers = #tpu.dot_dimension_numbers<[1], [0], [0], [1], [0, 0, 1, 1], [], []>} : vector<32x4xf32>, vector<4x512xf32>, vector<32x512xf32> -> vector<32x512xf32>
    %76 = arith.addf %72, %75 : vector<32x512xf32>
    %c8_76 = arith.constant 8 : index
    %c0_77 = arith.constant 0 : index
    %c0_78 = arith.constant 0 : index
    %77 = vector.load %arg2[%c8_76, %c0_77, %c0_78] : memref<9x32x4xf32, #tpu.memory_space<vmem>>, vector<1x32x4xf32>
    %78 = vector.shape_cast %77 : vector<1x32x4xf32> to vector<32x4xf32>
    %cst_79 = arith.constant dense<0.000000e+00> : vector<32x512xf32>
    %79 = tpu.matmul %78, %11, %cst_79 {dimension_numbers = #tpu.dot_dimension_numbers<[1], [0], [0], [1], [0, 0, 1, 1], [], []>} : vector<32x4xf32>, vector<4x512xf32>, vector<32x512xf32> -> vector<32x512xf32>
    %80 = arith.addf %76, %79 : vector<32x512xf32>
    %c0_80 = arith.constant 0 : index
    %c0_81 = arith.constant 0 : index
    %81 = vector.load %arg3[%c0_80, %c0_81] : memref<32x1xf32, #tpu.memory_space<vmem>>, vector<32x1xf32>
    %82 = vector.broadcast %81 : vector<32x1xf32> to vector<32x512xf32>
    %83 = arith.addf %80, %82 : vector<32x512xf32>
    %c0_82 = arith.constant 0 : index
    %c0_83 = arith.constant 0 : index
    %84 = vector.load %arg4[%c0_82, %c0_83] : memref<32x1xf32, #tpu.memory_space<vmem>>, vector<32x1xf32>
    %85 = vector.broadcast %84 : vector<32x1xf32> to vector<32x512xf32>
    %86 = arith.mulf %83, %85 : vector<32x512xf32>
    %cst_84 = arith.constant dense<0.000000e+00> : vector<512xf32>
    %87 = vector.multi_reduction <add>, %86, %cst_84 [0] : vector<32x512xf32> to vector<512xf32>
    %88 = vector.shape_cast %87 : vector<512xf32> to vector<1x512xf32>
    %c0_85 = arith.constant 0 : index
    %c0_86 = arith.constant 0 : index
    %89 = vector.load %arg5[%c0_85, %c0_86] : memref<1x1xf32, #tpu.memory_space<vmem>>, vector<1x1xf32>
    %90 = vector.broadcast %89 : vector<1x1xf32> to vector<1x512xf32>
    %91 = arith.addf %88, %90 : vector<1x512xf32>
    %92 = arith.negf %91 : vector<1x512xf32>
    %93 = math.exp %92 : vector<1x512xf32>
    %cst_87 = arith.constant 1.000000e+00 : f32
    %94 = vector.broadcast %cst_87 : f32 to vector<1x512xf32>
    %95 = arith.addf %94, %93 : vector<1x512xf32>
    %96 = arith.divf %94, %95 : vector<1x512xf32>
    %cst_88 = arith.constant 1.000000e+00 : f32
    %97 = vector.broadcast %cst_88 : f32 to vector<1x512xf32>
    %98 = arith.addf %97, %96 : vector<1x512xf32>
    %99 = vector.broadcast %98 : vector<1x512xf32> to vector<4x512xf32>
    %100 = arith.mulf %3, %99 : vector<4x512xf32>
    %c1_89 = arith.constant 1 : index
    %c0_90 = arith.constant 0 : index
    %c0_91 = arith.constant 0 : index
    %101 = vector.load %arg6[%c1_89, %c0_90, %c0_91] : memref<9x4x4xf32, #tpu.memory_space<vmem>>, vector<1x4x4xf32>
    %102 = vector.shape_cast %101 : vector<1x4x4xf32> to vector<4x4xf32>
    %cst_92 = arith.constant dense<0.000000e+00> : vector<4x512xf32>
    %103 = tpu.matmul %102, %100, %cst_92 {dimension_numbers = #tpu.dot_dimension_numbers<[1], [0], [0], [1], [0, 0, 1, 1], [], []>} : vector<4x4xf32>, vector<4x512xf32>, vector<4x512xf32> -> vector<4x512xf32>
    %104 = arith.addf %57, %103 : vector<4x512xf32>
    %c3_93 = arith.constant 3 : index
    %c0_94 = arith.constant 0 : index
    %c0_95 = arith.constant 0 : index
    %105 = vector.load %arg2[%c3_93, %c0_94, %c0_95] : memref<9x32x4xf32, #tpu.memory_space<vmem>>, vector<1x32x4xf32>
    %106 = vector.shape_cast %105 : vector<1x32x4xf32> to vector<32x4xf32>
    %cst_96 = arith.constant dense<0.000000e+00> : vector<32x512xf32>
    %107 = tpu.matmul %106, %3, %cst_96 {dimension_numbers = #tpu.dot_dimension_numbers<[1], [0], [0], [1], [0, 0, 1, 1], [], []>} : vector<32x4xf32>, vector<4x512xf32>, vector<32x512xf32> -> vector<32x512xf32>
    %c4_97 = arith.constant 4 : index
    %c0_98 = arith.constant 0 : index
    %c0_99 = arith.constant 0 : index
    %108 = vector.load %arg2[%c4_97, %c0_98, %c0_99] : memref<9x32x4xf32, #tpu.memory_space<vmem>>, vector<1x32x4xf32>
    %109 = vector.shape_cast %108 : vector<1x32x4xf32> to vector<32x4xf32>
    %cst_100 = arith.constant dense<0.000000e+00> : vector<32x512xf32>
    %110 = tpu.matmul %109, %5, %cst_100 {dimension_numbers = #tpu.dot_dimension_numbers<[1], [0], [0], [1], [0, 0, 1, 1], [], []>} : vector<32x4xf32>, vector<4x512xf32>, vector<32x512xf32> -> vector<32x512xf32>
    %111 = arith.addf %107, %110 : vector<32x512xf32>
    %c6_101 = arith.constant 6 : index
    %c0_102 = arith.constant 0 : index
    %c0_103 = arith.constant 0 : index
    %112 = vector.load %arg2[%c6_101, %c0_102, %c0_103] : memref<9x32x4xf32, #tpu.memory_space<vmem>>, vector<1x32x4xf32>
    %113 = vector.shape_cast %112 : vector<1x32x4xf32> to vector<32x4xf32>
    %cst_104 = arith.constant dense<0.000000e+00> : vector<32x512xf32>
    %114 = tpu.matmul %113, %9, %cst_104 {dimension_numbers = #tpu.dot_dimension_numbers<[1], [0], [0], [1], [0, 0, 1, 1], [], []>} : vector<32x4xf32>, vector<4x512xf32>, vector<32x512xf32> -> vector<32x512xf32>
    %115 = arith.addf %111, %114 : vector<32x512xf32>
    %c7_105 = arith.constant 7 : index
    %c0_106 = arith.constant 0 : index
    %c0_107 = arith.constant 0 : index
    %116 = vector.load %arg2[%c7_105, %c0_106, %c0_107] : memref<9x32x4xf32, #tpu.memory_space<vmem>>, vector<1x32x4xf32>
    %117 = vector.shape_cast %116 : vector<1x32x4xf32> to vector<32x4xf32>
    %cst_108 = arith.constant dense<0.000000e+00> : vector<32x512xf32>
    %118 = tpu.matmul %117, %11, %cst_108 {dimension_numbers = #tpu.dot_dimension_numbers<[1], [0], [0], [1], [0, 0, 1, 1], [], []>} : vector<32x4xf32>, vector<4x512xf32>, vector<32x512xf32> -> vector<32x512xf32>
    %119 = arith.addf %115, %118 : vector<32x512xf32>
    %c0_109 = arith.constant 0 : index
    %c0_110 = arith.constant 0 : index
    %120 = vector.load %arg3[%c0_109, %c0_110] : memref<32x1xf32, #tpu.memory_space<vmem>>, vector<32x1xf32>
    %121 = vector.broadcast %120 : vector<32x1xf32> to vector<32x512xf32>
    %122 = arith.addf %119, %121 : vector<32x512xf32>
    %c0_111 = arith.constant 0 : index
    %c0_112 = arith.constant 0 : index
    %123 = vector.load %arg4[%c0_111, %c0_112] : memref<32x1xf32, #tpu.memory_space<vmem>>, vector<32x1xf32>
    %124 = vector.broadcast %123 : vector<32x1xf32> to vector<32x512xf32>
    %125 = arith.mulf %122, %124 : vector<32x512xf32>
    %cst_113 = arith.constant dense<0.000000e+00> : vector<512xf32>
    %126 = vector.multi_reduction <add>, %125, %cst_113 [0] : vector<32x512xf32> to vector<512xf32>
    %127 = vector.shape_cast %126 : vector<512xf32> to vector<1x512xf32>
    %c0_114 = arith.constant 0 : index
    %c0_115 = arith.constant 0 : index
    %128 = vector.load %arg5[%c0_114, %c0_115] : memref<1x1xf32, #tpu.memory_space<vmem>>, vector<1x1xf32>
    %129 = vector.broadcast %128 : vector<1x1xf32> to vector<1x512xf32>
    %130 = arith.addf %127, %129 : vector<1x512xf32>
    %131 = arith.negf %130 : vector<1x512xf32>
    %132 = math.exp %131 : vector<1x512xf32>
    %cst_116 = arith.constant 1.000000e+00 : f32
    %133 = vector.broadcast %cst_116 : f32 to vector<1x512xf32>
    %134 = arith.addf %133, %132 : vector<1x512xf32>
    %135 = arith.divf %133, %134 : vector<1x512xf32>
    %cst_117 = arith.constant 1.000000e+00 : f32
    %136 = vector.broadcast %cst_117 : f32 to vector<1x512xf32>
    %137 = arith.addf %136, %135 : vector<1x512xf32>
    %138 = vector.broadcast %137 : vector<1x512xf32> to vector<4x512xf32>
    %139 = arith.mulf %5, %138 : vector<4x512xf32>
    %c2_118 = arith.constant 2 : index
    %c0_119 = arith.constant 0 : index
    %c0_120 = arith.constant 0 : index
    %140 = vector.load %arg6[%c2_118, %c0_119, %c0_120] : memref<9x4x4xf32, #tpu.memory_space<vmem>>, vector<1x4x4xf32>
    %141 = vector.shape_cast %140 : vector<1x4x4xf32> to vector<4x4xf32>
    %cst_121 = arith.constant dense<0.000000e+00> : vector<4x512xf32>
    %142 = tpu.matmul %141, %139, %cst_121 {dimension_numbers = #tpu.dot_dimension_numbers<[1], [0], [0], [1], [0, 0, 1, 1], [], []>} : vector<4x4xf32>, vector<4x512xf32>, vector<4x512xf32> -> vector<4x512xf32>
    %143 = arith.addf %104, %142 : vector<4x512xf32>
    %c1_122 = arith.constant 1 : index
    %c0_123 = arith.constant 0 : index
    %c0_124 = arith.constant 0 : index
    %144 = vector.load %arg2[%c1_122, %c0_123, %c0_124] : memref<9x32x4xf32, #tpu.memory_space<vmem>>, vector<1x32x4xf32>
    %145 = vector.shape_cast %144 : vector<1x32x4xf32> to vector<32x4xf32>
    %cst_125 = arith.constant dense<0.000000e+00> : vector<32x512xf32>
    %146 = tpu.matmul %145, %1, %cst_125 {dimension_numbers = #tpu.dot_dimension_numbers<[1], [0], [0], [1], [0, 0, 1, 1], [], []>} : vector<32x4xf32>, vector<4x512xf32>, vector<32x512xf32> -> vector<32x512xf32>
    %c2_126 = arith.constant 2 : index
    %c0_127 = arith.constant 0 : index
    %c0_128 = arith.constant 0 : index
    %147 = vector.load %arg2[%c2_126, %c0_127, %c0_128] : memref<9x32x4xf32, #tpu.memory_space<vmem>>, vector<1x32x4xf32>
    %148 = vector.shape_cast %147 : vector<1x32x4xf32> to vector<32x4xf32>
    %cst_129 = arith.constant dense<0.000000e+00> : vector<32x512xf32>
    %149 = tpu.matmul %148, %3, %cst_129 {dimension_numbers = #tpu.dot_dimension_numbers<[1], [0], [0], [1], [0, 0, 1, 1], [], []>} : vector<32x4xf32>, vector<4x512xf32>, vector<32x512xf32> -> vector<32x512xf32>
    %150 = arith.addf %146, %149 : vector<32x512xf32>
    %c4_130 = arith.constant 4 : index
    %c0_131 = arith.constant 0 : index
    %c0_132 = arith.constant 0 : index
    %151 = vector.load %arg2[%c4_130, %c0_131, %c0_132] : memref<9x32x4xf32, #tpu.memory_space<vmem>>, vector<1x32x4xf32>
    %152 = vector.shape_cast %151 : vector<1x32x4xf32> to vector<32x4xf32>
    %cst_133 = arith.constant dense<0.000000e+00> : vector<32x512xf32>
    %153 = tpu.matmul %152, %7, %cst_133 {dimension_numbers = #tpu.dot_dimension_numbers<[1], [0], [0], [1], [0, 0, 1, 1], [], []>} : vector<32x4xf32>, vector<4x512xf32>, vector<32x512xf32> -> vector<32x512xf32>
    %154 = arith.addf %150, %153 : vector<32x512xf32>
    %c5_134 = arith.constant 5 : index
    %c0_135 = arith.constant 0 : index
    %c0_136 = arith.constant 0 : index
    %155 = vector.load %arg2[%c5_134, %c0_135, %c0_136] : memref<9x32x4xf32, #tpu.memory_space<vmem>>, vector<1x32x4xf32>
    %156 = vector.shape_cast %155 : vector<1x32x4xf32> to vector<32x4xf32>
    %cst_137 = arith.constant dense<0.000000e+00> : vector<32x512xf32>
    %157 = tpu.matmul %156, %9, %cst_137 {dimension_numbers = #tpu.dot_dimension_numbers<[1], [0], [0], [1], [0, 0, 1, 1], [], []>} : vector<32x4xf32>, vector<4x512xf32>, vector<32x512xf32> -> vector<32x512xf32>
    %158 = arith.addf %154, %157 : vector<32x512xf32>
    %c7_138 = arith.constant 7 : index
    %c0_139 = arith.constant 0 : index
    %c0_140 = arith.constant 0 : index
    %159 = vector.load %arg2[%c7_138, %c0_139, %c0_140] : memref<9x32x4xf32, #tpu.memory_space<vmem>>, vector<1x32x4xf32>
    %160 = vector.shape_cast %159 : vector<1x32x4xf32> to vector<32x4xf32>
    %cst_141 = arith.constant dense<0.000000e+00> : vector<32x512xf32>
    %161 = tpu.matmul %160, %13, %cst_141 {dimension_numbers = #tpu.dot_dimension_numbers<[1], [0], [0], [1], [0, 0, 1, 1], [], []>} : vector<32x4xf32>, vector<4x512xf32>, vector<32x512xf32> -> vector<32x512xf32>
    %162 = arith.addf %158, %161 : vector<32x512xf32>
    %c8_142 = arith.constant 8 : index
    %c0_143 = arith.constant 0 : index
    %c0_144 = arith.constant 0 : index
    %163 = vector.load %arg2[%c8_142, %c0_143, %c0_144] : memref<9x32x4xf32, #tpu.memory_space<vmem>>, vector<1x32x4xf32>
    %164 = vector.shape_cast %163 : vector<1x32x4xf32> to vector<32x4xf32>
    %cst_145 = arith.constant dense<0.000000e+00> : vector<32x512xf32>
    %165 = tpu.matmul %164, %15, %cst_145 {dimension_numbers = #tpu.dot_dimension_numbers<[1], [0], [0], [1], [0, 0, 1, 1], [], []>} : vector<32x4xf32>, vector<4x512xf32>, vector<32x512xf32> -> vector<32x512xf32>
    %166 = arith.addf %162, %165 : vector<32x512xf32>
    %c0_146 = arith.constant 0 : index
    %c0_147 = arith.constant 0 : index
    %167 = vector.load %arg3[%c0_146, %c0_147] : memref<32x1xf32, #tpu.memory_space<vmem>>, vector<32x1xf32>
    %168 = vector.broadcast %167 : vector<32x1xf32> to vector<32x512xf32>
    %169 = arith.addf %166, %168 : vector<32x512xf32>
    %c0_148 = arith.constant 0 : index
    %c0_149 = arith.constant 0 : index
    %170 = vector.load %arg4[%c0_148, %c0_149] : memref<32x1xf32, #tpu.memory_space<vmem>>, vector<32x1xf32>
    %171 = vector.broadcast %170 : vector<32x1xf32> to vector<32x512xf32>
    %172 = arith.mulf %169, %171 : vector<32x512xf32>
    %cst_150 = arith.constant dense<0.000000e+00> : vector<512xf32>
    %173 = vector.multi_reduction <add>, %172, %cst_150 [0] : vector<32x512xf32> to vector<512xf32>
    %174 = vector.shape_cast %173 : vector<512xf32> to vector<1x512xf32>
    %c0_151 = arith.constant 0 : index
    %c0_152 = arith.constant 0 : index
    %175 = vector.load %arg5[%c0_151, %c0_152] : memref<1x1xf32, #tpu.memory_space<vmem>>, vector<1x1xf32>
    %176 = vector.broadcast %175 : vector<1x1xf32> to vector<1x512xf32>
    %177 = arith.addf %174, %176 : vector<1x512xf32>
    %178 = arith.negf %177 : vector<1x512xf32>
    %179 = math.exp %178 : vector<1x512xf32>
    %cst_153 = arith.constant 1.000000e+00 : f32
    %180 = vector.broadcast %cst_153 : f32 to vector<1x512xf32>
    %181 = arith.addf %180, %179 : vector<1x512xf32>
    %182 = arith.divf %180, %181 : vector<1x512xf32>
    %cst_154 = arith.constant 1.000000e+00 : f32
    %183 = vector.broadcast %cst_154 : f32 to vector<1x512xf32>
    %184 = arith.addf %183, %182 : vector<1x512xf32>
    %185 = vector.broadcast %184 : vector<1x512xf32> to vector<4x512xf32>
    %186 = arith.mulf %7, %185 : vector<4x512xf32>
    %c3_155 = arith.constant 3 : index
    %c0_156 = arith.constant 0 : index
    %c0_157 = arith.constant 0 : index
    %187 = vector.load %arg6[%c3_155, %c0_156, %c0_157] : memref<9x4x4xf32, #tpu.memory_space<vmem>>, vector<1x4x4xf32>
    %188 = vector.shape_cast %187 : vector<1x4x4xf32> to vector<4x4xf32>
    %cst_158 = arith.constant dense<0.000000e+00> : vector<4x512xf32>
    %189 = tpu.matmul %188, %186, %cst_158 {dimension_numbers = #tpu.dot_dimension_numbers<[1], [0], [0], [1], [0, 0, 1, 1], [], []>} : vector<4x4xf32>, vector<4x512xf32>, vector<4x512xf32> -> vector<4x512xf32>
    %190 = arith.addf %143, %189 : vector<4x512xf32>
    %c0_159 = arith.constant 0 : index
    %c0_160 = arith.constant 0 : index
    %c0_161 = arith.constant 0 : index
    %191 = vector.load %arg2[%c0_159, %c0_160, %c0_161] : memref<9x32x4xf32, #tpu.memory_space<vmem>>, vector<1x32x4xf32>
    %192 = vector.shape_cast %191 : vector<1x32x4xf32> to vector<32x4xf32>
    %cst_162 = arith.constant dense<0.000000e+00> : vector<32x512xf32>
    %193 = tpu.matmul %192, %1, %cst_162 {dimension_numbers = #tpu.dot_dimension_numbers<[1], [0], [0], [1], [0, 0, 1, 1], [], []>} : vector<32x4xf32>, vector<4x512xf32>, vector<32x512xf32> -> vector<32x512xf32>
    %c1_163 = arith.constant 1 : index
    %c0_164 = arith.constant 0 : index
    %c0_165 = arith.constant 0 : index
    %194 = vector.load %arg2[%c1_163, %c0_164, %c0_165] : memref<9x32x4xf32, #tpu.memory_space<vmem>>, vector<1x32x4xf32>
    %195 = vector.shape_cast %194 : vector<1x32x4xf32> to vector<32x4xf32>
    %cst_166 = arith.constant dense<0.000000e+00> : vector<32x512xf32>
    %196 = tpu.matmul %195, %3, %cst_166 {dimension_numbers = #tpu.dot_dimension_numbers<[1], [0], [0], [1], [0, 0, 1, 1], [], []>} : vector<32x4xf32>, vector<4x512xf32>, vector<32x512xf32> -> vector<32x512xf32>
    %197 = arith.addf %193, %196 : vector<32x512xf32>
    %c2_167 = arith.constant 2 : index
    %c0_168 = arith.constant 0 : index
    %c0_169 = arith.constant 0 : index
    %198 = vector.load %arg2[%c2_167, %c0_168, %c0_169] : memref<9x32x4xf32, #tpu.memory_space<vmem>>, vector<1x32x4xf32>
    %199 = vector.shape_cast %198 : vector<1x32x4xf32> to vector<32x4xf32>
    %cst_170 = arith.constant dense<0.000000e+00> : vector<32x512xf32>
    %200 = tpu.matmul %199, %5, %cst_170 {dimension_numbers = #tpu.dot_dimension_numbers<[1], [0], [0], [1], [0, 0, 1, 1], [], []>} : vector<32x4xf32>, vector<4x512xf32>, vector<32x512xf32> -> vector<32x512xf32>
    %201 = arith.addf %197, %200 : vector<32x512xf32>
    %c3_171 = arith.constant 3 : index
    %c0_172 = arith.constant 0 : index
    %c0_173 = arith.constant 0 : index
    %202 = vector.load %arg2[%c3_171, %c0_172, %c0_173] : memref<9x32x4xf32, #tpu.memory_space<vmem>>, vector<1x32x4xf32>
    %203 = vector.shape_cast %202 : vector<1x32x4xf32> to vector<32x4xf32>
    %cst_174 = arith.constant dense<0.000000e+00> : vector<32x512xf32>
    %204 = tpu.matmul %203, %7, %cst_174 {dimension_numbers = #tpu.dot_dimension_numbers<[1], [0], [0], [1], [0, 0, 1, 1], [], []>} : vector<32x4xf32>, vector<4x512xf32>, vector<32x512xf32> -> vector<32x512xf32>
    %205 = arith.addf %201, %204 : vector<32x512xf32>
    %c4_175 = arith.constant 4 : index
    %c0_176 = arith.constant 0 : index
    %c0_177 = arith.constant 0 : index
    %206 = vector.load %arg2[%c4_175, %c0_176, %c0_177] : memref<9x32x4xf32, #tpu.memory_space<vmem>>, vector<1x32x4xf32>
    %207 = vector.shape_cast %206 : vector<1x32x4xf32> to vector<32x4xf32>
    %cst_178 = arith.constant dense<0.000000e+00> : vector<32x512xf32>
    %208 = tpu.matmul %207, %9, %cst_178 {dimension_numbers = #tpu.dot_dimension_numbers<[1], [0], [0], [1], [0, 0, 1, 1], [], []>} : vector<32x4xf32>, vector<4x512xf32>, vector<32x512xf32> -> vector<32x512xf32>
    %209 = arith.addf %205, %208 : vector<32x512xf32>
    %c5_179 = arith.constant 5 : index
    %c0_180 = arith.constant 0 : index
    %c0_181 = arith.constant 0 : index
    %210 = vector.load %arg2[%c5_179, %c0_180, %c0_181] : memref<9x32x4xf32, #tpu.memory_space<vmem>>, vector<1x32x4xf32>
    %211 = vector.shape_cast %210 : vector<1x32x4xf32> to vector<32x4xf32>
    %cst_182 = arith.constant dense<0.000000e+00> : vector<32x512xf32>
    %212 = tpu.matmul %211, %11, %cst_182 {dimension_numbers = #tpu.dot_dimension_numbers<[1], [0], [0], [1], [0, 0, 1, 1], [], []>} : vector<32x4xf32>, vector<4x512xf32>, vector<32x512xf32> -> vector<32x512xf32>
    %213 = arith.addf %209, %212 : vector<32x512xf32>
    %c6_183 = arith.constant 6 : index
    %c0_184 = arith.constant 0 : index
    %c0_185 = arith.constant 0 : index
    %214 = vector.load %arg2[%c6_183, %c0_184, %c0_185] : memref<9x32x4xf32, #tpu.memory_space<vmem>>, vector<1x32x4xf32>
    %215 = vector.shape_cast %214 : vector<1x32x4xf32> to vector<32x4xf32>
    %cst_186 = arith.constant dense<0.000000e+00> : vector<32x512xf32>
    %216 = tpu.matmul %215, %13, %cst_186 {dimension_numbers = #tpu.dot_dimension_numbers<[1], [0], [0], [1], [0, 0, 1, 1], [], []>} : vector<32x4xf32>, vector<4x512xf32>, vector<32x512xf32> -> vector<32x512xf32>
    %217 = arith.addf %213, %216 : vector<32x512xf32>
    %c7_187 = arith.constant 7 : index
    %c0_188 = arith.constant 0 : index
    %c0_189 = arith.constant 0 : index
    %218 = vector.load %arg2[%c7_187, %c0_188, %c0_189] : memref<9x32x4xf32, #tpu.memory_space<vmem>>, vector<1x32x4xf32>
    %219 = vector.shape_cast %218 : vector<1x32x4xf32> to vector<32x4xf32>
    %cst_190 = arith.constant dense<0.000000e+00> : vector<32x512xf32>
    %220 = tpu.matmul %219, %15, %cst_190 {dimension_numbers = #tpu.dot_dimension_numbers<[1], [0], [0], [1], [0, 0, 1, 1], [], []>} : vector<32x4xf32>, vector<4x512xf32>, vector<32x512xf32> -> vector<32x512xf32>
    %221 = arith.addf %217, %220 : vector<32x512xf32>
    %c8_191 = arith.constant 8 : index
    %c0_192 = arith.constant 0 : index
    %c0_193 = arith.constant 0 : index
    %222 = vector.load %arg2[%c8_191, %c0_192, %c0_193] : memref<9x32x4xf32, #tpu.memory_space<vmem>>, vector<1x32x4xf32>
    %223 = vector.shape_cast %222 : vector<1x32x4xf32> to vector<32x4xf32>
    %cst_194 = arith.constant dense<0.000000e+00> : vector<32x512xf32>
    %224 = tpu.matmul %223, %17, %cst_194 {dimension_numbers = #tpu.dot_dimension_numbers<[1], [0], [0], [1], [0, 0, 1, 1], [], []>} : vector<32x4xf32>, vector<4x512xf32>, vector<32x512xf32> -> vector<32x512xf32>
    %225 = arith.addf %221, %224 : vector<32x512xf32>
    %c0_195 = arith.constant 0 : index
    %c0_196 = arith.constant 0 : index
    %226 = vector.load %arg3[%c0_195, %c0_196] : memref<32x1xf32, #tpu.memory_space<vmem>>, vector<32x1xf32>
    %227 = vector.broadcast %226 : vector<32x1xf32> to vector<32x512xf32>
    %228 = arith.addf %225, %227 : vector<32x512xf32>
    %c0_197 = arith.constant 0 : index
    %c0_198 = arith.constant 0 : index
    %229 = vector.load %arg4[%c0_197, %c0_198] : memref<32x1xf32, #tpu.memory_space<vmem>>, vector<32x1xf32>
    %230 = vector.broadcast %229 : vector<32x1xf32> to vector<32x512xf32>
    %231 = arith.mulf %228, %230 : vector<32x512xf32>
    %cst_199 = arith.constant dense<0.000000e+00> : vector<512xf32>
    %232 = vector.multi_reduction <add>, %231, %cst_199 [0] : vector<32x512xf32> to vector<512xf32>
    %233 = vector.shape_cast %232 : vector<512xf32> to vector<1x512xf32>
    %c0_200 = arith.constant 0 : index
    %c0_201 = arith.constant 0 : index
    %234 = vector.load %arg5[%c0_200, %c0_201] : memref<1x1xf32, #tpu.memory_space<vmem>>, vector<1x1xf32>
    %235 = vector.broadcast %234 : vector<1x1xf32> to vector<1x512xf32>
    %236 = arith.addf %233, %235 : vector<1x512xf32>
    %237 = arith.negf %236 : vector<1x512xf32>
    %238 = math.exp %237 : vector<1x512xf32>
    %cst_202 = arith.constant 1.000000e+00 : f32
    %239 = vector.broadcast %cst_202 : f32 to vector<1x512xf32>
    %240 = arith.addf %239, %238 : vector<1x512xf32>
    %241 = arith.divf %239, %240 : vector<1x512xf32>
    %cst_203 = arith.constant 1.000000e+00 : f32
    %242 = vector.broadcast %cst_203 : f32 to vector<1x512xf32>
    %243 = arith.addf %242, %241 : vector<1x512xf32>
    %244 = vector.broadcast %243 : vector<1x512xf32> to vector<4x512xf32>
    %245 = arith.mulf %9, %244 : vector<4x512xf32>
    %c4_204 = arith.constant 4 : index
    %c0_205 = arith.constant 0 : index
    %c0_206 = arith.constant 0 : index
    %246 = vector.load %arg6[%c4_204, %c0_205, %c0_206] : memref<9x4x4xf32, #tpu.memory_space<vmem>>, vector<1x4x4xf32>
    %247 = vector.shape_cast %246 : vector<1x4x4xf32> to vector<4x4xf32>
    %cst_207 = arith.constant dense<0.000000e+00> : vector<4x512xf32>
    %248 = tpu.matmul %247, %245, %cst_207 {dimension_numbers = #tpu.dot_dimension_numbers<[1], [0], [0], [1], [0, 0, 1, 1], [], []>} : vector<4x4xf32>, vector<4x512xf32>, vector<4x512xf32> -> vector<4x512xf32>
    %249 = arith.addf %190, %248 : vector<4x512xf32>
    %c0_208 = arith.constant 0 : index
    %c0_209 = arith.constant 0 : index
    %c0_210 = arith.constant 0 : index
    %250 = vector.load %arg2[%c0_208, %c0_209, %c0_210] : memref<9x32x4xf32, #tpu.memory_space<vmem>>, vector<1x32x4xf32>
    %251 = vector.shape_cast %250 : vector<1x32x4xf32> to vector<32x4xf32>
    %cst_211 = arith.constant dense<0.000000e+00> : vector<32x512xf32>
    %252 = tpu.matmul %251, %3, %cst_211 {dimension_numbers = #tpu.dot_dimension_numbers<[1], [0], [0], [1], [0, 0, 1, 1], [], []>} : vector<32x4xf32>, vector<4x512xf32>, vector<32x512xf32> -> vector<32x512xf32>
    %c1_212 = arith.constant 1 : index
    %c0_213 = arith.constant 0 : index
    %c0_214 = arith.constant 0 : index
    %253 = vector.load %arg2[%c1_212, %c0_213, %c0_214] : memref<9x32x4xf32, #tpu.memory_space<vmem>>, vector<1x32x4xf32>
    %254 = vector.shape_cast %253 : vector<1x32x4xf32> to vector<32x4xf32>
    %cst_215 = arith.constant dense<0.000000e+00> : vector<32x512xf32>
    %255 = tpu.matmul %254, %5, %cst_215 {dimension_numbers = #tpu.dot_dimension_numbers<[1], [0], [0], [1], [0, 0, 1, 1], [], []>} : vector<32x4xf32>, vector<4x512xf32>, vector<32x512xf32> -> vector<32x512xf32>
    %256 = arith.addf %252, %255 : vector<32x512xf32>
    %c3_216 = arith.constant 3 : index
    %c0_217 = arith.constant 0 : index
    %c0_218 = arith.constant 0 : index
    %257 = vector.load %arg2[%c3_216, %c0_217, %c0_218] : memref<9x32x4xf32, #tpu.memory_space<vmem>>, vector<1x32x4xf32>
    %258 = vector.shape_cast %257 : vector<1x32x4xf32> to vector<32x4xf32>
    %cst_219 = arith.constant dense<0.000000e+00> : vector<32x512xf32>
    %259 = tpu.matmul %258, %9, %cst_219 {dimension_numbers = #tpu.dot_dimension_numbers<[1], [0], [0], [1], [0, 0, 1, 1], [], []>} : vector<32x4xf32>, vector<4x512xf32>, vector<32x512xf32> -> vector<32x512xf32>
    %260 = arith.addf %256, %259 : vector<32x512xf32>
    %c4_220 = arith.constant 4 : index
    %c0_221 = arith.constant 0 : index
    %c0_222 = arith.constant 0 : index
    %261 = vector.load %arg2[%c4_220, %c0_221, %c0_222] : memref<9x32x4xf32, #tpu.memory_space<vmem>>, vector<1x32x4xf32>
    %262 = vector.shape_cast %261 : vector<1x32x4xf32> to vector<32x4xf32>
    %cst_223 = arith.constant dense<0.000000e+00> : vector<32x512xf32>
    %263 = tpu.matmul %262, %11, %cst_223 {dimension_numbers = #tpu.dot_dimension_numbers<[1], [0], [0], [1], [0, 0, 1, 1], [], []>} : vector<32x4xf32>, vector<4x512xf32>, vector<32x512xf32> -> vector<32x512xf32>
    %264 = arith.addf %260, %263 : vector<32x512xf32>
    %c6_224 = arith.constant 6 : index
    %c0_225 = arith.constant 0 : index
    %c0_226 = arith.constant 0 : index
    %265 = vector.load %arg2[%c6_224, %c0_225, %c0_226] : memref<9x32x4xf32, #tpu.memory_space<vmem>>, vector<1x32x4xf32>
    %266 = vector.shape_cast %265 : vector<1x32x4xf32> to vector<32x4xf32>
    %cst_227 = arith.constant dense<0.000000e+00> : vector<32x512xf32>
    %267 = tpu.matmul %266, %15, %cst_227 {dimension_numbers = #tpu.dot_dimension_numbers<[1], [0], [0], [1], [0, 0, 1, 1], [], []>} : vector<32x4xf32>, vector<4x512xf32>, vector<32x512xf32> -> vector<32x512xf32>
    %268 = arith.addf %264, %267 : vector<32x512xf32>
    %c7_228 = arith.constant 7 : index
    %c0_229 = arith.constant 0 : index
    %c0_230 = arith.constant 0 : index
    %269 = vector.load %arg2[%c7_228, %c0_229, %c0_230] : memref<9x32x4xf32, #tpu.memory_space<vmem>>, vector<1x32x4xf32>
    %270 = vector.shape_cast %269 : vector<1x32x4xf32> to vector<32x4xf32>
    %cst_231 = arith.constant dense<0.000000e+00> : vector<32x512xf32>
    %271 = tpu.matmul %270, %17, %cst_231 {dimension_numbers = #tpu.dot_dimension_numbers<[1], [0], [0], [1], [0, 0, 1, 1], [], []>} : vector<32x4xf32>, vector<4x512xf32>, vector<32x512xf32> -> vector<32x512xf32>
    %272 = arith.addf %268, %271 : vector<32x512xf32>
    %c0_232 = arith.constant 0 : index
    %c0_233 = arith.constant 0 : index
    %273 = vector.load %arg3[%c0_232, %c0_233] : memref<32x1xf32, #tpu.memory_space<vmem>>, vector<32x1xf32>
    %274 = vector.broadcast %273 : vector<32x1xf32> to vector<32x512xf32>
    %275 = arith.addf %272, %274 : vector<32x512xf32>
    %c0_234 = arith.constant 0 : index
    %c0_235 = arith.constant 0 : index
    %276 = vector.load %arg4[%c0_234, %c0_235] : memref<32x1xf32, #tpu.memory_space<vmem>>, vector<32x1xf32>
    %277 = vector.broadcast %276 : vector<32x1xf32> to vector<32x512xf32>
    %278 = arith.mulf %275, %277 : vector<32x512xf32>
    %cst_236 = arith.constant dense<0.000000e+00> : vector<512xf32>
    %279 = vector.multi_reduction <add>, %278, %cst_236 [0] : vector<32x512xf32> to vector<512xf32>
    %280 = vector.shape_cast %279 : vector<512xf32> to vector<1x512xf32>
    %c0_237 = arith.constant 0 : index
    %c0_238 = arith.constant 0 : index
    %281 = vector.load %arg5[%c0_237, %c0_238] : memref<1x1xf32, #tpu.memory_space<vmem>>, vector<1x1xf32>
    %282 = vector.broadcast %281 : vector<1x1xf32> to vector<1x512xf32>
    %283 = arith.addf %280, %282 : vector<1x512xf32>
    %284 = arith.negf %283 : vector<1x512xf32>
    %285 = math.exp %284 : vector<1x512xf32>
    %cst_239 = arith.constant 1.000000e+00 : f32
    %286 = vector.broadcast %cst_239 : f32 to vector<1x512xf32>
    %287 = arith.addf %286, %285 : vector<1x512xf32>
    %288 = arith.divf %286, %287 : vector<1x512xf32>
    %cst_240 = arith.constant 1.000000e+00 : f32
    %289 = vector.broadcast %cst_240 : f32 to vector<1x512xf32>
    %290 = arith.addf %289, %288 : vector<1x512xf32>
    %291 = vector.broadcast %290 : vector<1x512xf32> to vector<4x512xf32>
    %292 = arith.mulf %11, %291 : vector<4x512xf32>
    %c5_241 = arith.constant 5 : index
    %c0_242 = arith.constant 0 : index
    %c0_243 = arith.constant 0 : index
    %293 = vector.load %arg6[%c5_241, %c0_242, %c0_243] : memref<9x4x4xf32, #tpu.memory_space<vmem>>, vector<1x4x4xf32>
    %294 = vector.shape_cast %293 : vector<1x4x4xf32> to vector<4x4xf32>
    %cst_244 = arith.constant dense<0.000000e+00> : vector<4x512xf32>
    %295 = tpu.matmul %294, %292, %cst_244 {dimension_numbers = #tpu.dot_dimension_numbers<[1], [0], [0], [1], [0, 0, 1, 1], [], []>} : vector<4x4xf32>, vector<4x512xf32>, vector<4x512xf32> -> vector<4x512xf32>
    %296 = arith.addf %249, %295 : vector<4x512xf32>
    %c1_245 = arith.constant 1 : index
    %c0_246 = arith.constant 0 : index
    %c0_247 = arith.constant 0 : index
    %297 = vector.load %arg2[%c1_245, %c0_246, %c0_247] : memref<9x32x4xf32, #tpu.memory_space<vmem>>, vector<1x32x4xf32>
    %298 = vector.shape_cast %297 : vector<1x32x4xf32> to vector<32x4xf32>
    %cst_248 = arith.constant dense<0.000000e+00> : vector<32x512xf32>
    %299 = tpu.matmul %298, %7, %cst_248 {dimension_numbers = #tpu.dot_dimension_numbers<[1], [0], [0], [1], [0, 0, 1, 1], [], []>} : vector<32x4xf32>, vector<4x512xf32>, vector<32x512xf32> -> vector<32x512xf32>
    %c2_249 = arith.constant 2 : index
    %c0_250 = arith.constant 0 : index
    %c0_251 = arith.constant 0 : index
    %300 = vector.load %arg2[%c2_249, %c0_250, %c0_251] : memref<9x32x4xf32, #tpu.memory_space<vmem>>, vector<1x32x4xf32>
    %301 = vector.shape_cast %300 : vector<1x32x4xf32> to vector<32x4xf32>
    %cst_252 = arith.constant dense<0.000000e+00> : vector<32x512xf32>
    %302 = tpu.matmul %301, %9, %cst_252 {dimension_numbers = #tpu.dot_dimension_numbers<[1], [0], [0], [1], [0, 0, 1, 1], [], []>} : vector<32x4xf32>, vector<4x512xf32>, vector<32x512xf32> -> vector<32x512xf32>
    %303 = arith.addf %299, %302 : vector<32x512xf32>
    %c4_253 = arith.constant 4 : index
    %c0_254 = arith.constant 0 : index
    %c0_255 = arith.constant 0 : index
    %304 = vector.load %arg2[%c4_253, %c0_254, %c0_255] : memref<9x32x4xf32, #tpu.memory_space<vmem>>, vector<1x32x4xf32>
    %305 = vector.shape_cast %304 : vector<1x32x4xf32> to vector<32x4xf32>
    %cst_256 = arith.constant dense<0.000000e+00> : vector<32x512xf32>
    %306 = tpu.matmul %305, %13, %cst_256 {dimension_numbers = #tpu.dot_dimension_numbers<[1], [0], [0], [1], [0, 0, 1, 1], [], []>} : vector<32x4xf32>, vector<4x512xf32>, vector<32x512xf32> -> vector<32x512xf32>
    %307 = arith.addf %303, %306 : vector<32x512xf32>
    %c5_257 = arith.constant 5 : index
    %c0_258 = arith.constant 0 : index
    %c0_259 = arith.constant 0 : index
    %308 = vector.load %arg2[%c5_257, %c0_258, %c0_259] : memref<9x32x4xf32, #tpu.memory_space<vmem>>, vector<1x32x4xf32>
    %309 = vector.shape_cast %308 : vector<1x32x4xf32> to vector<32x4xf32>
    %cst_260 = arith.constant dense<0.000000e+00> : vector<32x512xf32>
    %310 = tpu.matmul %309, %15, %cst_260 {dimension_numbers = #tpu.dot_dimension_numbers<[1], [0], [0], [1], [0, 0, 1, 1], [], []>} : vector<32x4xf32>, vector<4x512xf32>, vector<32x512xf32> -> vector<32x512xf32>
    %311 = arith.addf %307, %310 : vector<32x512xf32>
    %c0_261 = arith.constant 0 : index
    %c0_262 = arith.constant 0 : index
    %312 = vector.load %arg3[%c0_261, %c0_262] : memref<32x1xf32, #tpu.memory_space<vmem>>, vector<32x1xf32>
    %313 = vector.broadcast %312 : vector<32x1xf32> to vector<32x512xf32>
    %314 = arith.addf %311, %313 : vector<32x512xf32>
    %c0_263 = arith.constant 0 : index
    %c0_264 = arith.constant 0 : index
    %315 = vector.load %arg4[%c0_263, %c0_264] : memref<32x1xf32, #tpu.memory_space<vmem>>, vector<32x1xf32>
    %316 = vector.broadcast %315 : vector<32x1xf32> to vector<32x512xf32>
    %317 = arith.mulf %314, %316 : vector<32x512xf32>
    %cst_265 = arith.constant dense<0.000000e+00> : vector<512xf32>
    %318 = vector.multi_reduction <add>, %317, %cst_265 [0] : vector<32x512xf32> to vector<512xf32>
    %319 = vector.shape_cast %318 : vector<512xf32> to vector<1x512xf32>
    %c0_266 = arith.constant 0 : index
    %c0_267 = arith.constant 0 : index
    %320 = vector.load %arg5[%c0_266, %c0_267] : memref<1x1xf32, #tpu.memory_space<vmem>>, vector<1x1xf32>
    %321 = vector.broadcast %320 : vector<1x1xf32> to vector<1x512xf32>
    %322 = arith.addf %319, %321 : vector<1x512xf32>
    %323 = arith.negf %322 : vector<1x512xf32>
    %324 = math.exp %323 : vector<1x512xf32>
    %cst_268 = arith.constant 1.000000e+00 : f32
    %325 = vector.broadcast %cst_268 : f32 to vector<1x512xf32>
    %326 = arith.addf %325, %324 : vector<1x512xf32>
    %327 = arith.divf %325, %326 : vector<1x512xf32>
    %cst_269 = arith.constant 1.000000e+00 : f32
    %328 = vector.broadcast %cst_269 : f32 to vector<1x512xf32>
    %329 = arith.addf %328, %327 : vector<1x512xf32>
    %330 = vector.broadcast %329 : vector<1x512xf32> to vector<4x512xf32>
    %331 = arith.mulf %13, %330 : vector<4x512xf32>
    %c6_270 = arith.constant 6 : index
    %c0_271 = arith.constant 0 : index
    %c0_272 = arith.constant 0 : index
    %332 = vector.load %arg6[%c6_270, %c0_271, %c0_272] : memref<9x4x4xf32, #tpu.memory_space<vmem>>, vector<1x4x4xf32>
    %333 = vector.shape_cast %332 : vector<1x4x4xf32> to vector<4x4xf32>
    %cst_273 = arith.constant dense<0.000000e+00> : vector<4x512xf32>
    %334 = tpu.matmul %333, %331, %cst_273 {dimension_numbers = #tpu.dot_dimension_numbers<[1], [0], [0], [1], [0, 0, 1, 1], [], []>} : vector<4x4xf32>, vector<4x512xf32>, vector<4x512xf32> -> vector<4x512xf32>
    %335 = arith.addf %296, %334 : vector<4x512xf32>
    %c0_274 = arith.constant 0 : index
    %c0_275 = arith.constant 0 : index
    %c0_276 = arith.constant 0 : index
    %336 = vector.load %arg2[%c0_274, %c0_275, %c0_276] : memref<9x32x4xf32, #tpu.memory_space<vmem>>, vector<1x32x4xf32>
    %337 = vector.shape_cast %336 : vector<1x32x4xf32> to vector<32x4xf32>
    %cst_277 = arith.constant dense<0.000000e+00> : vector<32x512xf32>
    %338 = tpu.matmul %337, %7, %cst_277 {dimension_numbers = #tpu.dot_dimension_numbers<[1], [0], [0], [1], [0, 0, 1, 1], [], []>} : vector<32x4xf32>, vector<4x512xf32>, vector<32x512xf32> -> vector<32x512xf32>
    %c1_278 = arith.constant 1 : index
    %c0_279 = arith.constant 0 : index
    %c0_280 = arith.constant 0 : index
    %339 = vector.load %arg2[%c1_278, %c0_279, %c0_280] : memref<9x32x4xf32, #tpu.memory_space<vmem>>, vector<1x32x4xf32>
    %340 = vector.shape_cast %339 : vector<1x32x4xf32> to vector<32x4xf32>
    %cst_281 = arith.constant dense<0.000000e+00> : vector<32x512xf32>
    %341 = tpu.matmul %340, %9, %cst_281 {dimension_numbers = #tpu.dot_dimension_numbers<[1], [0], [0], [1], [0, 0, 1, 1], [], []>} : vector<32x4xf32>, vector<4x512xf32>, vector<32x512xf32> -> vector<32x512xf32>
    %342 = arith.addf %338, %341 : vector<32x512xf32>
    %c2_282 = arith.constant 2 : index
    %c0_283 = arith.constant 0 : index
    %c0_284 = arith.constant 0 : index
    %343 = vector.load %arg2[%c2_282, %c0_283, %c0_284] : memref<9x32x4xf32, #tpu.memory_space<vmem>>, vector<1x32x4xf32>
    %344 = vector.shape_cast %343 : vector<1x32x4xf32> to vector<32x4xf32>
    %cst_285 = arith.constant dense<0.000000e+00> : vector<32x512xf32>
    %345 = tpu.matmul %344, %11, %cst_285 {dimension_numbers = #tpu.dot_dimension_numbers<[1], [0], [0], [1], [0, 0, 1, 1], [], []>} : vector<32x4xf32>, vector<4x512xf32>, vector<32x512xf32> -> vector<32x512xf32>
    %346 = arith.addf %342, %345 : vector<32x512xf32>
    %c3_286 = arith.constant 3 : index
    %c0_287 = arith.constant 0 : index
    %c0_288 = arith.constant 0 : index
    %347 = vector.load %arg2[%c3_286, %c0_287, %c0_288] : memref<9x32x4xf32, #tpu.memory_space<vmem>>, vector<1x32x4xf32>
    %348 = vector.shape_cast %347 : vector<1x32x4xf32> to vector<32x4xf32>
    %cst_289 = arith.constant dense<0.000000e+00> : vector<32x512xf32>
    %349 = tpu.matmul %348, %13, %cst_289 {dimension_numbers = #tpu.dot_dimension_numbers<[1], [0], [0], [1], [0, 0, 1, 1], [], []>} : vector<32x4xf32>, vector<4x512xf32>, vector<32x512xf32> -> vector<32x512xf32>
    %350 = arith.addf %346, %349 : vector<32x512xf32>
    %c4_290 = arith.constant 4 : index
    %c0_291 = arith.constant 0 : index
    %c0_292 = arith.constant 0 : index
    %351 = vector.load %arg2[%c4_290, %c0_291, %c0_292] : memref<9x32x4xf32, #tpu.memory_space<vmem>>, vector<1x32x4xf32>
    %352 = vector.shape_cast %351 : vector<1x32x4xf32> to vector<32x4xf32>
    %cst_293 = arith.constant dense<0.000000e+00> : vector<32x512xf32>
    %353 = tpu.matmul %352, %15, %cst_293 {dimension_numbers = #tpu.dot_dimension_numbers<[1], [0], [0], [1], [0, 0, 1, 1], [], []>} : vector<32x4xf32>, vector<4x512xf32>, vector<32x512xf32> -> vector<32x512xf32>
    %354 = arith.addf %350, %353 : vector<32x512xf32>
    %c5_294 = arith.constant 5 : index
    %c0_295 = arith.constant 0 : index
    %c0_296 = arith.constant 0 : index
    %355 = vector.load %arg2[%c5_294, %c0_295, %c0_296] : memref<9x32x4xf32, #tpu.memory_space<vmem>>, vector<1x32x4xf32>
    %356 = vector.shape_cast %355 : vector<1x32x4xf32> to vector<32x4xf32>
    %cst_297 = arith.constant dense<0.000000e+00> : vector<32x512xf32>
    %357 = tpu.matmul %356, %17, %cst_297 {dimension_numbers = #tpu.dot_dimension_numbers<[1], [0], [0], [1], [0, 0, 1, 1], [], []>} : vector<32x4xf32>, vector<4x512xf32>, vector<32x512xf32> -> vector<32x512xf32>
    %358 = arith.addf %354, %357 : vector<32x512xf32>
    %c0_298 = arith.constant 0 : index
    %c0_299 = arith.constant 0 : index
    %359 = vector.load %arg3[%c0_298, %c0_299] : memref<32x1xf32, #tpu.memory_space<vmem>>, vector<32x1xf32>
    %360 = vector.broadcast %359 : vector<32x1xf32> to vector<32x512xf32>
    %361 = arith.addf %358, %360 : vector<32x512xf32>
    %c0_300 = arith.constant 0 : index
    %c0_301 = arith.constant 0 : index
    %362 = vector.load %arg4[%c0_300, %c0_301] : memref<32x1xf32, #tpu.memory_space<vmem>>, vector<32x1xf32>
    %363 = vector.broadcast %362 : vector<32x1xf32> to vector<32x512xf32>
    %364 = arith.mulf %361, %363 : vector<32x512xf32>
    %cst_302 = arith.constant dense<0.000000e+00> : vector<512xf32>
    %365 = vector.multi_reduction <add>, %364, %cst_302 [0] : vector<32x512xf32> to vector<512xf32>
    %366 = vector.shape_cast %365 : vector<512xf32> to vector<1x512xf32>
    %c0_303 = arith.constant 0 : index
    %c0_304 = arith.constant 0 : index
    %367 = vector.load %arg5[%c0_303, %c0_304] : memref<1x1xf32, #tpu.memory_space<vmem>>, vector<1x1xf32>
    %368 = vector.broadcast %367 : vector<1x1xf32> to vector<1x512xf32>
    %369 = arith.addf %366, %368 : vector<1x512xf32>
    %370 = arith.negf %369 : vector<1x512xf32>
    %371 = math.exp %370 : vector<1x512xf32>
    %cst_305 = arith.constant 1.000000e+00 : f32
    %372 = vector.broadcast %cst_305 : f32 to vector<1x512xf32>
    %373 = arith.addf %372, %371 : vector<1x512xf32>
    %374 = arith.divf %372, %373 : vector<1x512xf32>
    %cst_306 = arith.constant 1.000000e+00 : f32
    %375 = vector.broadcast %cst_306 : f32 to vector<1x512xf32>
    %376 = arith.addf %375, %374 : vector<1x512xf32>
    %377 = vector.broadcast %376 : vector<1x512xf32> to vector<4x512xf32>
    %378 = arith.mulf %15, %377 : vector<4x512xf32>
    %c7_307 = arith.constant 7 : index
    %c0_308 = arith.constant 0 : index
    %c0_309 = arith.constant 0 : index
    %379 = vector.load %arg6[%c7_307, %c0_308, %c0_309] : memref<9x4x4xf32, #tpu.memory_space<vmem>>, vector<1x4x4xf32>
    %380 = vector.shape_cast %379 : vector<1x4x4xf32> to vector<4x4xf32>
    %cst_310 = arith.constant dense<0.000000e+00> : vector<4x512xf32>
    %381 = tpu.matmul %380, %378, %cst_310 {dimension_numbers = #tpu.dot_dimension_numbers<[1], [0], [0], [1], [0, 0, 1, 1], [], []>} : vector<4x4xf32>, vector<4x512xf32>, vector<4x512xf32> -> vector<4x512xf32>
    %382 = arith.addf %335, %381 : vector<4x512xf32>
    %c0_311 = arith.constant 0 : index
    %c0_312 = arith.constant 0 : index
    %c0_313 = arith.constant 0 : index
    %383 = vector.load %arg2[%c0_311, %c0_312, %c0_313] : memref<9x32x4xf32, #tpu.memory_space<vmem>>, vector<1x32x4xf32>
    %384 = vector.shape_cast %383 : vector<1x32x4xf32> to vector<32x4xf32>
    %cst_314 = arith.constant dense<0.000000e+00> : vector<32x512xf32>
    %385 = tpu.matmul %384, %9, %cst_314 {dimension_numbers = #tpu.dot_dimension_numbers<[1], [0], [0], [1], [0, 0, 1, 1], [], []>} : vector<32x4xf32>, vector<4x512xf32>, vector<32x512xf32> -> vector<32x512xf32>
    %c1_315 = arith.constant 1 : index
    %c0_316 = arith.constant 0 : index
    %c0_317 = arith.constant 0 : index
    %386 = vector.load %arg2[%c1_315, %c0_316, %c0_317] : memref<9x32x4xf32, #tpu.memory_space<vmem>>, vector<1x32x4xf32>
    %387 = vector.shape_cast %386 : vector<1x32x4xf32> to vector<32x4xf32>
    %cst_318 = arith.constant dense<0.000000e+00> : vector<32x512xf32>
    %388 = tpu.matmul %387, %11, %cst_318 {dimension_numbers = #tpu.dot_dimension_numbers<[1], [0], [0], [1], [0, 0, 1, 1], [], []>} : vector<32x4xf32>, vector<4x512xf32>, vector<32x512xf32> -> vector<32x512xf32>
    %389 = arith.addf %385, %388 : vector<32x512xf32>
    %c3_319 = arith.constant 3 : index
    %c0_320 = arith.constant 0 : index
    %c0_321 = arith.constant 0 : index
    %390 = vector.load %arg2[%c3_319, %c0_320, %c0_321] : memref<9x32x4xf32, #tpu.memory_space<vmem>>, vector<1x32x4xf32>
    %391 = vector.shape_cast %390 : vector<1x32x4xf32> to vector<32x4xf32>
    %cst_322 = arith.constant dense<0.000000e+00> : vector<32x512xf32>
    %392 = tpu.matmul %391, %15, %cst_322 {dimension_numbers = #tpu.dot_dimension_numbers<[1], [0], [0], [1], [0, 0, 1, 1], [], []>} : vector<32x4xf32>, vector<4x512xf32>, vector<32x512xf32> -> vector<32x512xf32>
    %393 = arith.addf %389, %392 : vector<32x512xf32>
    %c4_323 = arith.constant 4 : index
    %c0_324 = arith.constant 0 : index
    %c0_325 = arith.constant 0 : index
    %394 = vector.load %arg2[%c4_323, %c0_324, %c0_325] : memref<9x32x4xf32, #tpu.memory_space<vmem>>, vector<1x32x4xf32>
    %395 = vector.shape_cast %394 : vector<1x32x4xf32> to vector<32x4xf32>
    %cst_326 = arith.constant dense<0.000000e+00> : vector<32x512xf32>
    %396 = tpu.matmul %395, %17, %cst_326 {dimension_numbers = #tpu.dot_dimension_numbers<[1], [0], [0], [1], [0, 0, 1, 1], [], []>} : vector<32x4xf32>, vector<4x512xf32>, vector<32x512xf32> -> vector<32x512xf32>
    %397 = arith.addf %393, %396 : vector<32x512xf32>
    %c0_327 = arith.constant 0 : index
    %c0_328 = arith.constant 0 : index
    %398 = vector.load %arg3[%c0_327, %c0_328] : memref<32x1xf32, #tpu.memory_space<vmem>>, vector<32x1xf32>
    %399 = vector.broadcast %398 : vector<32x1xf32> to vector<32x512xf32>
    %400 = arith.addf %397, %399 : vector<32x512xf32>
    %c0_329 = arith.constant 0 : index
    %c0_330 = arith.constant 0 : index
    %401 = vector.load %arg4[%c0_329, %c0_330] : memref<32x1xf32, #tpu.memory_space<vmem>>, vector<32x1xf32>
    %402 = vector.broadcast %401 : vector<32x1xf32> to vector<32x512xf32>
    %403 = arith.mulf %400, %402 : vector<32x512xf32>
    %cst_331 = arith.constant dense<0.000000e+00> : vector<512xf32>
    %404 = vector.multi_reduction <add>, %403, %cst_331 [0] : vector<32x512xf32> to vector<512xf32>
    %405 = vector.shape_cast %404 : vector<512xf32> to vector<1x512xf32>
    %c0_332 = arith.constant 0 : index
    %c0_333 = arith.constant 0 : index
    %406 = vector.load %arg5[%c0_332, %c0_333] : memref<1x1xf32, #tpu.memory_space<vmem>>, vector<1x1xf32>
    %407 = vector.broadcast %406 : vector<1x1xf32> to vector<1x512xf32>
    %408 = arith.addf %405, %407 : vector<1x512xf32>
    %409 = arith.negf %408 : vector<1x512xf32>
    %410 = math.exp %409 : vector<1x512xf32>
    %cst_334 = arith.constant 1.000000e+00 : f32
    %411 = vector.broadcast %cst_334 : f32 to vector<1x512xf32>
    %412 = arith.addf %411, %410 : vector<1x512xf32>
    %413 = arith.divf %411, %412 : vector<1x512xf32>
    %cst_335 = arith.constant 1.000000e+00 : f32
    %414 = vector.broadcast %cst_335 : f32 to vector<1x512xf32>
    %415 = arith.addf %414, %413 : vector<1x512xf32>
    %416 = vector.broadcast %415 : vector<1x512xf32> to vector<4x512xf32>
    %417 = arith.mulf %17, %416 : vector<4x512xf32>
    %c8_336 = arith.constant 8 : index
    %c0_337 = arith.constant 0 : index
    %c0_338 = arith.constant 0 : index
    %418 = vector.load %arg6[%c8_336, %c0_337, %c0_338] : memref<9x4x4xf32, #tpu.memory_space<vmem>>, vector<1x4x4xf32>
    %419 = vector.shape_cast %418 : vector<1x4x4xf32> to vector<4x4xf32>
    %cst_339 = arith.constant dense<0.000000e+00> : vector<4x512xf32>
    %420 = tpu.matmul %419, %417, %cst_339 {dimension_numbers = #tpu.dot_dimension_numbers<[1], [0], [0], [1], [0, 0, 1, 1], [], []>} : vector<4x4xf32>, vector<4x512xf32>, vector<4x512xf32> -> vector<4x512xf32>
    %421 = arith.addf %382, %420 : vector<4x512xf32>
    %c0_340 = arith.constant 0 : index
    %c0_341 = arith.constant 0 : index
    %422 = vector.load %arg7[%c0_340, %c0_341] : memref<4x1xf32, #tpu.memory_space<vmem>>, vector<4x1xf32>
    %423 = vector.broadcast %422 : vector<4x1xf32> to vector<4x512xf32>
    %424 = arith.addf %421, %423 : vector<4x512xf32>
    %c0_342 = arith.constant 0 : index
    %c0_343 = arith.constant 0 : index
    %c0_344 = arith.constant 0 : index
    %425 = vector.load %arg8[%c0_342, %c0_343, %c0_344] : memref<1x4x512xf32, #tpu.memory_space<vmem>>, vector<1x4x512xf32>
    %426 = vector.shape_cast %425 : vector<1x4x512xf32> to vector<4x512xf32>
    %427 = vector.shape_cast %424 : vector<4x512xf32> to vector<1x4x512xf32>
    tpu.vector_store %arg8[%c0_342, %c0_343, %c0_344], %427 {strides = array<i32>} : memref<1x4x512xf32, #tpu.memory_space<vmem>>, vector<1x4x512xf32>,
    %428 = tpu.concatenate %49, %96, %135, %182, %241, %288, %327, %374, %413 in 0 : vector<1x512xf32>, vector<1x512xf32>, vector<1x512xf32>, vector<1x512xf32>, vector<1x512xf32>, vector<1x512xf32>, vector<1x512xf32>, vector<1x512xf32>, vector<1x512xf32> -> vector<9x512xf32>
    %c0_345 = arith.constant 0 : index
    %c0_346 = arith.constant 0 : index
    %c0_347 = arith.constant 0 : index
    %429 = vector.load %arg9[%c0_345, %c0_346, %c0_347] : memref<1x9x512xf32, #tpu.memory_space<vmem>>, vector<1x9x512xf32>
    %430 = vector.shape_cast %429 : vector<1x9x512xf32> to vector<9x512xf32>
    %431 = vector.shape_cast %428 : vector<9x512xf32> to vector<1x9x512xf32>
    tpu.vector_store %arg9[%c0_345, %c0_346, %c0_347], %431 {strides = array<i32>} : memref<1x9x512xf32, #tpu.memory_space<vmem>>, vector<1x9x512xf32>,
    return
  }
  func.func @transform_0(%arg0: i32) -> (i32, i32, i32, i32) {
    %c0_i32 = arith.constant 0 : i32
    %c0_i32_0 = arith.constant 0 : i32
    %c0_i32_1 = arith.constant 0 : i32
    %c0_i32_2 = arith.constant 0 : i32
    return %arg0, %c0_i32, %c0_i32_0, %c0_i32_1 : i32, i32, i32, i32
  }
  func.func @transform_1(%arg0: i32) -> (i32, i32, i32) {
    %c0_i32 = arith.constant 0 : i32
    %c0_i32_0 = arith.constant 0 : i32
    %c0_i32_1 = arith.constant 0 : i32
    %c0_i32_2 = arith.constant 0 : i32
    return %c0_i32, %c0_i32_0, %c0_i32_1 : i32, i32, i32
  }
  func.func @transform_2(%arg0: i32) -> (i32, i32) {
    %c0_i32 = arith.constant 0 : i32
    %c0_i32_0 = arith.constant 0 : i32
    %c0_i32_1 = arith.constant 0 : i32
    return %c0_i32, %c0_i32_0 : i32, i32
  }
  func.func @transform_3(%arg0: i32) -> (i32, i32) {
    %c0_i32 = arith.constant 0 : i32
    %c0_i32_0 = arith.constant 0 : i32
    %c0_i32_1 = arith.constant 0 : i32
    return %c0_i32, %c0_i32_0 : i32, i32
  }
  func.func @transform_4(%arg0: i32) -> (i32, i32) {
    %c0_i32 = arith.constant 0 : i32
    %c0_i32_0 = arith.constant 0 : i32
    %c0_i32_1 = arith.constant 0 : i32
    return %c0_i32, %c0_i32_0 : i32, i32
  }
  func.func @transform_5(%arg0: i32) -> (i32, i32, i32) {
    %c0_i32 = arith.constant 0 : i32
    %c0_i32_0 = arith.constant 0 : i32
    %c0_i32_1 = arith.constant 0 : i32
    %c0_i32_2 = arith.constant 0 : i32
    return %c0_i32, %c0_i32_0, %c0_i32_1 : i32, i32, i32
  }
  func.func @transform_6(%arg0: i32) -> (i32, i32) {
    %c0_i32 = arith.constant 0 : i32
    %c0_i32_0 = arith.constant 0 : i32
    %c0_i32_1 = arith.constant 0 : i32
    return %c0_i32, %c0_i32_0 : i32, i32
  }
  func.func @transform_7(%arg0: i32) -> (i32, i32, i32) {
    %c0_i32 = arith.constant 0 : i32
    %c0_i32_0 = arith.constant 0 : i32
    %c0_i32_1 = arith.constant 0 : i32
    return %arg0, %c0_i32, %c0_i32_0 : i32, i32, i32
  }
  func.func @transform_8(%arg0: i32) -> (i32, i32, i32) {
    %c0_i32 = arith.constant 0 : i32
    %c0_i32_0 = arith.constant 0 : i32
    %c0_i32_1 = arith.constant 0 : i32
    return %arg0, %c0_i32, %c0_i32_0 : i32, i32, i32
  }
}

</mosaic_0001>

<bundles_post_ra>
// kernel: tpu_custom_call.1
= control target key start
LH: loop header
LB: loop body
LE: loop exit
PB: predicated region body
PF: predicated region fallthrough
CT: control target
= control target key end

     0   :  { %s16807_s0 = inlined_call_operand.vmem [shape: f32[1,9,4,512], index: 0, kind: input, shape index: {}]   ;;  %s16808_s1 = inlined_call_operand.vmem [shape: f32[9,32,4], index: 1, kind: input, shape index: {}]   ;;  %s16809_s2 = inlined_call_operand.vmem [shape: f32[32,1], index: 2, kind: input, shape index: {}]   ;;  %s16810_s3 = inlined_call_operand.vmem [shape: f32[32,1], index: 3, kind: input, shape index: {}]   ;;  %s16811_s4 = inlined_call_operand.<no memory space> [shape: f32[1,1], index: 4, kind: input, shape index: {}]   ;;  %s16812_s5 = inlined_call_operand.vmem [shape: f32[9,4,4], index: 5, kind: input, shape index: {}]   ;;  %s16813_s6 = inlined_call_operand.vmem [shape: f32[4,1], index: 6, kind: input, shape index: {}]   ;;  %s16814_s7 = inlined_call_operand.hbm [shape: f32[1,4,512], index: 7, kind: output, shape index: {0}]   ;;  %s16815_s8 = inlined_call_operand.vmem [shape: f32[1,9,512], index: 8, kind: output, shape index: {1}]  }
   0x1   :  { %v14_v0 = vstv %s16811_s4 }
   0x2   :  { %15 = vst [vmem:[#allocation2] sm:$0x1] %v14_v0 }
   0x3   :  { %v13868_v1 = vld [vmem:[%s16807_s0 + $0x10] sm:$0xff]  ;;  %vm84_vm0 = vcmask 1043456   ;;  %v13873_v2 = vld [vmem:[%s16807_s0 + $0x18] sm:$0xff]  ;;  %v16816_v5 = vmov 0.0   ;;  %v13888_v6 = vld [vmem:[%s16808_s1 + $0xa0] sm:$0xff]  ;;  %vm71_vm1 = vcmask 31744  }
   0x4   :  { %v13877_v3 = vcombine.high %v13868_v1, %v13868_v1  ;;  %v13881_v4 = vcombine.high %v13873_v2, %v13873_v2  ;;  %157 = vmatprep.mubr.f32.mxu0 %v16816_v5  ;;  %246 = vmatprep.mubr.f32.mxu1 %v16816_v5  ;;  %v13893_v7 = vld [vmem:[%s16807_s0] sm:$0xff]  ;;  %v13898_v8 = vld [vmem:[%s16807_s0 + $0x8] sm:$0xff]  ;;  %v13919_v11 = vld [vmem:[%s16807_s0 + $0x30] sm:$0xff]  ;;  %v13815_v17 = vmov 0  }
   0x5   :  { %v13906_v9 = vcombine.high %v13893_v7, %v13893_v7  ;;  %v13910_v10 = vcombine.high %v13898_v8, %v13898_v8  ;;  %v13924_v12 = vld [vmem:[%s16807_s0 + $0x38] sm:$0xff]  ;;  %v13935_v13 = vld [vmem:[%s16808_s1 + $0xa8] sm:$0xff]  ;;  %v13943_v14 = vcombine.high %v13919_v11, %v13919_v11  ;;  %v13962_v16 = vld [vmem:[%s16808_s1 + $0xb0] sm:$0xff]  ;;  %13533 = vset.pattern.permute.xlu1 %v13815_v17  ;;  %13532 = vset.pattern.permute.xlu0 %v13815_v17 }
   0x6   :  { %12147 = vmatprep.subr.msk.mxu0 %vm84_vm0, %v13877_v3  ;;  %12153 = vmatprep.subr.msk.mxu1 %vm84_vm0, %v13881_v4  ;;  %v13947_v15 = vcombine.high %v13924_v12, %v13924_v12  ;;  %v921_v18 = vld [vmem:[%s16809_s2 + $0x10] sm:$0xff]  ;;  %v919_v19 = vld [vmem:[%s16809_s2] sm:$0xff] }
   0x7   :  { %16908 = vst [vmem:[#allocation6_spill] sm:$0xff] %v13906_v9  ;;  %16909 = vst [vmem:[#allocation7_spill] sm:$0xff] %v13910_v10  ;;  %12148 = vmatpush1.msk.msra.mxu0 %vm84_vm0, %v13868_v1  ;;  %12154 = vmatpush1.msk.msra.mxu1 %vm84_vm0, %v13873_v2 }
   0x8   :  { %12149 = vmatmul.mubr.msk.f32.vlgmr.msra.gmra.mrb[0].mxu0 %vm71_vm1, %v13888_v6  ;;  %12155 = vmatmul.mubr.msk.f32.vlgmr.msra.gmra.mrb[0].mxu1 %vm71_vm1, %v13888_v6  ;;  %16910 = vst [vmem:[#allocation8_spill] sm:$0xff] %v13943_v14  ;;  %16911 = vst [vmem:[#allocation9_spill] sm:$0xff] %v13947_v15 }
   0x9   :  { %163 = vmatprep.mubr.f32.mxu0 %v16816_v5  ;;  %252 = vmatprep.mubr.f32.mxu1 %v16816_v5 }
   0xa   :  { %12159 = vmatprep.subr.msk.mxu0 %vm84_vm0, %v13906_v9  ;;  %12165 = vmatprep.subr.msk.mxu1 %vm84_vm0, %v13910_v10 }
   0xb   :  { %12160 = vmatpush1.msk.msra.mxu0 %vm84_vm0, %v13893_v7  ;;  %12166 = vmatpush1.msk.msra.mxu1 %vm84_vm0, %v13898_v8 }
   0xc   :  { %12150 = vmatmul.mubr.msk.f32.gmra.mrb[2].mxu0 %vm71_vm1, %v13935_v13  ;;  %12156 = vmatmul.mubr.msk.f32.gmra.mrb[2].mxu1 %vm71_vm1, %v13935_v13 }
   0xd   :  { %169 = vmatprep.mubr.f32.mxu0 %v16816_v5  ;;  %258 = vmatprep.mubr.f32.mxu1 %v16816_v5 }
   0xe   :  { %12175 = vmatprep.subr.msk.mxu0 %vm84_vm0, %v13943_v14  ;;  %12181 = vmatprep.subr.msk.mxu1 %vm84_vm0, %v13947_v15 }
   0xf   :  { %16 = vsyncpa [#allocation4], 0  ;;  %v13983_v20 = vld [vmem:[%s16808_s1 + $0xb8] sm:$0xff]  ;;  %935 = vperm.xlu1 %13533, %v921_v18   ;;  %925 = vperm.xlu0 %13532, %v919_v19   ;;  %v959_v21 = vld [vmem:[%s16810_s3] sm:$0xff]  ;;  %vm12063_vm2 = vcmask 1040384   ;;  %vm12068_vm3 = vcmask 1041408  }
  0x10   :  { %12151 = vmatmul.mubr.msk.f32.gmra.mrb[4].mxu0 %vm71_vm1, %v13962_v16  ;;  %12157 = vmatmul.mubr.msk.f32.gmra.mrb[4].mxu1 %vm71_vm1, %v13962_v16  ;;  %v920_v22 = vld [vmem:[%s16809_s2 + $0x8] sm:$0xff]  ;;  %v13998_v23 = vld [vmem:[%s16807_s0 + $0x40] sm:$0xff]  ;;  %v922_v30 = vld [vmem:[%s16809_s2 + $0x18] sm:$0xff]  ;;  %vm12073_vm4 = vcmask 1042432   ;;  %vm12082_vm5 = vcmask 1044480   ;;  %vm12087_vm6 = vcmask 1045504  }
  0x11   :  { %175 = vmatprep.mubr.f32.mxu0 %v16816_v5  ;;  %264 = vmatprep.mubr.f32.mxu1 %v16816_v5  ;;  %v14003_v24 = vld [vmem:[%s16807_s0 + $0x48] sm:$0xff]  ;;  %v14010_v25 = vld [vmem:[%s16808_s1 + $0x80] sm:$0xff]  ;;  %v14014_v26 = vcombine.high %v13998_v23, %v13998_v23  ;;  %v14054_v31 = vld [vmem:[%s16808_s1 + $0x90] sm:$0xff]  ;;  %vm12092_vm7 = vcmask 1046528  }
  0x12   :  { %v14018_v27 = vcombine.high %v14003_v24, %v14003_v24  ;;  %v14029_v28 = vld [vmem:[%s16808_s1 + $0x88] sm:$0xff]  ;;  %v961_v32 = vld [vmem:[%s16810_s3 + $0x10] sm:$0xff]  ;;  %v962_v33 = vld [vmem:[%s16810_s3 + $0x18] sm:$0xff] }
  0x13   :  { %965 = vperm.xlu1 %13533, %v959_v21   ;;  %930 = vperm.xlu0 %13532, %v920_v22   ;;  %v960_v29 = vld [vmem:[%s16810_s3 + $0x8] sm:$0xff]  ;;  %v14071_v34 = vld [vmem:[%s16808_s1 + $0x98] sm:$0xff]  ;;  %v1035_v35 = vld [vmem:[#allocation2] sm:$0x1] }
  0x14   :  { %12152 = vmatmul.mubr.msk.f32.gmra.mrb[6].mxu0 %vm71_vm1, %v13983_v20  ;;  %12158 = vmatmul.mubr.msk.f32.gmra.mrb[6].mxu1 %vm71_vm1, %v13983_v20  ;;  %v12043_v36 = vld [vmem:[%s16813_s6] sm:$0xf]  ;;  %v14096_v38 = vld [vmem:[%s16808_s1 + $0xe8] sm:$0xff]  ;;  %v14115_v39 = vld [vmem:[%s16808_s1 + $0xf0] sm:$0xff] }
  0x15   :  { %359 = vmatprep.mubr.f32.mxu0 %v16816_v5  ;;  %448 = vmatprep.mubr.f32.mxu1 %v16816_v5  ;;  %v14085_v37 = vld [vmem:[%s16808_s1 + $0xe0] sm:$0xff]  ;;  %v14126_v40 = vld [vmem:[%s16808_s1 + $0xf8] sm:$0xff]  ;;  %v14148_v42 = vld [vmem:[%s16808_s1 + $0x108] sm:$0xff] }
  0x16   :  { %v14137_v41 = vld [vmem:[%s16808_s1 + $0x100] sm:$0xff]  ;;  %v14167_v43 = vld [vmem:[%s16808_s1 + $0x110] sm:$0xff]  ;;  %v14178_v44 = vld [vmem:[%s16808_s1 + $0x118] sm:$0xff] }
  0x17   :  { %970 = vperm.xlu0 %13532, %v960_v29   ;;  %940 = vperm.xlu1 %13533, %v922_v30   ;;  %v14187_v45 = vld [vmem:[%s16807_s0 + $0x20] sm:$0xff]  ;;  %v14192_v46 = vld [vmem:[%s16807_s0 + $0x28] sm:$0xff]  ;;  %v14269_v51 = vld [vmem:[%s16808_s1 + $0x70] sm:$0xff] }
  0x18   :  { %12161 = vmatmul.mubr.msk.f32.vlgmr.msra.gmra.mrb[0].mxu0 %vm71_vm1, %v14010_v25  ;;  %12167 = vmatmul.mubr.msk.f32.vlgmr.msra.gmra.mrb[0].mxu1 %vm71_vm1, %v14010_v25  ;;  %v14198_v47 = vcombine.high %v14187_v45, %v14187_v45  ;;  %v14202_v48 = vcombine.high %v14192_v46, %v14192_v46  ;;  %v14239_v49 = vld [vmem:[%s16808_s1 + $0x60] sm:$0xff]  ;;  %v14250_v50 = vld [vmem:[%s16808_s1 + $0x68] sm:$0xff]  ;;  %v14280_v52 = vld [vmem:[%s16808_s1 + $0x78] sm:$0xff] }
  0x19   :  { %365 = vmatprep.mubr.f32.mxu0 %v16816_v5  ;;  %454 = vmatprep.mubr.f32.mxu1 %v16816_v5  ;;  %v14321_v53 = vld [vmem:[%s16807_s0 + $0x50] sm:$0xff]  ;;  %v14326_v54 = vld [vmem:[%s16807_s0 + $0x58] sm:$0xff]  ;;  %v14333_v55 = vld [vmem:[%s16808_s1 + $0xc0] sm:$0xff] }
  0x1a   :  { %12176 = vmatpush1.msk.msra.mxu0 %vm84_vm0, %v13919_v11  ;;  %12182 = vmatpush1.msk.msra.mxu1 %vm84_vm0, %v13924_v12  ;;  %v14337_v56 = vcombine.high %v14321_v53, %v14321_v53  ;;  %v14341_v57 = vcombine.high %v14326_v54, %v14326_v54  ;;  %v14352_v58 = vld [vmem:[%s16808_s1 + $0xc8] sm:$0xff]  ;;  %v14371_v59 = vld [vmem:[%s16808_s1 + $0xd0] sm:$0xff]  ;;  %v14382_v60 = vld [vmem:[%s16808_s1 + $0xd8] sm:$0xff] }
  0x1b   :  { %12191 = vmatprep.subr.msk.mxu0 %vm84_vm0, %v14014_v26  ;;  %12197 = vmatprep.subr.msk.mxu1 %vm84_vm0, %v14018_v27 }
  0x1c   :  { %12162 = vmatmul.mubr.msk.f32.gmra.mrb[2].mxu0 %vm71_vm1, %v14029_v28  ;;  %12168 = vmatmul.mubr.msk.f32.gmra.mrb[2].mxu1 %vm71_vm1, %v14029_v28 }
  0x1d   :  { %371 = vmatprep.mubr.f32.mxu0 %v16816_v5  ;;  %460 = vmatprep.mubr.f32.mxu1 %v16816_v5 }
  0x1e   :  { %975 = vperm.xlu0 %13532, %v961_v32   ;;  %980 = vperm.xlu1 %13533, %v962_v33  }
  0x20   :  { %12163 = vmatmul.mubr.msk.f32.gmra.mrb[4].mxu0 %vm71_vm1, %v14054_v31  ;;  %12169 = vmatmul.mubr.msk.f32.gmra.mrb[4].mxu1 %vm71_vm1, %v14054_v31 }
  0x21   :  { %377 = vmatprep.mubr.f32.mxu0 %v16816_v5  ;;  %466 = vmatprep.mubr.f32.mxu1 %v16816_v5 }
  0x22   :  { %1038 = vperm.xlu0 %13532, %v1035_v35   ;;  %12046 = vperm.xlu1 %13533, %v12043_v36  }
  0x24   :  { %12164 = vmatmul.mubr.msk.f32.gmra.mrb[6].mxu0 %vm71_vm1, %v14071_v34  ;;  %12170 = vmatmul.mubr.msk.f32.gmra.mrb[6].mxu1 %vm71_vm1, %v14071_v34 }
  0x25   :  { %566 = vmatprep.mubr.f32.mxu0 %v16816_v5  ;;  %655 = vmatprep.mubr.f32.mxu1 %v16816_v5 }
  0x28   :  { %12177 = vmatmul.mubr.msk.f32.vlgmr.msra.gmra.mrb[0].mxu0 %vm71_vm1, %v14085_v37  ;;  %12183 = vmatmul.mubr.msk.f32.vlgmr.msra.gmra.mrb[0].mxu1 %vm71_vm1, %v14085_v37 }
  0x29   :  { %572 = vmatprep.mubr.f32.mxu0 %v16816_v5  ;;  %661 = vmatprep.mubr.f32.mxu1 %v16816_v5 }
  0x2a   :  { %12192 = vmatpush1.msk.msra.mxu0 %vm84_vm0, %v13998_v23  ;;  %12198 = vmatpush1.msk.msra.mxu1 %vm84_vm0, %v14003_v24 }
  0x2b   :  { %12211 = vmatprep.subr.msk.mxu0 %vm84_vm0, %v13877_v3  ;;  %12217 = vmatprep.subr.msk.mxu1 %vm84_vm0, %v13881_v4 }
  0x2c   :  { %12178 = vmatmul.mubr.msk.f32.gmra.mrb[2].mxu0 %vm71_vm1, %v14096_v38  ;;  %12184 = vmatmul.mubr.msk.f32.gmra.mrb[2].mxu1 %vm71_vm1, %v14096_v38 }
  0x2d   :  { %578 = vmatprep.mubr.f32.mxu0 %v16816_v5  ;;  %667 = vmatprep.mubr.f32.mxu1 %v16816_v5 }
  0x30   :  { %12179 = vmatmul.mubr.msk.f32.gmra.mrb[4].mxu0 %vm71_vm1, %v14115_v39  ;;  %12185 = vmatmul.mubr.msk.f32.gmra.mrb[4].mxu1 %vm71_vm1, %v14115_v39 }
  0x31   :  { %584 = vmatprep.mubr.f32.mxu0 %v16816_v5  ;;  %673 = vmatprep.mubr.f32.mxu1 %v16816_v5 }
  0x34   :  { %12180 = vmatmul.mubr.msk.f32.gmra.mrb[6].mxu0 %vm71_vm1, %v14126_v40  ;;  %12186 = vmatmul.mubr.msk.f32.gmra.mrb[6].mxu1 %vm71_vm1, %v14126_v40 }
  0x35   :  { %789 = vmatprep.mubr.f32.mxu0 %v16816_v5  ;;  %878 = vmatprep.mubr.f32.mxu1 %v16816_v5 }
  0x38   :  { %12193 = vmatmul.mubr.msk.f32.vlgmr.msra.gmra.mrb[0].mxu0 %vm71_vm1, %v14137_v41  ;;  %12199 = vmatmul.mubr.msk.f32.vlgmr.msra.gmra.mrb[0].mxu1 %vm71_vm1, %v14137_v41 }
  0x39   :  { %795 = vmatprep.mubr.f32.mxu0 %v16816_v5  ;;  %884 = vmatprep.mubr.f32.mxu1 %v16816_v5 }
  0x3a   :  { %12212 = vmatpush1.msk.msra.mxu0 %vm84_vm0, %v13868_v1  ;;  %12218 = vmatpush1.msk.msra.mxu1 %vm84_vm0, %v13873_v2 }
  0x3b   :  { %12223 = vmatprep.subr.msk.mxu0 %vm84_vm0, %v13906_v9  ;;  %12229 = vmatprep.subr.msk.mxu1 %vm84_vm0, %v13910_v10 }
  0x3c   :  { %12194 = vmatmul.mubr.msk.f32.gmra.mrb[2].mxu0 %vm71_vm1, %v14148_v42  ;;  %12200 = vmatmul.mubr.msk.f32.gmra.mrb[2].mxu1 %vm71_vm1, %v14148_v42 }
  0x3d   :  { %801 = vmatprep.mubr.f32.mxu0 %v16816_v5  ;;  %890 = vmatprep.mubr.f32.mxu1 %v16816_v5 }
  0x40   :  { %12195 = vmatmul.mubr.msk.f32.gmra.mrb[4].mxu0 %vm71_vm1, %v14167_v43  ;;  %12201 = vmatmul.mubr.msk.f32.gmra.mrb[4].mxu1 %vm71_vm1, %v14167_v43 }
  0x41   :  { %807 = vmatprep.mubr.f32.mxu0 %v16816_v5  ;;  %896 = vmatprep.mubr.f32.mxu1 %v16816_v5 }
  0x44   :  { %12196 = vmatmul.mubr.msk.f32.gmra.mrb[6].mxu0 %vm71_vm1, %v14178_v44  ;;  %12202 = vmatmul.mubr.msk.f32.gmra.mrb[6].mxu1 %vm71_vm1, %v14178_v44 }
  0x45   :  { %1157 = vmatprep.mubr.f32.mxu0 %v16816_v5  ;;  %1246 = vmatprep.mubr.f32.mxu1 %v16816_v5 }
  0x48   :  { %12213 = vmatmul.mubr.msk.f32.vlgmr.msra.gmra.mrb[8].mxu0 %vm71_vm1, %v14010_v25  ;;  %12219 = vmatmul.mubr.msk.f32.vlgmr.msra.gmra.mrb[8].mxu1 %vm71_vm1, %v14010_v25 }
  0x49   :  { %1163 = vmatprep.mubr.f32.mxu0 %v16816_v5  ;;  %1252 = vmatprep.mubr.f32.mxu1 %v16816_v5 }
  0x4a   :  { %12224 = vmatpush1.msk.msra.mxu0 %vm84_vm0, %v13893_v7  ;;  %12230 = vmatpush1.msk.msra.mxu1 %vm84_vm0, %v13898_v8 }
  0x4b   :  { %12235 = vmatprep.subr.msk.mxu0 %vm84_vm0, %v14198_v47  ;;  %12241 = vmatprep.subr.msk.mxu1 %vm84_vm0, %v14202_v48 }
  0x4c   :  { %12214 = vmatmul.mubr.msk.f32.gmra.mrb[10].mxu0 %vm71_vm1, %v14029_v28  ;;  %12220 = vmatmul.mubr.msk.f32.gmra.mrb[10].mxu1 %vm71_vm1, %v14029_v28 }
  0x4d   :  { %1169 = vmatprep.mubr.f32.mxu0 %v16816_v5  ;;  %1258 = vmatprep.mubr.f32.mxu1 %v16816_v5 }
  0x50   :  { %12215 = vmatmul.mubr.msk.f32.gmra.mrb[12].mxu0 %vm71_vm1, %v14054_v31  ;;  %12221 = vmatmul.mubr.msk.f32.gmra.mrb[12].mxu1 %vm71_vm1, %v14054_v31 }
  0x51   :  { %1175 = vmatprep.mubr.f32.mxu0 %v16816_v5  ;;  %1264 = vmatprep.mubr.f32.mxu1 %v16816_v5 }
  0x54   :  { %12216 = vmatmul.mubr.msk.f32.gmra.mrb[14].mxu0 %vm71_vm1, %v14071_v34  ;;  %12222 = vmatmul.mubr.msk.f32.gmra.mrb[14].mxu1 %vm71_vm1, %v14071_v34 }
  0x55   :  { %1347 = vmatprep.mubr.f32.mxu0 %v16816_v5  ;;  %1436 = vmatprep.mubr.f32.mxu1 %v16816_v5 }
  0x58   :  { %12225 = vmatmul.mubr.msk.f32.vlgmr.msra.gmra.mrb[8].mxu0 %vm71_vm1, %v14239_v49  ;;  %12231 = vmatmul.mubr.msk.f32.vlgmr.msra.gmra.mrb[8].mxu1 %vm71_vm1, %v14239_v49 }
  0x59   :  { %1353 = vmatprep.mubr.f32.mxu0 %v16816_v5  ;;  %1442 = vmatprep.mubr.f32.mxu1 %v16816_v5 }
  0x5a   :  { %12236 = vmatpush1.msk.msra.mxu0 %vm84_vm0, %v14187_v45  ;;  %12242 = vmatpush1.msk.msra.mxu1 %vm84_vm0, %v14192_v46 }
  0x5b   :  { %12251 = vmatprep.subr.msk.mxu0 %vm84_vm0, %v13943_v14  ;;  %12257 = vmatprep.subr.msk.mxu1 %vm84_vm0, %v13947_v15 }
  0x5c   :  { %12226 = vmatmul.mubr.msk.f32.gmra.mrb[10].mxu0 %vm71_vm1, %v14250_v50  ;;  %12232 = vmatmul.mubr.msk.f32.gmra.mrb[10].mxu1 %vm71_vm1, %v14250_v50 }
  0x5d   :  { %1359 = vmatprep.mubr.f32.mxu0 %v16816_v5  ;;  %1448 = vmatprep.mubr.f32.mxu1 %v16816_v5 }
  0x60   :  { %12227 = vmatmul.mubr.msk.f32.gmra.mrb[12].mxu0 %vm71_vm1, %v14269_v51  ;;  %12233 = vmatmul.mubr.msk.f32.gmra.mrb[12].mxu1 %vm71_vm1, %v14269_v51 }
  0x61   :  { %1365 = vmatprep.mubr.f32.mxu0 %v16816_v5  ;;  %1454 = vmatprep.mubr.f32.mxu1 %v16816_v5 }
  0x64   :  { %12228 = vmatmul.mubr.msk.f32.gmra.mrb[14].mxu0 %vm71_vm1, %v14280_v52  ;;  %12234 = vmatmul.mubr.msk.f32.gmra.mrb[14].mxu1 %vm71_vm1, %v14280_v52 }
  0x65   :  { %1537 = vmatprep.mubr.f32.mxu0 %v16816_v5  ;;  %1626 = vmatprep.mubr.f32.mxu1 %v16816_v5 }
  0x68   :  { %12237 = vmatmul.mubr.msk.f32.vlgmr.msra.gmra.mrb[8].mxu0 %vm71_vm1, %v13888_v6  ;;  %12243 = vmatmul.mubr.msk.f32.vlgmr.msra.gmra.mrb[8].mxu1 %vm71_vm1, %v13888_v6 }
  0x69   :  { %1543 = vmatprep.mubr.f32.mxu0 %v16816_v5  ;;  %1632 = vmatprep.mubr.f32.mxu1 %v16816_v5 }
  0x6a   :  { %12252 = vmatpush1.msk.msra.mxu0 %vm84_vm0, %v13919_v11  ;;  %12258 = vmatpush1.msk.msra.mxu1 %vm84_vm0, %v13924_v12 }
  0x6b   :  { %12263 = vmatprep.subr.msk.mxu0 %vm84_vm0, %v14014_v26  ;;  %12269 = vmatprep.subr.msk.mxu1 %vm84_vm0, %v14018_v27 }
  0x6c   :  { %12238 = vmatmul.mubr.msk.f32.gmra.mrb[10].mxu0 %vm71_vm1, %v13935_v13  ;;  %12244 = vmatmul.mubr.msk.f32.gmra.mrb[10].mxu1 %vm71_vm1, %v13935_v13 }
  0x6d   :  { %1549 = vmatprep.mubr.f32.mxu0 %v16816_v5  ;;  %1638 = vmatprep.mubr.f32.mxu1 %v16816_v5 }
  0x70   :  { %12239 = vmatmul.mubr.msk.f32.gmra.mrb[12].mxu0 %vm71_vm1, %v13962_v16  ;;  %12245 = vmatmul.mubr.msk.f32.gmra.mrb[12].mxu1 %vm71_vm1, %v13962_v16 }
  0x71   :  { %1555 = vmatprep.mubr.f32.mxu0 %v16816_v5  ;;  %1644 = vmatprep.mubr.f32.mxu1 %v16816_v5 }
  0x74   :  { %12240 = vmatmul.mubr.msk.f32.gmra.mrb[14].mxu0 %vm71_vm1, %v13983_v20  ;;  %12246 = vmatmul.mubr.msk.f32.gmra.mrb[14].mxu1 %vm71_vm1, %v13983_v20 }
  0x75   :  { %1748 = vmatprep.mubr.f32.mxu0 %v16816_v5  ;;  %1837 = vmatprep.mubr.f32.mxu1 %v16816_v5 }
  0x78   :  { %12253 = vmatmul.mubr.msk.f32.vlgmr.msra.gmra.mrb[8].mxu0 %vm71_vm1, %v14333_v55  ;;  %12259 = vmatmul.mubr.msk.f32.vlgmr.msra.gmra.mrb[8].mxu1 %vm71_vm1, %v14333_v55 }
  0x79   :  { %1754 = vmatprep.mubr.f32.mxu0 %v16816_v5  ;;  %1843 = vmatprep.mubr.f32.mxu1 %v16816_v5 }
  0x7a   :  { %12264 = vmatpush1.msk.msra.mxu0 %vm84_vm0, %v13998_v23  ;;  %12270 = vmatpush1.msk.msra.mxu1 %vm84_vm0, %v14003_v24 }
  0x7b   :  { %12275 = vmatprep.subr.msk.mxu0 %vm84_vm0, %v14337_v56  ;;  %12281 = vmatprep.subr.msk.mxu1 %vm84_vm0, %v14341_v57 }
  0x7c   :  { %12254 = vmatmul.mubr.msk.f32.gmra.mrb[10].mxu0 %vm71_vm1, %v14352_v58  ;;  %12260 = vmatmul.mubr.msk.f32.gmra.mrb[10].mxu1 %vm71_vm1, %v14352_v58 }
  0x7d   :  { %1760 = vmatprep.mubr.f32.mxu0 %v16816_v5  ;;  %1849 = vmatprep.mubr.f32.mxu1 %v16816_v5 }
  0x80   :  { %12255 = vmatmul.mubr.msk.f32.gmra.mrb[12].mxu0 %vm71_vm1, %v14371_v59  ;;  %12261 = vmatmul.mubr.msk.f32.gmra.mrb[12].mxu1 %vm71_vm1, %v14371_v59 }
  0x81   :  { %1766 = vmatprep.mubr.f32.mxu0 %v16816_v5  ;;  %1855 = vmatprep.mubr.f32.mxu1 %v16816_v5 }
  0x84   :  { %12256 = vmatmul.mubr.msk.f32.gmra.mrb[14].mxu0 %vm71_vm1, %v14382_v60  ;;  %12262 = vmatmul.mubr.msk.f32.gmra.mrb[14].mxu1 %vm71_vm1, %v14382_v60 }
  0x85   :  { %1942 = vmatprep.mubr.f32.mxu0 %v16816_v5  ;;  %2031 = vmatprep.mubr.f32.mxu1 %v16816_v5 }
  0x88   :  { %12265 = vmatmul.mubr.msk.f32.vlgmr.msra.gmra.mrb[8].mxu0 %vm71_vm1, %v14085_v37  ;;  %12271 = vmatmul.mubr.msk.f32.vlgmr.msra.gmra.mrb[8].mxu1 %vm71_vm1, %v14085_v37 }
  0x89   :  { %1948 = vmatprep.mubr.f32.mxu0 %v16816_v5  ;;  %2037 = vmatprep.mubr.f32.mxu1 %v16816_v5 }
  0x8a   :  { %12276 = vmatpush1.msk.msra.mxu0 %vm84_vm0, %v14321_v53  ;;  %12282 = vmatpush1.msk.msra.mxu1 %vm84_vm0, %v14326_v54 }
  0x8c   :  { %12266 = vmatmul.mubr.msk.f32.gmra.mrb[10].mxu0 %vm71_vm1, %v14096_v38  ;;  %12272 = vmatmul.mubr.msk.f32.gmra.mrb[10].mxu1 %vm71_vm1, %v14096_v38 }
  0x8d   :  { %1954 = vmatprep.mubr.f32.mxu0 %v16816_v5  ;;  %2043 = vmatprep.mubr.f32.mxu1 %v16816_v5 }
  0x8e   :  { %v14442_v61 = vpop.permute.xlu0 %925  ;;  %v14444_v62 = vpop.permute.xlu1 %935 }
  0x8f   :  { %16912 = vst [vmem:[#allocation10_spill] sm:$0xff] %v14442_v61  ;;  %16913 = vst [vmem:[#allocation11_spill] sm:$0xff] %v14444_v62 }
  0x90   :  { %12267 = vmatmul.mubr.msk.f32.gmra.mrb[12].mxu0 %vm71_vm1, %v14115_v39  ;;  %12273 = vmatmul.mubr.msk.f32.gmra.mrb[12].mxu1 %vm71_vm1, %v14115_v39 }
  0x91   :  { %1960 = vmatprep.mubr.f32.mxu0 %v16816_v5  ;;  %2049 = vmatprep.mubr.f32.mxu1 %v16816_v5 }
  0x92   :  { %v14446_v63 = vpop.permute.xlu0 %930  ;;  %v14448_v0 = vpop.permute.xlu1 %965 }
  0x93   :  { %16914 = vst [vmem:[#allocation12_spill] sm:$0xff] %v14446_v63  ;;  %16915 = vst [vmem:[#allocation13_spill] sm:$0xff] %v14448_v0 }
  0x94   :  { %12268 = vmatmul.mubr.msk.f32.gmra.mrb[14].mxu0 %vm71_vm1, %v14126_v40  ;;  %12274 = vmatmul.mubr.msk.f32.gmra.mrb[14].mxu1 %vm71_vm1, %v14126_v40 }
  0x95   :  { %2148 = vmatprep.mubr.f32.mxu0 %v16816_v5  ;;  %2237 = vmatprep.mubr.f32.mxu1 %v16816_v5 }
  0x96   :  { %v14450_v1 = vpop.permute.xlu0 %970  ;;  %v14454_v13 = vpop.permute.xlu1 %940 }
  0x97   :  { %16916 = vst [vmem:[#allocation14_spill] sm:$0xff] %v14450_v1  ;;  %16917 = vst [vmem:[#allocation15_spill] sm:$0xff] %v14454_v13 }
  0x98   :  { %12277 = vmatmul.mubr.msk.f32.vlgmr.msra.gmra.mrb[8].mxu0 %vm71_vm1, %v14137_v41  ;;  %12283 = vmatmul.mubr.msk.f32.vlgmr.msra.gmra.mrb[8].mxu1 %vm71_vm1, %v14137_v41 }
  0x99   :  { %2154 = vmatprep.mubr.f32.mxu0 %v16816_v5  ;;  %2243 = vmatprep.mubr.f32.mxu1 %v16816_v5 }
  0x9c   :  { %12278 = vmatmul.mubr.msk.f32.gmra.mrb[10].mxu0 %vm71_vm1, %v14148_v42  ;;  %12284 = vmatmul.mubr.msk.f32.gmra.mrb[10].mxu1 %vm71_vm1, %v14148_v42 }
  0x9d   :  { %2160 = vmatprep.mubr.f32.mxu0 %v16816_v5  ;;  %2249 = vmatprep.mubr.f32.mxu1 %v16816_v5  ;;  %v14462_v30 = vpop.permute.xlu0 %975 }
  0x9e   :  { %16918 = vst [vmem:[#allocation16_spill] sm:$0xff] %v14462_v30 }
  0xa0   :  { %12279 = vmatmul.mubr.msk.f32.gmra.mrb[12].mxu0 %vm71_vm1, %v14167_v43  ;;  %12285 = vmatmul.mubr.msk.f32.gmra.mrb[12].mxu1 %vm71_vm1, %v14167_v43 }
  0xa1   :  { %2166 = vmatprep.mubr.f32.mxu0 %v16816_v5  ;;  %2255 = vmatprep.mubr.f32.mxu1 %v16816_v5 }
  0xa4   :  { %12280 = vmatmul.mubr.msk.f32.gmra.mrb[14].mxu0 %vm71_vm1, %v14178_v44  ;;  %12286 = vmatmul.mubr.msk.f32.gmra.mrb[14].mxu1 %vm71_vm1, %v14178_v44 }
  0xa5   :  { %2469 = vmatprep.mubr.f32.mxu0 %v16816_v5  ;;  %2540 = vmatprep.mubr.f32.mxu1 %v16816_v5 }
 0x10b   :  { %v791_v2 = vpop.f32.mrb[0].mxu0  ;;  %v880_v6 = vpop.f32.mrb[0].mxu1 }
 0x10c   :  { %v793_v7 = vpop.f32.mrb[1].mxu0  ;;  %v882_v8 = vpop.f32.mrb[1].mxu1  ;;  %v943_v11 = vadd.f32 %v14442_v61, %v791_v2  ;;  %v945_v12 = vadd.f32 %v14442_v61, %v880_v6 }
 0x10d   :  { %v944_v16 = vadd.f32 %v14442_v61, %v793_v7  ;;  %v946_v17 = vadd.f32 %v14442_v61, %v882_v8 }
 0x10e   :  { %v983_v32 = vmul.f32 %v14448_v0, %v943_v11  ;;  %v985_v35 = vmul.f32 %v14448_v0, %v945_v12 }
 0x10f   :  { %v797_v18 = vpop.f32.mrb[2].mxu0  ;;  %v886_v19 = vpop.f32.mrb[2].mxu1  ;;  %v984_v41 = vmul.f32 %v14448_v0, %v944_v16  ;;  %v986_v43 = vmul.f32 %v14448_v0, %v946_v17 }
 0x110   :  { %v947_v20 = vadd.f32 %v14446_v63, %v797_v18  ;;  %v949_v21 = vadd.f32 %v14446_v63, %v886_v19  ;;  %v799_v22 = vpop.f32.mrb[3].mxu0  ;;  %v888_v23 = vpop.f32.mrb[3].mxu1 }
 0x111   :  { %v948_v24 = vadd.f32 %v14446_v63, %v799_v22  ;;  %v950_v29 = vadd.f32 %v14446_v63, %v888_v23 }
 0x112   :  { %v987_v33 = vmul.f32 %v14450_v1, %v947_v20  ;;  %v989_v36 = vmul.f32 %v14450_v1, %v949_v21  ;;  %v14476_v21 = vpop.permute.xlu1 %980 }
 0x113   :  { %v803_v37 = vpop.f32.mrb[4].mxu0  ;;  %v892_v38 = vpop.f32.mrb[4].mxu1  ;;  %v988_v42 = vmul.f32 %v14450_v1, %v948_v24  ;;  %v990_v44 = vmul.f32 %v14450_v1, %v950_v29 }
 0x114   :  { %v951_v2 = vadd.f32 %v14444_v62, %v803_v37  ;;  %v953_v6 = vadd.f32 %v14444_v62, %v892_v38  ;;  %v805_v7 = vpop.f32.mrb[5].mxu0  ;;  %v894_v8 = vpop.f32.mrb[5].mxu1  ;;  %v999_v11 = vadd.f32 %v987_v33, %v983_v32  ;;  %v1017_v12 = vadd.f32 %v989_v36, %v985_v35 }
 0x115   :  { %v952_v18 = vadd.f32 %v14444_v62, %v805_v7  ;;  %v954_v19 = vadd.f32 %v14444_v62, %v894_v8  ;;  %v1008_v20 = vadd.f32 %v988_v42, %v984_v41  ;;  %v1026_v16 = vadd.f32 %v990_v44, %v986_v43 }
 0x116   :  { %v991_v17 = vmul.f32 %v14462_v30, %v951_v2  ;;  %v993_v22 = vmul.f32 %v14462_v30, %v953_v6 }
 0x117   :  { %v809_v23 = vpop.f32.mrb[6].mxu0  ;;  %v898_v24 = vpop.f32.mrb[6].mxu1  ;;  %v992_v29 = vmul.f32 %v14462_v30, %v952_v18  ;;  %v994_v37 = vmul.f32 %v14462_v30, %v954_v19 }
 0x118   :  { %v955_v32 = vadd.f32 %v14454_v13, %v809_v23  ;;  %v957_v33 = vadd.f32 %v14454_v13, %v898_v24  ;;  %v811_v35 = vpop.f32.mrb[7].mxu0  ;;  %v900_v36 = vpop.f32.mrb[7].mxu1  ;;  %v1000_v38 = vadd.f32 %v999_v11, %v991_v17  ;;  %v1018_v41 = vadd.f32 %v1017_v12, %v993_v22 }
 0x119   :  { %v956_v42 = vadd.f32 %v14454_v13, %v811_v35  ;;  %v958_v43 = vadd.f32 %v14454_v13, %v900_v36  ;;  %v1009_v44 = vadd.f32 %v1008_v20, %v992_v29  ;;  %v1027_v2 = vadd.f32 %v1026_v16, %v994_v37 }
 0x11a   :  { %v995_v6 = vmul.f32 %v14476_v21, %v955_v32  ;;  %v997_v7 = vmul.f32 %v14476_v21, %v957_v33  ;;  %v1041_v12 = vlaneseq  ;;  %v1039_v33 = vpop.permute.xlu0 %1038 }
 0x11b   :  { %v996_v8 = vmul.f32 %v14476_v21, %v956_v42  ;;  %v998_v18 = vmul.f32 %v14476_v21, %v958_v43 }
 0x11c   :  { %v1001_v19 = vadd.f32 %v1000_v38, %v995_v6  ;;  %v1019_v23 = vadd.f32 %v1018_v41, %v997_v7  ;;  %v1042_v20 = vshrl.u32 %v1041_v12, 7 }
 0x11d   :  { %v1010_v24 = vadd.f32 %v1009_v44, %v996_v8  ;;  %v1028_v5 = vadd.f32 %v1027_v2, %v998_v18 }
 0x11e   :  { %v1002_v11 = vrot.slane %v1001_v19, 4  ;;  %v1020_v22 = vrot.slane %v1019_v23, 4  ;;  %v1043_v15 = vsub.s32 0, %v1042_v20 }
 0x11f   :  { %v1011_v17 = vrot.slane %v1010_v24, 4  ;;  %v1029_v36 = vrot.slane %v1028_v5, 4 }
 0x120   :  { %v1003_v35 = vadd.f32 %v1002_v11, %v1001_v19  ;;  %v1021_v29 = vadd.f32 %v1020_v22, %v1019_v23  ;;  %v14492_v18 = vrot.slane %v1039_v33, %v1043_v15 }
 0x121   :  { %v1012_v16 = vadd.f32 %v1011_v17, %v1010_v24  ;;  %v1030_v32 = vadd.f32 %v1029_v36, %v1028_v5 }
 0x122   :  { %v1004_v37 = vrot.slane %v1003_v35, 2  ;;  %v1022_v44 = vrot.slane %v1021_v29, 2 }
 0x123   :  { %v1013_v41 = vrot.slane %v1012_v16, 2  ;;  %v1031_v6 = vrot.slane %v1030_v32, 2 }
 0x124   :  { %v1005_v2 = vadd.f32 %v1004_v37, %v1003_v35  ;;  %v1023_v36 = vadd.f32 %v1022_v44, %v1021_v29 }
 0x125   :  { %v1014_v35 = vadd.f32 %v1013_v41, %v1012_v16  ;;  %v1032_v37 = vadd.f32 %v1031_v6, %v1030_v32 }
 0x126   :  { %v1006_v15 = vrot.slane %v1005_v2, 1  ;;  %v1024_v9 = vrot.slane %v1023_v36, 1 }
 0x127   :  { %v1015_v10 = vrot.slane %v1014_v35, 1 }
 0x16b   :  { %v2150_v42 = vpop.f32.mrb[8].mxu0  ;;  %v2239_v14 = vpop.f32.mrb[8].mxu1 }
 0x16c   :  { %v2152_v43 = vpop.f32.mrb[9].mxu0  ;;  %v2241_v38 = vpop.f32.mrb[9].mxu1  ;;  %v2278_v7 = vadd.f32 %v2150_v42, %v14442_v61  ;;  %v2280_v8 = vadd.f32 %v2239_v14, %v14442_v61 }
 0x16d   :  { %v2279_v19 = vadd.f32 %v2152_v43, %v14442_v61  ;;  %v2281_v5 = vadd.f32 %v2241_v38, %v14442_v61 }
 0x16e   :  { %v2294_v33 = vmul.f32 %v2278_v7, %v14448_v0  ;;  %v2296_v42 = vmul.f32 %v2280_v8, %v14448_v0 }
 0x16f   :  { %v2156_v23 = vpop.f32.mrb[10].mxu0  ;;  %v2245_v24 = vpop.f32.mrb[10].mxu1 }
 0x170   :  { %v2282_v11 = vadd.f32 %v2156_v23, %v14446_v63  ;;  %v2284_v12 = vadd.f32 %v2245_v24, %v14446_v63  ;;  %v2158_v17 = vpop.f32.mrb[11].mxu0  ;;  %v2247_v22 = vpop.f32.mrb[11].mxu1  ;;  %v2295_v23 = vmul.f32 %v2279_v19, %v14448_v0  ;;  %v2297_v24 = vmul.f32 %v2281_v5, %v14448_v0 }
 0x171   :  { %v2283_v20 = vadd.f32 %v2158_v17, %v14446_v63  ;;  %v2285_v14 = vadd.f32 %v2247_v22, %v14446_v63 }
 0x172   :  { %v2298_v43 = vmul.f32 %v2282_v11, %v14450_v1  ;;  %v2300_v38 = vmul.f32 %v2284_v12, %v14450_v1 }
 0x173   :  { %v2299_v16 = vmul.f32 %v2283_v20, %v14450_v1  ;;  %v2301_v29 = vmul.f32 %v2285_v14, %v14450_v1  ;;  %v2162_v41 = vpop.f32.mrb[12].mxu0  ;;  %v2251_v44 = vpop.f32.mrb[12].mxu1 }
 0x174   :  { %v2310_v17 = vadd.f32 %v2298_v43, %v2294_v33  ;;  %v2328_v32 = vadd.f32 %v2300_v38, %v2296_v42  ;;  %v2286_v6 = vadd.f32 %v2162_v41, %v14444_v62  ;;  %v2288_v7 = vadd.f32 %v2251_v44, %v14444_v62  ;;  %v2164_v8 = vpop.f32.mrb[13].mxu0  ;;  %v2253_v11 = vpop.f32.mrb[13].mxu1 }
 0x175   :  { %v2319_v22 = vadd.f32 %v2299_v16, %v2295_v23  ;;  %v2337_v12 = vadd.f32 %v2301_v29, %v2297_v24  ;;  %v2287_v19 = vadd.f32 %v2164_v8, %v14444_v62  ;;  %v2289_v5 = vadd.f32 %v2253_v11, %v14444_v62 }
 0x176   :  { %v2302_v20 = vmul.f32 %v2286_v6, %v14462_v30  ;;  %v2304_v14 = vmul.f32 %v2288_v7, %v14462_v30  ;;  %v1007_v41 = vadd.f32 %v1006_v15, %v1005_v2  ;;  %v1033_v44 = vrot.slane %v1032_v37, 1 }
 0x177   :  { %v2303_v33 = vmul.f32 %v2287_v19, %v14462_v30  ;;  %v2305_v42 = vmul.f32 %v2289_v5, %v14462_v30  ;;  %v2168_v43 = vpop.f32.mrb[14].mxu0  ;;  %v2257_v38 = vpop.f32.mrb[14].mxu1  ;;  %v1016_v2 = vadd.f32 %v1015_v10, %v1014_v35 }
 0x178   :  { %v2311_v23 = vadd.f32 %v2310_v17, %v2302_v20  ;;  %v2329_v24 = vadd.f32 %v2328_v32, %v2304_v14  ;;  %v2290_v16 = vadd.f32 %v2168_v43, %v14454_v13  ;;  %v2292_v29 = vadd.f32 %v2257_v38, %v14454_v13  ;;  %v2170_v8 = vpop.f32.mrb[15].mxu0  ;;  %v2259_v6 = vpop.f32.mrb[15].mxu1 }
 0x179   :  { %v2320_v11 = vadd.f32 %v2319_v22, %v2303_v33  ;;  %v2338_v7 = vadd.f32 %v2337_v12, %v2305_v42  ;;  %v2291_v62 = vadd.f32 %v2170_v8, %v14454_v13  ;;  %v2293_v19 = vadd.f32 %v2259_v6, %v14454_v13 }
 0x17a   :  { %v2306_v5 = vmul.f32 %v2290_v16, %v14476_v21  ;;  %v2308_v30 = vmul.f32 %v2292_v29, %v14476_v21  ;;  %v1025_v32 = vadd.f32 %v1024_v9, %v1023_v36  ;;  %v1034_v43 = vadd.f32 %v1033_v44, %v1032_v37 }
 0x17b   :  { %v2307_v15 = vmul.f32 %v2291_v62, %v14476_v21  ;;  %v2309_v17 = vmul.f32 %v2293_v19, %v14476_v21  ;;  %v1045_v12 = vadd.f32 %v14492_v18, %v1007_v41  ;;  %v1046_v8 = vadd.f32 %v14492_v18, %v1016_v2 }
 0x17c   :  { %v2312_v20 = vadd.f32 %v2311_v23, %v2306_v5  ;;  %v2330_v14 = vadd.f32 %v2329_v24, %v2308_v30  ;;  %v1047_v10 = vadd.f32 %v14492_v18, %v1025_v32  ;;  %v1048_v29 = vadd.f32 %v14492_v18, %v1034_v43 }
 0x17d   :  { %v2321_v38 = vadd.f32 %v2320_v11, %v2307_v15  ;;  %v2339_v22 = vadd.f32 %v2338_v7, %v2309_v17  ;;  %v12203_v30 = vmul.f32 -1.442695, %v1045_v12  ;;  %v12204_v23 = vmul.f32 -1.442695, %v1046_v8 }
 0x17e   :  { %v2313_v33 = vrot.slane %v2312_v20, 4  ;;  %v2331_v42 = vrot.slane %v2330_v14, 4  ;;  %v12205_v11 = vmul.f32 -1.442695, %v1047_v10  ;;  %v12206_v5 = vmul.f32 -1.442695, %v1048_v29 }
 0x17f   :  { %v2322_v16 = vrot.slane %v2321_v38, 4  ;;  %v2340_v6 = vrot.slane %v2339_v22, 4  ;;  %13552 = vpow2.f32 %v12203_v30 }
 0x180   :  { %v2314_v35 = vadd.f32 %v2313_v33, %v2312_v20  ;;  %v2332_v62 = vadd.f32 %v2331_v42, %v2330_v14  ;;  %13554 = vpow2.f32 %v12204_v23 }
 0x181   :  { %v2323_v9 = vadd.f32 %v2322_v16, %v2321_v38  ;;  %v2341_v36 = vadd.f32 %v2340_v6, %v2339_v22  ;;  %13556 = vpow2.f32 %v12205_v11 }
 0x182   :  { %v2315_v37 = vrot.slane %v2314_v35, 2  ;;  %v2333_v44 = vrot.slane %v2332_v62, 2  ;;  %13558 = vpow2.f32 %v12206_v5 }
 0x183   :  { %v2324_v24 = vrot.slane %v2323_v9, 2  ;;  %v2342_v41 = vrot.slane %v2341_v36, 2 }
 0x184   :  { %v2316_v7 = vadd.f32 %v2315_v37, %v2314_v35  ;;  %v2334_v19 = vadd.f32 %v2333_v44, %v2332_v62 }
 0x185   :  { %v2325_v2 = vadd.f32 %v2324_v24, %v2323_v9  ;;  %v2343_v15 = vadd.f32 %v2342_v41, %v2341_v36 }
 0x186   :  { %v2317_v17 = vrot.slane %v2316_v7, 1  ;;  %v2335_v32 = vrot.slane %v2334_v19, 1 }
 0x187   :  { %v2326_v20 = vrot.slane %v2325_v2, 1  ;;  %v2344_v14 = vrot.slane %v2343_v15, 1 }
 0x188   :  { %v2318_v43 = vadd.f32 %v2317_v17, %v2316_v7  ;;  %v2336_v38 = vadd.f32 %v2335_v32, %v2334_v19 }
 0x189   :  { %v2327_v22 = vadd.f32 %v2326_v20, %v2325_v2  ;;  %v2345_v12 = vadd.f32 %v2344_v14, %v2343_v15  ;;  %v13553_v29 = vpop.eup %13552 }
 0x18a   :  { %v2346_v33 = vadd.f32 %v2318_v43, %v14492_v18  ;;  %v2348_v42 = vadd.f32 %v2336_v38, %v14492_v18  ;;  %v13555_v9 = vpop.eup %13554  ;;  %v1061_v37 = vadd.f32 1.0, %v13553_v29 }
 0x18b   :  { %v2347_v8 = vadd.f32 %v2327_v22, %v14492_v18  ;;  %v2349_v16 = vadd.f32 %v2345_v12, %v14492_v18  ;;  %v13557_v36 = vpop.eup %13556  ;;  %v1062_v44 = vadd.f32 1.0, %v13555_v9 }
 0x18c   :  { %v12287_v6 = vmul.f32 -1.442695, %v2346_v33  ;;  %v12289_v10 = vmul.f32 -1.442695, %v2348_v42  ;;  %v13559_v30 = vpop.eup %13558  ;;  %v1063_v23 = vadd.f32 1.0, %v13557_v36 }
 0x18d   :  { %v12288_v35 = vmul.f32 -1.442695, %v2347_v8  ;;  %v12290_v62 = vmul.f32 -1.442695, %v2349_v16  ;;  %v1064_v24 = vadd.f32 1.0, %v13559_v30 }
 0x18e   :  { %13560 = vpow2.f32 %v12287_v6 }
 0x18f   :  { %13562 = vpow2.f32 %v12289_v10 }
 0x190   :  { %13564 = vpow2.f32 %v12288_v35 }
 0x191   :  { %13566 = vpow2.f32 %v12290_v62 }
 0x192   :  { %13568 = vrcp.f32 %v1061_v37 }
 0x193   :  { %13570 = vrcp.f32 %v1062_v44  ;;  %v14559_v44 = vld [vmem:[%s16807_s0 + $0x10] sm:$0xff] }
 0x194   :  { %13572 = vrcp.f32 %v1063_v23 }
 0x195   :  { %13574 = vrcp.f32 %v1064_v24  ;;  %v14565_v24 = vld [vmem:[%s16807_s0 + $0x18] sm:$0xff] }
 0x198   :  { %v13561_v41 = vpop.eup %13560 }
 0x199   :  { %v13563_v11 = vpop.eup %13562  ;;  %v2362_v7 = vadd.f32 1.0, %v13561_v41 }
 0x19a   :  { %v13565_v19 = vpop.eup %13564  ;;  %v2364_v5 = vadd.f32 1.0, %v13563_v11  ;;  %v14571_v11 = vld [vmem:[%s16807_s0] sm:$0xff] }
 0x19b   :  { %v13567_v2 = vpop.eup %13566  ;;  %13576 = vrcp.f32 %v2362_v7  ;;  %v2363_v15 = vadd.f32 1.0, %v13565_v19 }
 0x19c   :  { %13578 = vrcp.f32 %v2364_v5  ;;  %v2365_v17 = vadd.f32 1.0, %v13567_v2  ;;  %v14532_v32 = vpop.eup %13568  ;;  %v14577_v5 = vld [vmem:[%s16807_s0 + $0x8] sm:$0xff] }
 0x19d   :  { %13580 = vrcp.f32 %v2363_v15  ;;  %v14534_v20 = vpop.eup %13570  ;;  %v1073_v22 = vadd.f32 1.0, %v14532_v32 }
 0x19e   :  { %13582 = vrcp.f32 %v2365_v17  ;;  %v14536_v14 = vpop.eup %13572  ;;  %v1074_v12 = vadd.f32 1.0, %v14534_v20  ;;  %v12291_v17 = vld [vmem:[%s16812_s5 + $0x4] sm:$0xf] }
 0x19f   :  { %v14538_v43 = vpop.eup %13574  ;;  %v1075_v8 = vadd.f32 1.0, %v14536_v14 }
 0x1a0   :  { %v1076_v16 = vadd.f32 1.0, %v14538_v43  ;;  %v1081_v9 = vcombine.low %v1073_v22, %v1074_v12 }
 0x1a2   :  { %v1082_v30 = vcombine.low %v1075_v8, %v1076_v16  ;;  %v1085_v7 = vmul.f32 %v14571_v11, %v1081_v9  ;;  %v1087_v8 = vld [vmem:[%s16812_s5] sm:$0xf] }
 0x1a4   :  { %v1086_v2 = vmul.f32 %v14577_v5, %v1082_v30  ;;  %v2549_v22 = vcombine.high %v1085_v7, %v1085_v7 }
 0x1a5   :  { %v14540_v38 = vpop.eup %13576 }
 0x1a6   :  { %v14544_v33 = vpop.eup %13578  ;;  %v2374_v42 = vadd.f32 1.0, %v14540_v38  ;;  %v2550_v12 = vcombine.high %v1086_v2, %v1086_v2 }
 0x1a7   :  { %v14549_v6 = vpop.eup %13580  ;;  %v2376_v10 = vadd.f32 1.0, %v14544_v33 }
 0x1a8   :  { %v14552_v35 = vpop.eup %13582  ;;  %v2375_v62 = vadd.f32 1.0, %v14549_v6 }
 0x1a9   :  { %v2377_v29 = vadd.f32 1.0, %v14552_v35 }
 0x1aa   :  { %v2382_v36 = vcombine.low %v2374_v42, %v2375_v62  ;;  %v16919_v42 = vmov 0.0  }
 0x1ab   :  { %v2383_v37 = vcombine.low %v2376_v10, %v2377_v29 }
 0x1ac   :  { %v2386_v23 = vmul.f32 %v14559_v44, %v2382_v36 }
 0x1ad   :  { %v2387_v41 = vmul.f32 %v14565_v24, %v2383_v37 }
 0x1ae   :  { %v2392_v19 = vcombine.high %v2386_v23, %v2386_v23 }
 0x1af   :  { %v2393_v15 = vcombine.high %v2387_v41, %v2387_v41 }
 0x1b0   :  { %12292 = vmatprep.subr.msk.mxu0 %vm84_vm0, %v2392_v19 }
 0x1b1   :  { %12295 = vmatprep.subr.msk.mxu1 %vm84_vm0, %v2393_v15  ;;  %12293 = vmatpush1.msk.msra.mxu0 %vm84_vm0, %v2386_v23  ;;  %v16920_v15 = vld [vmem:[#allocation11_spill] sm:$0xff] }
 0x1b2   :  { %12296 = vmatpush1.msk.msra.mxu1 %vm84_vm0, %v2387_v41  ;;  %12294 = vmatmul.mubr.msk.f32.vlgmr.msra.gmra.mrb[16].mxu0 %vm71_vm1, %v12291_v17 }
 0x1b3   :  { %12297 = vmatmul.mubr.msk.f32.vlgmr.msra.gmra.mrb[16].mxu1 %vm71_vm1, %v12291_v17  ;;  %12298 = vmatprep.subr.msk.mxu0 %vm84_vm0, %v2549_v22 }
 0x1b4   :  { %12301 = vmatprep.subr.msk.mxu1 %vm84_vm0, %v2550_v12  ;;  %12299 = vmatpush1.msk.msra.mxu0 %vm84_vm0, %v1085_v7 }
 0x1b5   :  { %12302 = vmatpush1.msk.msra.mxu1 %vm84_vm0, %v1086_v2  ;;  %2626 = vmatprep.mubr.f32.mxu0 %v16919_v42 }
 0x1b6   :  { %2697 = vmatprep.mubr.f32.mxu1 %v16919_v42  ;;  %12304 = vmatprep.subr.msk.mxu0 %vm84_vm0, %v14198_v47 }
 0x1b7   :  { %12310 = vmatprep.subr.msk.mxu1 %vm84_vm0, %v14202_v48 }
 0x1ba   :  { %12300 = vmatmul.mubr.msk.f32.vlgmr.msra.gmra.mrb[16].mxu0 %vm71_vm1, %v1087_v8 }
 0x1bb   :  { %12303 = vmatmul.mubr.msk.f32.vlgmr.msra.gmra.mrb[16].mxu1 %vm71_vm1, %v1087_v8  ;;  %12305 = vmatpush1.msk.msra.mxu0 %vm84_vm0, %v14187_v45  ;;  %v14743_v45 = vld [vmem:[%s16808_s1 + $0xf0] sm:$0xff] }
 0x1bc   :  { %2768 = vmatprep.mubr.f32.mxu0 %v16919_v42  ;;  %12311 = vmatpush1.msk.msra.mxu1 %vm84_vm0, %v14192_v46 }
 0x1bd   :  { %2857 = vmatprep.mubr.f32.mxu1 %v16919_v42  ;;  %12316 = vmatprep.subr.msk.mxu0 %vm84_vm0, %v13877_v3 }
 0x1be   :  { %12306 = vmatmul.mubr.msk.f32.vlgmr.msra.gmra.mrb[18].mxu0 %vm71_vm1, %v14010_v25  ;;  %12322 = vmatprep.subr.msk.mxu1 %vm84_vm0, %v13881_v4 }
 0x1bf   :  { %12312 = vmatmul.mubr.msk.f32.vlgmr.msra.gmra.mrb[18].mxu1 %vm71_vm1, %v14010_v25  ;;  %2774 = vmatprep.mubr.f32.mxu0 %v16919_v42  ;;  %v14655_v25 = vld [vmem:[%s16807_s0 + $0x40] sm:$0xff] }
 0x1c0   :  { %2863 = vmatprep.mubr.f32.mxu1 %v16919_v42  ;;  %12317 = vmatpush1.msk.msra.mxu0 %vm84_vm0, %v14559_v44 }
 0x1c1   :  { %12323 = vmatpush1.msk.msra.mxu1 %vm84_vm0, %v14565_v24  ;;  %12328 = vmatprep.subr.msk.mxu0 %vm84_vm0, %v14014_v26 }
 0x1c2   :  { %12307 = vmatmul.mubr.msk.f32.gmra.mrb[20].mxu0 %vm71_vm1, %v14029_v28  ;;  %12334 = vmatprep.subr.msk.mxu1 %vm84_vm0, %v14018_v27 }
 0x1c3   :  { %12313 = vmatmul.mubr.msk.f32.gmra.mrb[20].mxu1 %vm71_vm1, %v14029_v28  ;;  %2780 = vmatprep.mubr.f32.mxu0 %v16919_v42  ;;  %v14662_v28 = vld [vmem:[%s16807_s0 + $0x48] sm:$0xff] }
 0x1c4   :  { %2869 = vmatprep.mubr.f32.mxu1 %v16919_v42 }
 0x1c6   :  { %12308 = vmatmul.mubr.msk.f32.gmra.mrb[22].mxu0 %vm71_vm1, %v14054_v31 }
 0x1c7   :  { %12314 = vmatmul.mubr.msk.f32.gmra.mrb[22].mxu1 %vm71_vm1, %v14054_v31  ;;  %2786 = vmatprep.mubr.f32.mxu0 %v16919_v42  ;;  %v14719_v31 = vld [vmem:[%s16808_s1 + $0xe0] sm:$0xff] }
 0x1c8   :  { %2875 = vmatprep.mubr.f32.mxu1 %v16919_v42 }
 0x1ca   :  { %12309 = vmatmul.mubr.msk.f32.gmra.mrb[24].mxu0 %vm71_vm1, %v14071_v34 }
 0x1cb   :  { %12315 = vmatmul.mubr.msk.f32.gmra.mrb[24].mxu1 %vm71_vm1, %v14071_v34  ;;  %2946 = vmatprep.mubr.f32.mxu0 %v16919_v42  ;;  %v14730_v34 = vld [vmem:[%s16808_s1 + $0xe8] sm:$0xff] }
 0x1cc   :  { %3035 = vmatprep.mubr.f32.mxu1 %v16919_v42 }
 0x1ce   :  { %12318 = vmatmul.mubr.msk.f32.vlgmr.msra.gmra.mrb[18].mxu0 %vm71_vm1, %v14239_v49 }
 0x1cf   :  { %12324 = vmatmul.mubr.msk.f32.vlgmr.msra.gmra.mrb[18].mxu1 %vm71_vm1, %v14239_v49  ;;  %2952 = vmatprep.mubr.f32.mxu0 %v16919_v42 }
 0x1d0   :  { %3041 = vmatprep.mubr.f32.mxu1 %v16919_v42  ;;  %12329 = vmatpush1.msk.msra.mxu0 %vm84_vm0, %v14655_v25 }
 0x1d1   :  { %12335 = vmatpush1.msk.msra.mxu1 %vm84_vm0, %v14662_v28  ;;  %12340 = vmatprep.subr.msk.mxu0 %vm84_vm0, %v14337_v56 }
 0x1d2   :  { %12319 = vmatmul.mubr.msk.f32.gmra.mrb[20].mxu0 %vm71_vm1, %v14250_v50  ;;  %12346 = vmatprep.subr.msk.mxu1 %vm84_vm0, %v14341_v57 }
 0x1d3   :  { %12325 = vmatmul.mubr.msk.f32.gmra.mrb[20].mxu1 %vm71_vm1, %v14250_v50  ;;  %2958 = vmatprep.mubr.f32.mxu0 %v16919_v42 }
 0x1d4   :  { %3047 = vmatprep.mubr.f32.mxu1 %v16919_v42 }
 0x1d6   :  { %12320 = vmatmul.mubr.msk.f32.gmra.mrb[22].mxu0 %vm71_vm1, %v14269_v51 }
 0x1d7   :  { %12326 = vmatmul.mubr.msk.f32.gmra.mrb[22].mxu1 %vm71_vm1, %v14269_v51  ;;  %2964 = vmatprep.mubr.f32.mxu0 %v16919_v42 }
 0x1d8   :  { %3053 = vmatprep.mubr.f32.mxu1 %v16919_v42 }
 0x1da   :  { %12321 = vmatmul.mubr.msk.f32.gmra.mrb[24].mxu0 %vm71_vm1, %v14280_v52 }
 0x1db   :  { %12327 = vmatmul.mubr.msk.f32.gmra.mrb[24].mxu1 %vm71_vm1, %v14280_v52  ;;  %3124 = vmatprep.mubr.f32.mxu0 %v16919_v42 }
 0x1dc   :  { %3213 = vmatprep.mubr.f32.mxu1 %v16919_v42 }
 0x1de   :  { %12330 = vmatmul.mubr.msk.f32.vlgmr.msra.gmra.mrb[18].mxu0 %vm71_vm1, %v14333_v55 }
 0x1df   :  { %12336 = vmatmul.mubr.msk.f32.vlgmr.msra.gmra.mrb[18].mxu1 %vm71_vm1, %v14333_v55  ;;  %3130 = vmatprep.mubr.f32.mxu0 %v16919_v42 }
 0x1e0   :  { %3219 = vmatprep.mubr.f32.mxu1 %v16919_v42  ;;  %12341 = vmatpush1.msk.msra.mxu0 %vm84_vm0, %v14321_v53 }
 0x1e1   :  { %12347 = vmatpush1.msk.msra.mxu1 %vm84_vm0, %v14326_v54 }
 0x1e2   :  { %12331 = vmatmul.mubr.msk.f32.gmra.mrb[20].mxu0 %vm71_vm1, %v14352_v58 }
 0x1e3   :  { %12337 = vmatmul.mubr.msk.f32.gmra.mrb[20].mxu1 %vm71_vm1, %v14352_v58  ;;  %3136 = vmatprep.mubr.f32.mxu0 %v16919_v42 }
 0x1e4   :  { %3225 = vmatprep.mubr.f32.mxu1 %v16919_v42 }
 0x1e6   :  { %12332 = vmatmul.mubr.msk.f32.gmra.mrb[22].mxu0 %vm71_vm1, %v14371_v59 }
 0x1e7   :  { %12338 = vmatmul.mubr.msk.f32.gmra.mrb[22].mxu1 %vm71_vm1, %v14371_v59  ;;  %3142 = vmatprep.mubr.f32.mxu0 %v16919_v42 }
 0x1e8   :  { %3231 = vmatprep.mubr.f32.mxu1 %v16919_v42 }
 0x1ea   :  { %12333 = vmatmul.mubr.msk.f32.gmra.mrb[24].mxu0 %vm71_vm1, %v14382_v60 }
 0x1eb   :  { %12339 = vmatmul.mubr.msk.f32.gmra.mrb[24].mxu1 %vm71_vm1, %v14382_v60  ;;  %3318 = vmatprep.mubr.f32.mxu0 %v16919_v42 }
 0x1ec   :  { %3407 = vmatprep.mubr.f32.mxu1 %v16919_v42 }
 0x1ee   :  { %12342 = vmatmul.mubr.msk.f32.vlgmr.msra.gmra.mrb[18].mxu0 %vm71_vm1, %v14719_v31 }
 0x1ef   :  { %12348 = vmatmul.mubr.msk.f32.vlgmr.msra.gmra.mrb[18].mxu1 %vm71_vm1, %v14719_v31  ;;  %3324 = vmatprep.mubr.f32.mxu0 %v16919_v42 }
 0x1f0   :  { %3413 = vmatprep.mubr.f32.mxu1 %v16919_v42 }
 0x1f2   :  { %12343 = vmatmul.mubr.msk.f32.gmra.mrb[20].mxu0 %vm71_vm1, %v14730_v34 }
 0x1f3   :  { %12349 = vmatmul.mubr.msk.f32.gmra.mrb[20].mxu1 %vm71_vm1, %v14730_v34  ;;  %3330 = vmatprep.mubr.f32.mxu0 %v16919_v42 }
 0x1f4   :  { %3419 = vmatprep.mubr.f32.mxu1 %v16919_v42 }
 0x1f6   :  { %12344 = vmatmul.mubr.msk.f32.gmra.mrb[22].mxu0 %vm71_vm1, %v14115_v39 }
 0x1f7   :  { %12350 = vmatmul.mubr.msk.f32.gmra.mrb[22].mxu1 %vm71_vm1, %v14743_v45  ;;  %3336 = vmatprep.mubr.f32.mxu0 %v16919_v42 }
 0x1f8   :  { %3425 = vmatprep.mubr.f32.mxu1 %v16919_v42 }
 0x1fa   :  { %12345 = vmatmul.mubr.msk.f32.gmra.mrb[24].mxu0 %vm71_vm1, %v14126_v40 }
 0x1fb   :  { %12351 = vmatmul.mubr.msk.f32.gmra.mrb[24].mxu1 %vm71_vm1, %v14126_v40  ;;  %3639 = vmatprep.mubr.f32.mxu0 %v16919_v42 }
 0x1fc   :  { %3710 = vmatprep.mubr.f32.mxu1 %v16919_v42 }
 0x2c1   :  { %v3320_v39 = vpop.f32.mrb[18].mxu0 }
 0x2c2   :  { %v3409_v46 = vpop.f32.mrb[18].mxu1  ;;  %v3322_v49 = vpop.f32.mrb[19].mxu0  ;;  %v3448_v51 = vadd.f32 %v3320_v39, %v14442_v61 }
 0x2c3   :  { %v3411_v50 = vpop.f32.mrb[19].mxu1  ;;  %v3450_v52 = vadd.f32 %v3409_v46, %v14442_v61  ;;  %v3449_v53 = vadd.f32 %v3322_v49, %v14442_v61 }
 0x2c4   :  { %v3451_v55 = vadd.f32 %v3411_v50, %v14442_v61  ;;  %v3464_v62 = vmul.f32 %v3448_v51, %v14448_v0 }
 0x2c5   :  { %v3326_v54 = vpop.f32.mrb[20].mxu0  ;;  %v3466_v36 = vmul.f32 %v3450_v52, %v14448_v0  ;;  %v3465_v30 = vmul.f32 %v3449_v53, %v14448_v0  ;;  %v16921_v52 = vld [vmem:[#allocation16_spill] sm:$0xff] }
 0x2c6   :  { %v3452_v58 = vadd.f32 %v3326_v54, %v14446_v63  ;;  %v3415_v40 = vpop.f32.mrb[20].mxu1  ;;  %v3328_v59 = vpop.f32.mrb[21].mxu0  ;;  %v3467_v7 = vmul.f32 %v3451_v55, %v14448_v0 }
 0x2c7   :  { %v3454_v60 = vadd.f32 %v3415_v40, %v14446_v63  ;;  %v3453_v16 = vadd.f32 %v3328_v59, %v14446_v63  ;;  %v3417_v10 = vpop.f32.mrb[21].mxu1 }
 0x2c8   :  { %v3468_v29 = vmul.f32 %v3452_v58, %v14450_v1  ;;  %v3455_v9 = vadd.f32 %v3417_v10, %v14446_v63 }
 0x2c9   :  { %v3470_v37 = vmul.f32 %v3454_v60, %v14450_v1  ;;  %v3469_v23 = vmul.f32 %v3453_v16, %v14450_v1  ;;  %v3332_v41 = vpop.f32.mrb[22].mxu0 }
 0x2ca   :  { %v3480_v19 = vadd.f32 %v3468_v29, %v3464_v62  ;;  %v3471_v2 = vmul.f32 %v3455_v9, %v14450_v1  ;;  %v3456_v17 = vadd.f32 %v3332_v41, %v16920_v15  ;;  %v3421_v22 = vpop.f32.mrb[22].mxu1  ;;  %v3334_v12 = vpop.f32.mrb[23].mxu0 }
 0x2cb   :  { %v3498_v8 = vadd.f32 %v3470_v37, %v3466_v36  ;;  %v3489_v39 = vadd.f32 %v3469_v23, %v3465_v30  ;;  %v3458_v46 = vadd.f32 %v3421_v22, %v16920_v15  ;;  %v3457_v49 = vadd.f32 %v3334_v12, %v16920_v15  ;;  %v3423_v50 = vpop.f32.mrb[23].mxu1 }
 0x2cc   :  { %v3507_v51 = vadd.f32 %v3471_v2, %v3467_v7  ;;  %v3472_v53 = vmul.f32 %v3456_v17, %v16921_v52  ;;  %v3459_v54 = vadd.f32 %v3423_v50, %v16920_v15 }
 0x2cd   :  { %v3474_v55 = vmul.f32 %v3458_v46, %v16921_v52  ;;  %v3473_v58 = vmul.f32 %v3457_v49, %v16921_v52  ;;  %v3338_v40 = vpop.f32.mrb[24].mxu0 }
 0x2ce   :  { %v3481_v59 = vadd.f32 %v3480_v19, %v3472_v53  ;;  %v3475_v60 = vmul.f32 %v3459_v54, %v16921_v52  ;;  %v3460_v16 = vadd.f32 %v3338_v40, %v14454_v13  ;;  %v3427_v10 = vpop.f32.mrb[24].mxu1  ;;  %v3340_v62 = vpop.f32.mrb[25].mxu0 }
 0x2cf   :  { %v3499_v29 = vadd.f32 %v3498_v8, %v3474_v55  ;;  %v3490_v9 = vadd.f32 %v3489_v39, %v3473_v58  ;;  %v3462_v36 = vadd.f32 %v3427_v10, %v14454_v13  ;;  %v3461_v30 = vadd.f32 %v3340_v62, %v14454_v13  ;;  %v3429_v37 = vpop.f32.mrb[25].mxu1 }
 0x2d0   :  { %v3508_v23 = vadd.f32 %v3507_v51, %v3475_v60  ;;  %v3476_v41 = vmul.f32 %v3460_v16, %v14476_v21  ;;  %v3463_v7 = vadd.f32 %v3429_v37, %v14454_v13 }
 0x2d1   :  { %v3478_v19 = vmul.f32 %v3462_v36, %v14476_v21  ;;  %v3477_v2 = vmul.f32 %v3461_v30, %v14476_v21 }
 0x2d2   :  { %v3482_v17 = vadd.f32 %v3481_v59, %v3476_v41  ;;  %v3479_v22 = vmul.f32 %v3463_v7, %v14476_v21 }
 0x2d3   :  { %v3500_v12 = vadd.f32 %v3499_v29, %v3478_v19  ;;  %v3491_v8 = vadd.f32 %v3490_v9, %v3477_v2 }
 0x2d4   :  { %v3483_v39 = vrot.slane %v3482_v17, 4  ;;  %v3509_v46 = vadd.f32 %v3508_v23, %v3479_v22 }
 0x2d5   :  { %v3501_v49 = vrot.slane %v3500_v12, 4  ;;  %v3492_v50 = vrot.slane %v3491_v8, 4 }
 0x2d6   :  { %v3484_v53 = vadd.f32 %v3483_v39, %v3482_v17  ;;  %v3510_v54 = vrot.slane %v3509_v46, 4 }
 0x2d7   :  { %v3502_v51 = vadd.f32 %v3501_v49, %v3500_v12  ;;  %v3493_v55 = vadd.f32 %v3492_v50, %v3491_v8 }
 0x2d8   :  { %v3485_v58 = vrot.slane %v3484_v53, 2  ;;  %v3511_v40 = vadd.f32 %v3510_v54, %v3509_v46 }
 0x2d9   :  { %v3503_v60 = vrot.slane %v3502_v51, 2  ;;  %v3494_v16 = vrot.slane %v3493_v55, 2 }
 0x2da   :  { %v3486_v10 = vadd.f32 %v3485_v58, %v3484_v53  ;;  %v3512_v62 = vrot.slane %v3511_v40, 2 }
 0x2db   :  { %v3504_v36 = vadd.f32 %v3503_v60, %v3502_v51  ;;  %v3495_v59 = vadd.f32 %v3494_v16, %v3493_v55 }
 0x2dc   :  { %v3487_v30 = vrot.slane %v3486_v10, 1  ;;  %v3513_v37 = vadd.f32 %v3512_v62, %v3511_v40  ;;  %v12064_v62 = vsel %vm12063_vm2, %v14532_v32, %v14540_v38  ;;  %v12067_v32 = vsel %vm12063_vm2, %v14538_v43, %v14552_v35 }
 0x2dd   :  { %v3505_v29 = vrot.slane %v3504_v36, 1  ;;  %v3496_v9 = vrot.slane %v3495_v59, 1 }
 0x2de   :  { %v3488_v41 = vadd.f32 %v3487_v30, %v3486_v10  ;;  %v3514_v23 = vrot.slane %v3513_v37, 1  ;;  %v12066_v30 = vsel %vm12063_vm2, %v14536_v14, %v14544_v33  ;;  %v14810_v33 = vld [vmem:[%s16807_s0 + $0x20] sm:$0xff] }
 0x2df   :  { %v3506_v7 = vadd.f32 %v3505_v29, %v3504_v36  ;;  %v3497_v19 = vadd.f32 %v3496_v9, %v3495_v59 }
 0x2e0   :  { %v3516_v2 = vadd.f32 %v3488_v41, %v14492_v18  ;;  %v3515_v17 = vadd.f32 %v3514_v23, %v3513_v37  ;;  %v12065_v41 = vsel %vm12063_vm2, %v14534_v20, %v14549_v6  ;;  %v14816_v6 = vld [vmem:[%s16807_s0 + $0x28] sm:$0xff] }
 0x2e1   :  { %v3518_v22 = vadd.f32 %v3506_v7, %v14492_v18  ;;  %v3517_v12 = vadd.f32 %v3497_v19, %v14492_v18 }
 0x2e2   :  { %v12352_v8 = vmul.f32 -1.442695, %v3516_v2  ;;  %v3519_v39 = vadd.f32 %v3515_v17, %v14492_v18 }
 0x2e3   :  { %v12354_v46 = vmul.f32 -1.442695, %v3518_v22  ;;  %v12353_v49 = vmul.f32 -1.442695, %v3517_v12 }
 0x2e4   :  { %13584 = vpow2.f32 %v12352_v8  ;;  %v12355_v50 = vmul.f32 -1.442695, %v3519_v39  ;;  %v12356_v8 = vld [vmem:[%s16812_s5 + $0x8] sm:$0xf]  ;;  %v14833_v39 = vld [vmem:[%s16808_s1 + $0x40] sm:$0xff] }
 0x2e5   :  { %13586 = vpow2.f32 %v12354_v46  ;;  %v14851_v46 = vld [vmem:[%s16808_s1 + $0x48] sm:$0xff] }
 0x2e6   :  { %13588 = vpow2.f32 %v12353_v49  ;;  %v14870_v49 = vld [vmem:[%s16808_s1 + $0x50] sm:$0xff] }
 0x2e7   :  { %13590 = vpow2.f32 %v12355_v50  ;;  %v16924_v50 = vld [vmem:[#allocation8_spill] sm:$0xff] }
 0x2ee   :  { %v13585_v53 = vpop.eup %13584 }
 0x2ef   :  { %v13587_v54 = vpop.eup %13586  ;;  %v3532_v51 = vadd.f32 1.0, %v13585_v53  ;;  %v14896_v53 = vld [vmem:[%s16808_s1 + $0x20] sm:$0xff] }
 0x2f0   :  { %v13589_v55 = vpop.eup %13588  ;;  %v3534_v58 = vadd.f32 1.0, %v13587_v54  ;;  %v14907_v54 = vld [vmem:[%s16808_s1 + $0x28] sm:$0xff] }
 0x2f1   :  { %v13591_v40 = vpop.eup %13590  ;;  %13592 = vrcp.f32 %v3532_v51  ;;  %v3533_v60 = vadd.f32 1.0, %v13589_v55  ;;  %v14913_v51 = vld [vmem:[%s16807_s0 + $0x30] sm:$0xff]  ;;  %v14920_v55 = vld [vmem:[%s16807_s0 + $0x38] sm:$0xff] }
 0x2f2   :  { %13594 = vrcp.f32 %v3534_v58  ;;  %v3535_v16 = vadd.f32 1.0, %v13591_v40  ;;  %v14936_v58 = vld [vmem:[%s16808_s1 + $0x30] sm:$0xff]  ;;  %v14947_v40 = vld [vmem:[%s16808_s1 + $0x38] sm:$0xff] }
 0x2f3   :  { %13596 = vrcp.f32 %v3533_v60  ;;  %v14955_v60 = vld [vmem:[%s16807_s0 + $0x60] sm:$0xff] }
 0x2f4   :  { %13598 = vrcp.f32 %v3535_v16  ;;  %v14963_v16 = vld [vmem:[%s16807_s0 + $0x68] sm:$0xff] }
 0x2fb   :  { %v13593_v10 = vpop.eup %13592 }
 0x2fc   :  { %v13595_v36 = vpop.eup %13594  ;;  %v14793_v59 = vsel %vm12068_vm3, %v12064_v62, %v13593_v10  ;;  %v3544_v37 = vadd.f32 1.0, %v13593_v10  ;;  %v14968_v10 = vcombine.high %v14955_v60, %v14955_v60  ;;  %v14973_v62 = vld [vmem:[%s16808_s1 + $0x80] sm:$0xff] }
 0x2fd   :  { %v13597_v29 = vpop.eup %13596  ;;  %v14797_v9 = vsel %vm12068_vm3, %v12066_v30, %v13595_v36  ;;  %v3546_v23 = vadd.f32 1.0, %v13595_v36  ;;  %v14979_v36 = vcombine.high %v14963_v16, %v14963_v16  ;;  %v14994_v30 = vld [vmem:[%s16808_s1 + $0x88] sm:$0xff] }
 0x2fe   :  { %v13599_v7 = vpop.eup %13598  ;;  %v14801_v19 = vsel %vm12068_vm3, %v12065_v41, %v13597_v29  ;;  %v3545_v38 = vadd.f32 1.0, %v13597_v29  ;;  %16928 = vst [vmem:[#allocation17_spill] sm:$0xff] %v14968_v10  ;;  %v15033_v29 = vld [vmem:[%s16807_s0 + $0x78] sm:$0xff] }
 0x2ff   :  { %v14805_v2 = vsel %vm12068_vm3, %v12067_v32, %v13599_v7  ;;  %v3547_v17 = vadd.f32 1.0, %v13599_v7  ;;  %16929 = vst [vmem:[#allocation18_spill] sm:$0xff] %v14979_v36  ;;  %16932 = vst [vmem:[#allocation21_spill] sm:$0xff] %v15033_v29  ;;  %v15049_v7 = vcombine.high %v15033_v29, %v15033_v29  ;;  %v15064_v32 = vld [vmem:[%s16808_s1 + $0xa8] sm:$0xff] }
 0x300   :  { %v3552_v22 = vcombine.low %v3544_v37, %v3545_v38  ;;  %v15025_v37 = vld [vmem:[%s16807_s0 + $0x70] sm:$0xff]  ;;  %16936 = vst [vmem:[#allocation25_spill] sm:$0xff] %v15064_v32 }
 0x301   :  { %v3553_v14 = vcombine.low %v3546_v23, %v3547_v17  ;;  %16931 = vst [vmem:[#allocation20_spill] sm:$0xff] %v15025_v37  ;;  %v15038_v41 = vcombine.high %v15025_v37, %v15025_v37  ;;  %v15043_v23 = vld [vmem:[%s16808_s1 + $0xa0] sm:$0xff]  ;;  %16935 = vst [vmem:[#allocation24_spill] sm:$0xff] %v15049_v7  ;;  %v15077_v38 = vld [vmem:[%s16808_s1 + $0xb0] sm:$0xff] }
 0x302   :  { %v3556_v20 = vmul.f32 %v14810_v33, %v3552_v22  ;;  %16934 = vst [vmem:[#allocation23_spill] sm:$0xff] %v15043_v23  ;;  %16937 = vst [vmem:[#allocation26_spill] sm:$0xff] %v15077_v38  ;;  %v15088_v17 = vld [vmem:[%s16808_s1 + $0xb8] sm:$0xff]  ;;  %v15154_v22 = vld [vmem:[%s16808_s1 + $0x110] sm:$0xff] }
 0x303   :  { %v3557_v43 = vmul.f32 %v14816_v6, %v3553_v14  ;;  %16933 = vst [vmem:[#allocation22_spill] sm:$0xff] %v15038_v41  ;;  %16938 = vst [vmem:[#allocation27_spill] sm:$0xff] %v15088_v17  ;;  %v15165_v14 = vld [vmem:[%s16808_s1 + $0x118] sm:$0xff] }
 0x304   :  { %v3562_v35 = vcombine.high %v3556_v20, %v3556_v20  ;;  %16942 = vst [vmem:[#allocation31_spill] sm:$0xff] %v15154_v22  ;;  %16943 = vst [vmem:[#allocation32_spill] sm:$0xff] %v15165_v14 }
 0x305   :  { %v3563_v12 = vcombine.high %v3557_v43, %v3557_v43 }
 0x306   :  { %12357 = vmatprep.subr.msk.mxu0 %vm84_vm0, %v3562_v35 }
 0x307   :  { %12360 = vmatprep.subr.msk.mxu1 %vm84_vm0, %v3563_v12  ;;  %12358 = vmatpush1.msk.msra.mxu0 %vm84_vm0, %v3556_v20 }
 0x308   :  { %12361 = vmatpush1.msk.msra.mxu1 %vm84_vm0, %v3557_v43  ;;  %12359 = vmatmul.mubr.msk.f32.vlgmr.msra.gmra.mrb[16].mxu0 %vm71_vm1, %v12356_v8 }
 0x309   :  { %12362 = vmatmul.mubr.msk.f32.vlgmr.msra.gmra.mrb[16].mxu1 %vm71_vm1, %v12356_v8  ;;  %12371 = vmatprep.subr.msk.mxu0 %vm84_vm0, %v13877_v3 }
 0x30a   :  { %12377 = vmatprep.subr.msk.mxu1 %vm84_vm0, %v13881_v4  ;;  %12372 = vmatpush1.msk.msra.mxu0 %vm84_vm0, %v14559_v44  ;;  %v16922_v44 = vld [vmem:[#allocation6_spill] sm:$0xff] }
 0x30b   :  { %3807 = vmatprep.mubr.f32.mxu0 %v16919_v42  ;;  %12378 = vmatpush1.msk.msra.mxu1 %vm84_vm0, %v14565_v24  ;;  %v16923_v24 = vld [vmem:[#allocation7_spill] sm:$0xff]  ;;  %16926 = vst [vmem:[#allocation6_spill] sm:$0xff] %v14955_v60 }
 0x30c   :  { %3896 = vmatprep.mubr.f32.mxu1 %v16919_v42  ;;  %12373 = vmatmul.mubr.msk.f32.vlgmr.msra.gmra.mrb[26].mxu0 %vm71_vm1, %v14833_v39  ;;  %16927 = vst [vmem:[#allocation7_spill] sm:$0xff] %v14963_v16 }
 0x30d   :  { %12379 = vmatmul.mubr.msk.f32.vlgmr.msra.gmra.mrb[26].mxu1 %vm71_vm1, %v14833_v39  ;;  %3813 = vmatprep.mubr.f32.mxu0 %v16919_v42 }
 0x30e   :  { %3902 = vmatprep.mubr.f32.mxu1 %v16919_v42  ;;  %12383 = vmatprep.subr.msk.mxu0 %vm84_vm0, %v16922_v44 }
 0x30f   :  { %12389 = vmatprep.subr.msk.mxu1 %vm84_vm0, %v16923_v24  ;;  %12384 = vmatpush1.msk.msra.mxu0 %vm84_vm0, %v14571_v11  ;;  %v16925_v11 = vld [vmem:[#allocation9_spill] sm:$0xff] }
 0x310   :  { %12374 = vmatmul.mubr.msk.f32.gmra.mrb[28].mxu0 %vm71_vm1, %v14851_v46  ;;  %12390 = vmatpush1.msk.msra.mxu1 %vm84_vm0, %v14577_v5  ;;  %v14885_v5 = vld [vmem:[%s16808_s1 + $0x58] sm:$0xff] }
 0x311   :  { %12380 = vmatmul.mubr.msk.f32.gmra.mrb[28].mxu1 %vm71_vm1, %v14851_v46  ;;  %3819 = vmatprep.mubr.f32.mxu0 %v16919_v42 }
 0x312   :  { %3908 = vmatprep.mubr.f32.mxu1 %v16919_v42  ;;  %12395 = vmatprep.subr.msk.mxu0 %vm84_vm0, %v16924_v50 }
 0x313   :  { %12401 = vmatprep.subr.msk.mxu1 %vm84_vm0, %v16925_v11 }
 0x314   :  { %12375 = vmatmul.mubr.msk.f32.gmra.mrb[30].mxu0 %vm71_vm1, %v14870_v49 }
 0x315   :  { %12381 = vmatmul.mubr.msk.f32.gmra.mrb[30].mxu1 %vm71_vm1, %v14870_v49  ;;  %3825 = vmatprep.mubr.f32.mxu0 %v16919_v42 }
 0x316   :  { %3914 = vmatprep.mubr.f32.mxu1 %v16919_v42 }
 0x318   :  { %12376 = vmatmul.mubr.msk.f32.gmra.mrb[32].mxu0 %vm71_vm1, %v14885_v5 }
 0x319   :  { %12382 = vmatmul.mubr.msk.f32.gmra.mrb[32].mxu1 %vm71_vm1, %v14885_v5  ;;  %3997 = vmatprep.mubr.f32.mxu0 %v16919_v42 }
 0x31a   :  { %4086 = vmatprep.mubr.f32.mxu1 %v16919_v42 }
 0x31c   :  { %12385 = vmatmul.mubr.msk.f32.vlgmr.msra.gmra.mrb[26].mxu0 %vm71_vm1, %v14896_v53 }
 0x31d   :  { %12391 = vmatmul.mubr.msk.f32.vlgmr.msra.gmra.mrb[26].mxu1 %vm71_vm1, %v14896_v53  ;;  %4003 = vmatprep.mubr.f32.mxu0 %v16919_v42 }
 0x31e   :  { %4092 = vmatprep.mubr.f32.mxu1 %v16919_v42  ;;  %12396 = vmatpush1.msk.msra.mxu0 %vm84_vm0, %v14913_v51 }
 0x31f   :  { %12402 = vmatpush1.msk.msra.mxu1 %vm84_vm0, %v14920_v55  ;;  %12407 = vmatprep.subr.msk.mxu0 %vm84_vm0, %v14014_v26 }
 0x320   :  { %12386 = vmatmul.mubr.msk.f32.gmra.mrb[28].mxu0 %vm71_vm1, %v14907_v54  ;;  %12413 = vmatprep.subr.msk.mxu1 %vm84_vm0, %v14018_v27 }
 0x321   :  { %12392 = vmatmul.mubr.msk.f32.gmra.mrb[28].mxu1 %vm71_vm1, %v14907_v54  ;;  %4009 = vmatprep.mubr.f32.mxu0 %v16919_v42 }
 0x322   :  { %4098 = vmatprep.mubr.f32.mxu1 %v16919_v42 }
 0x324   :  { %12387 = vmatmul.mubr.msk.f32.gmra.mrb[30].mxu0 %vm71_vm1, %v14936_v58 }
 0x325   :  { %12393 = vmatmul.mubr.msk.f32.gmra.mrb[30].mxu1 %vm71_vm1, %v14936_v58  ;;  %4015 = vmatprep.mubr.f32.mxu0 %v16919_v42 }
 0x326   :  { %4104 = vmatprep.mubr.f32.mxu1 %v16919_v42 }
 0x328   :  { %12388 = vmatmul.mubr.msk.f32.gmra.mrb[32].mxu0 %vm71_vm1, %v14947_v40 }
 0x329   :  { %12394 = vmatmul.mubr.msk.f32.gmra.mrb[32].mxu1 %vm71_vm1, %v14947_v40  ;;  %4175 = vmatprep.mubr.f32.mxu0 %v16919_v42 }
 0x32a   :  { %4264 = vmatprep.mubr.f32.mxu1 %v16919_v42 }
 0x32c   :  { %12397 = vmatmul.mubr.msk.f32.vlgmr.msra.gmra.mrb[26].mxu0 %vm71_vm1, %v14973_v62 }
 0x32d   :  { %12403 = vmatmul.mubr.msk.f32.vlgmr.msra.gmra.mrb[26].mxu1 %vm71_vm1, %v14973_v62  ;;  %4181 = vmatprep.mubr.f32.mxu0 %v16919_v42 }
 0x32e   :  { %4270 = vmatprep.mubr.f32.mxu1 %v16919_v42  ;;  %12408 = vmatpush1.msk.msra.mxu0 %vm84_vm0, %v14655_v25  ;;  %v15007_v25 = vld [vmem:[%s16808_s1 + $0x90] sm:$0xff] }
 0x32f   :  { %12414 = vmatpush1.msk.msra.mxu1 %vm84_vm0, %v14662_v28  ;;  %12419 = vmatprep.subr.msk.mxu0 %vm84_vm0, %v14968_v10  ;;  %v15018_v28 = vld [vmem:[%s16808_s1 + $0x98] sm:$0xff] }
 0x330   :  { %12398 = vmatmul.mubr.msk.f32.gmra.mrb[28].mxu0 %vm71_vm1, %v14994_v30  ;;  %12425 = vmatprep.subr.msk.mxu1 %vm84_vm0, %v14979_v36  ;;  %16930 = vst [vmem:[#allocation19_spill] sm:$0xff] %v15018_v28 }
 0x331   :  { %12404 = vmatmul.mubr.msk.f32.gmra.mrb[28].mxu1 %vm71_vm1, %v14994_v30  ;;  %4187 = vmatprep.mubr.f32.mxu0 %v16919_v42 }
 0x332   :  { %4276 = vmatprep.mubr.f32.mxu1 %v16919_v42 }
 0x334   :  { %12399 = vmatmul.mubr.msk.f32.gmra.mrb[30].mxu0 %vm71_vm1, %v15007_v25 }
 0x335   :  { %12405 = vmatmul.mubr.msk.f32.gmra.mrb[30].mxu1 %vm71_vm1, %v15007_v25  ;;  %4193 = vmatprep.mubr.f32.mxu0 %v16919_v42 }
 0x336   :  { %4282 = vmatprep.mubr.f32.mxu1 %v16919_v42 }
 0x338   :  { %12400 = vmatmul.mubr.msk.f32.gmra.mrb[32].mxu0 %vm71_vm1, %v15018_v28 }
 0x339   :  { %12406 = vmatmul.mubr.msk.f32.gmra.mrb[32].mxu1 %vm71_vm1, %v15018_v28  ;;  %4369 = vmatprep.mubr.f32.mxu0 %v16919_v42 }
 0x33a   :  { %4458 = vmatprep.mubr.f32.mxu1 %v16919_v42 }
 0x33c   :  { %12409 = vmatmul.mubr.msk.f32.vlgmr.msra.gmra.mrb[26].mxu0 %vm71_vm1, %v15043_v23 }
 0x33d   :  { %12415 = vmatmul.mubr.msk.f32.vlgmr.msra.gmra.mrb[26].mxu1 %vm71_vm1, %v15043_v23  ;;  %4375 = vmatprep.mubr.f32.mxu0 %v16919_v42 }
 0x33e   :  { %4464 = vmatprep.mubr.f32.mxu1 %v16919_v42  ;;  %12420 = vmatpush1.msk.msra.mxu0 %vm84_vm0, %v14955_v60 }
 0x33f   :  { %12426 = vmatpush1.msk.msra.mxu1 %vm84_vm0, %v14963_v16  ;;  %12431 = vmatprep.subr.msk.mxu0 %vm84_vm0, %v15038_v41 }
 0x340   :  { %12410 = vmatmul.mubr.msk.f32.gmra.mrb[28].mxu0 %vm71_vm1, %v15064_v32  ;;  %12437 = vmatprep.subr.msk.mxu1 %vm84_vm0, %v15049_v7 }
 0x341   :  { %12416 = vmatmul.mubr.msk.f32.gmra.mrb[28].mxu1 %vm71_vm1, %v15064_v32  ;;  %4381 = vmatprep.mubr.f32.mxu0 %v16919_v42 }
 0x342   :  { %4470 = vmatprep.mubr.f32.mxu1 %v16919_v42 }
 0x344   :  { %12411 = vmatmul.mubr.msk.f32.gmra.mrb[30].mxu0 %vm71_vm1, %v15077_v38 }
 0x345   :  { %12417 = vmatmul.mubr.msk.f32.gmra.mrb[30].mxu1 %vm71_vm1, %v15077_v38  ;;  %4387 = vmatprep.mubr.f32.mxu0 %v16919_v42 }
 0x346   :  { %4476 = vmatprep.mubr.f32.mxu1 %v16919_v42 }
 0x348   :  { %12412 = vmatmul.mubr.msk.f32.gmra.mrb[32].mxu0 %vm71_vm1, %v15088_v17 }
 0x349   :  { %12418 = vmatmul.mubr.msk.f32.gmra.mrb[32].mxu1 %vm71_vm1, %v15088_v17  ;;  %4575 = vmatprep.mubr.f32.mxu0 %v16919_v42 }
 0x34a   :  { %4664 = vmatprep.mubr.f32.mxu1 %v16919_v42 }
 0x34c   :  { %12421 = vmatmul.mubr.msk.f32.vlgmr.msra.gmra.mrb[26].mxu0 %vm71_vm1, %v14719_v31 }
 0x34d   :  { %12427 = vmatmul.mubr.msk.f32.vlgmr.msra.gmra.mrb[26].mxu1 %vm71_vm1, %v14719_v31  ;;  %4581 = vmatprep.mubr.f32.mxu0 %v16919_v42  ;;  %v15121_v31 = vld [vmem:[%s16808_s1 + $0xf8] sm:$0xff] }
 0x34e   :  { %4670 = vmatprep.mubr.f32.mxu1 %v16919_v42  ;;  %12432 = vmatpush1.msk.msra.mxu0 %vm84_vm0, %v15025_v37  ;;  %16939 = vst [vmem:[#allocation28_spill] sm:$0xff] %v15121_v31 }
 0x34f   :  { %12438 = vmatpush1.msk.msra.mxu1 %vm84_vm0, %v15033_v29 }
 0x350   :  { %12422 = vmatmul.mubr.msk.f32.gmra.mrb[28].mxu0 %vm71_vm1, %v14730_v34 }
 0x351   :  { %12428 = vmatmul.mubr.msk.f32.gmra.mrb[28].mxu1 %vm71_vm1, %v14730_v34  ;;  %4587 = vmatprep.mubr.f32.mxu0 %v16919_v42  ;;  %v15132_v34 = vld [vmem:[%s16808_s1 + $0x100] sm:$0xff] }
 0x352   :  { %4676 = vmatprep.mubr.f32.mxu1 %v16919_v42  ;;  %16940 = vst [vmem:[#allocation29_spill] sm:$0xff] %v15132_v34 }
 0x354   :  { %12423 = vmatmul.mubr.msk.f32.gmra.mrb[30].mxu0 %vm71_vm1, %v14743_v45 }
 0x355   :  { %12429 = vmatmul.mubr.msk.f32.gmra.mrb[30].mxu1 %vm71_vm1, %v14743_v45  ;;  %4593 = vmatprep.mubr.f32.mxu0 %v16919_v42  ;;  %v15143_v45 = vld [vmem:[%s16808_s1 + $0x108] sm:$0xff] }
 0x356   :  { %4682 = vmatprep.mubr.f32.mxu1 %v16919_v42  ;;  %16941 = vst [vmem:[#allocation30_spill] sm:$0xff] %v15143_v45 }
 0x358   :  { %12424 = vmatmul.mubr.msk.f32.gmra.mrb[32].mxu0 %vm71_vm1, %v15121_v31 }
 0x359   :  { %12430 = vmatmul.mubr.msk.f32.gmra.mrb[32].mxu1 %vm71_vm1, %v15121_v31  ;;  %4781 = vmatprep.mubr.f32.mxu0 %v16919_v42 }
 0x35a   :  { %4870 = vmatprep.mubr.f32.mxu1 %v16919_v42 }
 0x35c   :  { %12433 = vmatmul.mubr.msk.f32.vlgmr.msra.gmra.mrb[26].mxu0 %vm71_vm1, %v15132_v34 }
 0x35d   :  { %12439 = vmatmul.mubr.msk.f32.vlgmr.msra.gmra.mrb[26].mxu1 %vm71_vm1, %v15132_v34  ;;  %4787 = vmatprep.mubr.f32.mxu0 %v16919_v42 }
 0x35e   :  { %4876 = vmatprep.mubr.f32.mxu1 %v16919_v42 }
 0x360   :  { %12434 = vmatmul.mubr.msk.f32.gmra.mrb[28].mxu0 %vm71_vm1, %v15143_v45 }
 0x361   :  { %12440 = vmatmul.mubr.msk.f32.gmra.mrb[28].mxu1 %vm71_vm1, %v15143_v45  ;;  %4793 = vmatprep.mubr.f32.mxu0 %v16919_v42 }
 0x362   :  { %4882 = vmatprep.mubr.f32.mxu1 %v16919_v42 }
 0x364   :  { %12435 = vmatmul.mubr.msk.f32.gmra.mrb[30].mxu0 %vm71_vm1, %v15154_v22 }
 0x365   :  { %12441 = vmatmul.mubr.msk.f32.gmra.mrb[30].mxu1 %vm71_vm1, %v15154_v22  ;;  %4799 = vmatprep.mubr.f32.mxu0 %v16919_v42 }
 0x366   :  { %4888 = vmatprep.mubr.f32.mxu1 %v16919_v42 }
 0x368   :  { %12436 = vmatmul.mubr.msk.f32.gmra.mrb[32].mxu0 %vm71_vm1, %v15165_v14 }
 0x369   :  { %12442 = vmatmul.mubr.msk.f32.gmra.mrb[32].mxu1 %vm71_vm1, %v15165_v14  ;;  %5102 = vmatprep.mubr.f32.mxu0 %v16919_v42 }
 0x36a   :  { %5173 = vmatprep.mubr.f32.mxu1 %v16919_v42 }
 0x42f   :  { %v4783_v20 = vpop.f32.mrb[26].mxu0 }
 0x430   :  { %v4872_v43 = vpop.f32.mrb[26].mxu1  ;;  %v4785_v35 = vpop.f32.mrb[27].mxu0  ;;  %v4911_v8 = vadd.f32 %v4783_v20, %v14442_v61 }
 0x431   :  { %v4874_v12 = vpop.f32.mrb[27].mxu1  ;;  %v4913_v22 = vadd.f32 %v4872_v43, %v14442_v61  ;;  %v4912_v45 = vadd.f32 %v4785_v35, %v14442_v61 }
 0x432   :  { %v4914_v31 = vadd.f32 %v4874_v12, %v14442_v61  ;;  %v4927_v32 = vmul.f32 %v4911_v8, %v14448_v0 }
 0x433   :  { %v4789_v34 = vpop.f32.mrb[28].mxu0  ;;  %v4929_v35 = vmul.f32 %v4913_v22, %v14448_v0  ;;  %v4928_v41 = vmul.f32 %v4912_v45, %v14448_v0 }
 0x434   :  { %v4915_v29 = vadd.f32 %v4789_v34, %v14446_v63  ;;  %v4878_v14 = vpop.f32.mrb[28].mxu1  ;;  %v4791_v37 = vpop.f32.mrb[29].mxu0 }
 0x435   :  { %v4917_v17 = vadd.f32 %v4878_v14, %v14446_v63  ;;  %v4916_v38 = vadd.f32 %v4791_v37, %v14446_v63  ;;  %v4880_v7 = vpop.f32.mrb[29].mxu1  ;;  %v4930_v14 = vmul.f32 %v4914_v31, %v14448_v0 }
 0x436   :  { %v4931_v20 = vmul.f32 %v4915_v29, %v14450_v1  ;;  %v4918_v43 = vadd.f32 %v4880_v7, %v14446_v63 }
 0x437   :  { %v4933_v12 = vmul.f32 %v4917_v17, %v14450_v1  ;;  %v4932_v34 = vmul.f32 %v4916_v38, %v14450_v1  ;;  %v4795_v61 = vpop.f32.mrb[30].mxu0 }
 0x438   :  { %v4943_v16 = vadd.f32 %v4931_v20, %v4927_v32  ;;  %v4934_v37 = vmul.f32 %v4918_v43, %v14450_v1  ;;  %v4919_v8 = vadd.f32 %v4795_v61, %v16920_v15  ;;  %v4884_v60 = vpop.f32.mrb[30].mxu1  ;;  %v4797_v29 = vpop.f32.mrb[31].mxu0 }
 0x439   :  { %v4961_v23 = vadd.f32 %v4933_v12, %v4929_v35  ;;  %v4952_v7 = vadd.f32 %v4932_v34, %v4928_v41  ;;  %v4921_v22 = vadd.f32 %v4884_v60, %v16920_v15  ;;  %v4920_v45 = vadd.f32 %v4797_v29, %v16920_v15  ;;  %v4886_v63 = vpop.f32.mrb[31].mxu1 }
 0x43a   :  { %v4970_v17 = vadd.f32 %v4934_v37, %v4930_v14  ;;  %v4935_v38 = vmul.f32 %v4919_v8, %v16921_v52  ;;  %v4922_v28 = vadd.f32 %v4886_v63, %v16920_v15 }
 0x43b   :  { %v4937_v32 = vmul.f32 %v4921_v22, %v16921_v52  ;;  %v4936_v31 = vmul.f32 %v4920_v45, %v16921_v52  ;;  %v4801_v20 = vpop.f32.mrb[32].mxu0 }
 0x43c   :  { %v4944_v61 = vadd.f32 %v4943_v16, %v4935_v38  ;;  %v4938_v43 = vmul.f32 %v4922_v28, %v16921_v52  ;;  %v4923_v41 = vadd.f32 %v4801_v20, %v14454_v13  ;;  %v4890_v35 = vpop.f32.mrb[32].mxu1  ;;  %v4803_v60 = vpop.f32.mrb[33].mxu0 }
 0x43d   :  { %v4962_v12 = vadd.f32 %v4961_v23, %v4937_v32  ;;  %v4953_v34 = vadd.f32 %v4952_v7, %v4936_v31  ;;  %v4925_v14 = vadd.f32 %v4890_v35, %v14454_v13  ;;  %v4924_v37 = vadd.f32 %v4803_v60, %v14454_v13  ;;  %v4892_v8 = vpop.f32.mrb[33].mxu1 }
 0x43e   :  { %v4971_v63 = vadd.f32 %v4970_v17, %v4938_v43  ;;  %v4939_v29 = vmul.f32 %v4923_v41, %v14476_v21  ;;  %v4926_v22 = vadd.f32 %v4892_v8, %v14454_v13 }
 0x43f   :  { %v4941_v16 = vmul.f32 %v4925_v14, %v14476_v21  ;;  %v4940_v28 = vmul.f32 %v4924_v37, %v14476_v21 }
 0x440   :  { %v4945_v45 = vadd.f32 %v4944_v61, %v4939_v29  ;;  %v4942_v38 = vmul.f32 %v4926_v22, %v14476_v21 }
 0x441   :  { %v4963_v20 = vadd.f32 %v4962_v12, %v4941_v16  ;;  %v4954_v23 = vadd.f32 %v4953_v34, %v4940_v28 }
 0x442   :  { %v4946_v7 = vrot.slane %v4945_v45, 4  ;;  %v4972_v32 = vadd.f32 %v4971_v63, %v4942_v38 }
 0x443   :  { %v4964_v31 = vrot.slane %v4963_v20, 4  ;;  %v4955_v35 = vrot.slane %v4954_v23, 4 }
 0x444   :  { %v4947_v60 = vadd.f32 %v4946_v7, %v4945_v45  ;;  %v4973_v52 = vrot.slane %v4972_v32, 4 }
 0x445   :  { %v4965_v17 = vadd.f32 %v4964_v31, %v4963_v20  ;;  %v4956_v43 = vadd.f32 %v4955_v35, %v4954_v23 }
 0x446   :  { %v4948_v41 = vrot.slane %v4947_v60, 2  ;;  %v4974_v15 = vadd.f32 %v4973_v52, %v4972_v32 }
 0x447   :  { %v4966_v8 = vrot.slane %v4965_v17, 2  ;;  %v4957_v13 = vrot.slane %v4956_v43, 2 }
 0x448   :  { %v4949_v14 = vadd.f32 %v4948_v41, %v4947_v60  ;;  %v4975_v1 = vrot.slane %v4974_v15, 2 }
 0x449   :  { %v4967_v37 = vadd.f32 %v4966_v8, %v4965_v17  ;;  %v4958_v61 = vadd.f32 %v4957_v13, %v4956_v43 }
 0x44a   :  { %v4950_v29 = vrot.slane %v4949_v14, 1  ;;  %v4976_v22 = vadd.f32 %v4975_v1, %v4974_v15 }
 0x44b   :  { %v4968_v12 = vrot.slane %v4967_v37, 1  ;;  %v4959_v34 = vrot.slane %v4958_v61, 1 }
 0x44c   :  { %v4951_v16 = vadd.f32 %v4950_v29, %v4949_v14  ;;  %v4977_v63 = vrot.slane %v4976_v22, 1 }
 0x44d   :  { %v4969_v28 = vadd.f32 %v4968_v12, %v4967_v37  ;;  %v4960_v38 = vadd.f32 %v4959_v34, %v4958_v61 }
 0x44e   :  { %v4979_v45 = vadd.f32 %v4951_v16, %v14492_v18  ;;  %v4978_v20 = vadd.f32 %v4977_v63, %v4976_v22 }
 0x44f   :  { %v4981_v23 = vadd.f32 %v4969_v28, %v14492_v18  ;;  %v4980_v52 = vadd.f32 %v4960_v38, %v14492_v18 }
 0x450   :  { %v12443_v7 = vmul.f32 -1.442695, %v4979_v45  ;;  %v4982_v32 = vadd.f32 %v4978_v20, %v14492_v18 }
 0x451   :  { %v12445_v31 = vmul.f32 -1.442695, %v4981_v23  ;;  %v12444_v13 = vmul.f32 -1.442695, %v4980_v52 }
 0x452   :  { %13600 = vpow2.f32 %v12443_v7  ;;  %v12446_v1 = vmul.f32 -1.442695, %v4982_v32 }
 0x453   :  { %13602 = vpow2.f32 %v12445_v31 }
 0x454   :  { %13604 = vpow2.f32 %v12444_v13  ;;  %v13724_v13 = vld [vmem:[%s16807_s0] sm:$0xff] }
 0x455   :  { %13606 = vpow2.f32 %v12446_v1  ;;  %v16948_v1 = vld [vmem:[#allocation22_spill] sm:$0xff] }
 0x45c   :  { %v13601_v15 = vpop.eup %13600 }
 0x45d   :  { %v13603_v35 = vpop.eup %13602  ;;  %v4995_v60 = vadd.f32 1.0, %v13601_v15  ;;  %v16949_v15 = vld [vmem:[#allocation25_spill] sm:$0xff] }
 0x45e   :  { %v13605_v17 = vpop.eup %13604  ;;  %v4997_v43 = vadd.f32 1.0, %v13603_v35  ;;  %v16950_v35 = vld [vmem:[#allocation24_spill] sm:$0xff] }
 0x45f   :  { %v13607_v41 = vpop.eup %13606  ;;  %13608 = vrcp.f32 %v4995_v60  ;;  %v4996_v8 = vadd.f32 1.0, %v13605_v17  ;;  %v16951_v60 = vld [vmem:[#allocation26_spill] sm:$0xff]  ;;  %v16952_v17 = vld [vmem:[#allocation27_spill] sm:$0xff] }
 0x460   :  { %13610 = vrcp.f32 %v4997_v43  ;;  %v4998_v14 = vadd.f32 1.0, %v13607_v41  ;;  %v15511_v43 = vld [vmem:[%s16807_s0 + $0x80] sm:$0xff]  ;;  %v15519_v41 = vld [vmem:[%s16807_s0 + $0x88] sm:$0xff] }
 0x461   :  { %13612 = vrcp.f32 %v4996_v8  ;;  %v15524_v8 = vcombine.high %v15511_v43, %v15511_v43 }
 0x462   :  { %13614 = vrcp.f32 %v4998_v14  ;;  %v15529_v14 = vld [vmem:[%s16808_s1 + $0xc0] sm:$0xff] }
 0x469   :  { %v13609_v37 = vpop.eup %13608 }
 0x46a   :  { %v13611_v61 = vpop.eup %13610  ;;  %v15210_v29 = vsel %vm12073_vm4, %v14793_v59, %v13609_v37  ;;  %v5007_v22 = vadd.f32 1.0, %v13609_v37  ;;  %v15535_v37 = vcombine.high %v15519_v41, %v15519_v41 }
 0x46b   :  { %v13613_v12 = vpop.eup %13612  ;;  %v15213_v34 = vsel %vm12073_vm4, %v14797_v9, %v13611_v61  ;;  %v5009_v16 = vadd.f32 1.0, %v13611_v61  ;;  %v12447_v9 = vld [vmem:[%s16812_s5 + $0xc] sm:$0xf]  ;;  %v16953_v61 = vld [vmem:[#allocation20_spill] sm:$0xff] }
 0x46c   :  { %v13615_v63 = vpop.eup %13614  ;;  %v15216_v28 = vsel %vm12073_vm4, %v14801_v19, %v13613_v12  ;;  %v5008_v38 = vadd.f32 1.0, %v13613_v12  ;;  %v15239_v19 = vld [vmem:[%s16807_s0 + $0x10] sm:$0xff]  ;;  %v15550_v12 = vld [vmem:[%s16808_s1 + $0xc8] sm:$0xff] }
 0x46d   :  { %v15219_v45 = vsel %vm12073_vm4, %v14805_v2, %v13615_v63  ;;  %v5010_v20 = vadd.f32 1.0, %v13615_v63  ;;  %v15247_v2 = vld [vmem:[%s16807_s0 + $0x18] sm:$0xff] }
 0x46e   :  { %v5015_v23 = vcombine.low %v5007_v22, %v5008_v38  ;;  %v16954_v22 = vld [vmem:[#allocation21_spill] sm:$0xff]  ;;  %v15574_v63 = vld [vmem:[%s16808_s1 + $0xd8] sm:$0xff]  ;;  %v15585_v38 = vld [vmem:[%s16808_s1 + $0xe0] sm:$0xff] }
 0x46f   :  { %v5016_v52 = vcombine.low %v5009_v16, %v5010_v20  ;;  %v15563_v16 = vld [vmem:[%s16808_s1 + $0xd0] sm:$0xff]  ;;  %v15600_v20 = vld [vmem:[%s16808_s1 + $0xe8] sm:$0xff] }
 0x470   :  { %v5019_v59 = vmul.f32 %v14913_v51, %v5015_v23  ;;  %v15611_v23 = vld [vmem:[%s16808_s1 + $0xf0] sm:$0xff] }
 0x471   :  { %v5020_v7 = vmul.f32 %v14920_v55, %v5016_v52  ;;  %16959 = vst [vmem:[#allocation22_spill] sm:$0xff] %v15611_v23  ;;  %v16960_v52 = vld [vmem:[#allocation28_spill] sm:$0xff] }
 0x472   :  { %v5025_v32 = vcombine.high %v5019_v59, %v5019_v59 }
 0x473   :  { %v5026_v31 = vcombine.high %v5020_v7, %v5020_v7 }
 0x474   :  { %12448 = vmatprep.subr.msk.mxu0 %vm84_vm0, %v5025_v32  ;;  %v16963_v32 = vld [vmem:[#allocation31_spill] sm:$0xff] }
 0x475   :  { %12451 = vmatprep.subr.msk.mxu1 %vm84_vm0, %v5026_v31  ;;  %12449 = vmatpush1.msk.msra.mxu0 %vm84_vm0, %v5019_v59  ;;  %v16961_v59 = vld [vmem:[#allocation29_spill] sm:$0xff]  ;;  %v16964_v31 = vld [vmem:[#allocation32_spill] sm:$0xff] }
 0x476   :  { %12452 = vmatpush1.msk.msra.mxu1 %vm84_vm0, %v5020_v7  ;;  %12450 = vmatmul.mubr.msk.f32.vlgmr.msra.gmra.mrb[16].mxu0 %vm71_vm1, %v12447_v9  ;;  %v16962_v7 = vld [vmem:[#allocation30_spill] sm:$0xff] }
 0x477   :  { %12453 = vmatmul.mubr.msk.f32.vlgmr.msra.gmra.mrb[16].mxu1 %vm71_vm1, %v12447_v9  ;;  %12454 = vmatprep.subr.msk.mxu0 %vm84_vm0, %v13877_v3 }
 0x478   :  { %12460 = vmatprep.subr.msk.mxu1 %vm84_vm0, %v13881_v4  ;;  %12455 = vmatpush1.msk.msra.mxu0 %vm84_vm0, %v15239_v19 }
 0x479   :  { %5252 = vmatprep.mubr.f32.mxu0 %v16919_v42  ;;  %12461 = vmatpush1.msk.msra.mxu1 %vm84_vm0, %v15247_v2 }
 0x47a   :  { %5341 = vmatprep.mubr.f32.mxu1 %v16919_v42  ;;  %12456 = vmatmul.mubr.msk.f32.vlgmr.msra.gmra.mrb[34].mxu0 %vm71_vm1, %v14896_v53 }
 0x47b   :  { %12462 = vmatmul.mubr.msk.f32.vlgmr.msra.gmra.mrb[34].mxu1 %vm71_vm1, %v14896_v53  ;;  %5258 = vmatprep.mubr.f32.mxu0 %v16919_v42  ;;  %v13725_v53 = vld [vmem:[%s16807_s0 + $0x8] sm:$0xff] }
 0x47c   :  { %5347 = vmatprep.mubr.f32.mxu1 %v16919_v42  ;;  %12466 = vmatprep.subr.msk.mxu0 %vm84_vm0, %v16922_v44  ;;  %v15294_v44 = vld [vmem:[%s16808_s1] sm:$0xff] }
 0x47d   :  { %12472 = vmatprep.subr.msk.mxu1 %vm84_vm0, %v16923_v24  ;;  %12467 = vmatpush1.msk.msra.mxu0 %vm84_vm0, %v13724_v13  ;;  %v15305_v24 = vld [vmem:[%s16808_s1 + $0x8] sm:$0xff] }
 0x47e   :  { %12457 = vmatmul.mubr.msk.f32.gmra.mrb[36].mxu0 %vm71_vm1, %v14907_v54  ;;  %12473 = vmatpush1.msk.msra.mxu1 %vm84_vm0, %v13725_v53 }
 0x47f   :  { %12463 = vmatmul.mubr.msk.f32.gmra.mrb[36].mxu1 %vm71_vm1, %v14907_v54  ;;  %5264 = vmatprep.mubr.f32.mxu0 %v16919_v42  ;;  %v15419_v54 = vld [vmem:[%s16808_s1 + $0x70] sm:$0xff] }
 0x480   :  { %5353 = vmatprep.mubr.f32.mxu1 %v16919_v42  ;;  %12478 = vmatprep.subr.msk.mxu0 %vm84_vm0, %v14198_v47 }
 0x481   :  { %12484 = vmatprep.subr.msk.mxu1 %vm84_vm0, %v14202_v48 }
 0x482   :  { %12458 = vmatmul.mubr.msk.f32.gmra.mrb[38].mxu0 %vm71_vm1, %v14936_v58 }
 0x483   :  { %12464 = vmatmul.mubr.msk.f32.gmra.mrb[38].mxu1 %vm71_vm1, %v14936_v58  ;;  %5270 = vmatprep.mubr.f32.mxu0 %v16919_v42  ;;  %v15454_v58 = vld [vmem:[%s16807_s0 + $0x58] sm:$0xff] }
 0x484   :  { %5359 = vmatprep.mubr.f32.mxu1 %v16919_v42 }
 0x486   :  { %12459 = vmatmul.mubr.msk.f32.gmra.mrb[40].mxu0 %vm71_vm1, %v14947_v40 }
 0x487   :  { %12465 = vmatmul.mubr.msk.f32.gmra.mrb[40].mxu1 %vm71_vm1, %v14947_v40  ;;  %5442 = vmatprep.mubr.f32.mxu0 %v16919_v42  ;;  %v16944_v40 = vld [vmem:[#allocation19_spill] sm:$0xff] }
 0x488   :  { %5531 = vmatprep.mubr.f32.mxu1 %v16919_v42  ;;  %16955 = vst [vmem:[#allocation19_spill] sm:$0xff] %v15563_v16 }
 0x48a   :  { %12468 = vmatmul.mubr.msk.f32.vlgmr.msra.gmra.mrb[34].mxu0 %vm71_vm1, %v15294_v44 }
 0x48b   :  { %12474 = vmatmul.mubr.msk.f32.vlgmr.msra.gmra.mrb[34].mxu1 %vm71_vm1, %v15294_v44  ;;  %5448 = vmatprep.mubr.f32.mxu0 %v16919_v42 }
 0x48c   :  { %5537 = vmatprep.mubr.f32.mxu1 %v16919_v42  ;;  %12479 = vmatpush1.msk.msra.mxu0 %vm84_vm0, %v14810_v33  ;;  %v15324_v33 = vld [vmem:[%s16808_s1 + $0x10] sm:$0xff] }
 0x48d   :  { %12485 = vmatpush1.msk.msra.mxu1 %vm84_vm0, %v14816_v6  ;;  %12490 = vmatprep.subr.msk.mxu0 %vm84_vm0, %v16924_v50  ;;  %v15335_v6 = vld [vmem:[%s16808_s1 + $0x18] sm:$0xff] }
 0x48e   :  { %12469 = vmatmul.mubr.msk.f32.gmra.mrb[36].mxu0 %vm71_vm1, %v15305_v24  ;;  %12496 = vmatprep.subr.msk.mxu1 %vm84_vm0, %v16925_v11 }
 0x48f   :  { %12475 = vmatmul.mubr.msk.f32.gmra.mrb[36].mxu1 %vm71_vm1, %v15305_v24  ;;  %5454 = vmatprep.mubr.f32.mxu0 %v16919_v42 }
 0x490   :  { %5543 = vmatprep.mubr.f32.mxu1 %v16919_v42 }
 0x492   :  { %12470 = vmatmul.mubr.msk.f32.gmra.mrb[38].mxu0 %vm71_vm1, %v15324_v33 }
 0x493   :  { %12476 = vmatmul.mubr.msk.f32.gmra.mrb[38].mxu1 %vm71_vm1, %v15324_v33  ;;  %5460 = vmatprep.mubr.f32.mxu0 %v16919_v42 }
 0x494   :  { %5549 = vmatprep.mubr.f32.mxu1 %v16919_v42 }
 0x496   :  { %12471 = vmatmul.mubr.msk.f32.gmra.mrb[40].mxu0 %vm71_vm1, %v15335_v6 }
 0x497   :  { %12477 = vmatmul.mubr.msk.f32.gmra.mrb[40].mxu1 %vm71_vm1, %v15335_v6  ;;  %5620 = vmatprep.mubr.f32.mxu0 %v16919_v42 }
 0x498   :  { %5709 = vmatprep.mubr.f32.mxu1 %v16919_v42 }
 0x49a   :  { %12480 = vmatmul.mubr.msk.f32.vlgmr.msra.gmra.mrb[34].mxu0 %vm71_vm1, %v14833_v39 }
 0x49b   :  { %12486 = vmatmul.mubr.msk.f32.vlgmr.msra.gmra.mrb[34].mxu1 %vm71_vm1, %v14833_v39  ;;  %5626 = vmatprep.mubr.f32.mxu0 %v16919_v42  ;;  %v15379_v39 = vld [vmem:[%s16808_s1 + $0x60] sm:$0xff] }
 0x49c   :  { %5715 = vmatprep.mubr.f32.mxu1 %v16919_v42  ;;  %12491 = vmatpush1.msk.msra.mxu0 %vm84_vm0, %v14913_v51  ;;  %v15430_v51 = vld [vmem:[%s16808_s1 + $0x78] sm:$0xff] }
 0x49d   :  { %12497 = vmatpush1.msk.msra.mxu1 %vm84_vm0, %v14920_v55  ;;  %12502 = vmatprep.subr.msk.mxu0 %vm84_vm0, %v14014_v26  ;;  %v15447_v55 = vld [vmem:[%s16807_s0 + $0x50] sm:$0xff] }
 0x49e   :  { %12481 = vmatmul.mubr.msk.f32.gmra.mrb[36].mxu0 %vm71_vm1, %v14851_v46  ;;  %12508 = vmatprep.subr.msk.mxu1 %vm84_vm0, %v14018_v27 }
 0x49f   :  { %12487 = vmatmul.mubr.msk.f32.gmra.mrb[36].mxu1 %vm71_vm1, %v14851_v46  ;;  %5632 = vmatprep.mubr.f32.mxu0 %v16919_v42  ;;  %v15390_v46 = vld [vmem:[%s16807_s0 + $0x40] sm:$0xff] }
 0x4a0   :  { %5721 = vmatprep.mubr.f32.mxu1 %v16919_v42 }
 0x4a2   :  { %12482 = vmatmul.mubr.msk.f32.gmra.mrb[38].mxu0 %vm71_vm1, %v14870_v49 }
 0x4a3   :  { %12488 = vmatmul.mubr.msk.f32.gmra.mrb[38].mxu1 %vm71_vm1, %v14870_v49  ;;  %5638 = vmatprep.mubr.f32.mxu0 %v16919_v42  ;;  %v15397_v49 = vld [vmem:[%s16807_s0 + $0x48] sm:$0xff] }
 0x4a4   :  { %5727 = vmatprep.mubr.f32.mxu1 %v16919_v42 }
 0x4a6   :  { %12483 = vmatmul.mubr.msk.f32.gmra.mrb[40].mxu0 %vm71_vm1, %v14885_v5 }
 0x4a7   :  { %12489 = vmatmul.mubr.msk.f32.gmra.mrb[40].mxu1 %vm71_vm1, %v14885_v5  ;;  %5814 = vmatprep.mubr.f32.mxu0 %v16919_v42  ;;  %v15406_v5 = vld [vmem:[%s16808_s1 + $0x68] sm:$0xff] }
 0x4a8   :  { %5903 = vmatprep.mubr.f32.mxu1 %v16919_v42 }
 0x4aa   :  { %12492 = vmatmul.mubr.msk.f32.vlgmr.msra.gmra.mrb[34].mxu0 %vm71_vm1, %v15379_v39 }
 0x4ab   :  { %12498 = vmatmul.mubr.msk.f32.vlgmr.msra.gmra.mrb[34].mxu1 %vm71_vm1, %v15379_v39  ;;  %5820 = vmatprep.mubr.f32.mxu0 %v16919_v42 }
 0x4ac   :  { %5909 = vmatprep.mubr.f32.mxu1 %v16919_v42  ;;  %12503 = vmatpush1.msk.msra.mxu0 %vm84_vm0, %v15390_v46 }
 0x4ad   :  { %12509 = vmatpush1.msk.msra.mxu1 %vm84_vm0, %v15397_v49  ;;  %12514 = vmatprep.subr.msk.mxu0 %vm84_vm0, %v14337_v56 }
 0x4ae   :  { %12493 = vmatmul.mubr.msk.f32.gmra.mrb[36].mxu0 %vm71_vm1, %v15406_v5  ;;  %12520 = vmatprep.subr.msk.mxu1 %vm84_vm0, %v14341_v57 }
 0x4af   :  { %12499 = vmatmul.mubr.msk.f32.gmra.mrb[36].mxu1 %vm71_vm1, %v15406_v5  ;;  %5826 = vmatprep.mubr.f32.mxu0 %v16919_v42 }
 0x4b0   :  { %5915 = vmatprep.mubr.f32.mxu1 %v16919_v42 }
 0x4b2   :  { %12494 = vmatmul.mubr.msk.f32.gmra.mrb[38].mxu0 %vm71_vm1, %v15419_v54 }
 0x4b3   :  { %12500 = vmatmul.mubr.msk.f32.gmra.mrb[38].mxu1 %vm71_vm1, %v15419_v54  ;;  %5832 = vmatprep.mubr.f32.mxu0 %v16919_v42 }
 0x4b4   :  { %5921 = vmatprep.mubr.f32.mxu1 %v16919_v42 }
 0x4b6   :  { %12495 = vmatmul.mubr.msk.f32.gmra.mrb[40].mxu0 %vm71_vm1, %v15430_v51 }
 0x4b7   :  { %12501 = vmatmul.mubr.msk.f32.gmra.mrb[40].mxu1 %vm71_vm1, %v15430_v51  ;;  %6008 = vmatprep.mubr.f32.mxu0 %v16919_v42 }
 0x4b8   :  { %6097 = vmatprep.mubr.f32.mxu1 %v16919_v42 }
 0x4ba   :  { %12504 = vmatmul.mubr.msk.f32.vlgmr.msra.gmra.mrb[34].mxu0 %vm71_vm1, %v14973_v62 }
 0x4bb   :  { %12510 = vmatmul.mubr.msk.f32.vlgmr.msra.gmra.mrb[34].mxu1 %vm71_vm1, %v14973_v62  ;;  %6014 = vmatprep.mubr.f32.mxu0 %v16919_v42  ;;  %v16945_v62 = vld [vmem:[#allocation23_spill] sm:$0xff] }
 0x4bc   :  { %6103 = vmatprep.mubr.f32.mxu1 %v16919_v42  ;;  %12515 = vmatpush1.msk.msra.mxu0 %vm84_vm0, %v15447_v55  ;;  %16956 = vst [vmem:[#allocation23_spill] sm:$0xff] %v15574_v63 }
 0x4bd   :  { %12521 = vmatpush1.msk.msra.mxu1 %vm84_vm0, %v15454_v58  ;;  %12526 = vmatprep.subr.msk.mxu0 %vm84_vm0, %v14968_v10  ;;  %v16967_v10 = vld [vmem:[#allocation14_spill] sm:$0xff] }
 0x4be   :  { %12505 = vmatmul.mubr.msk.f32.gmra.mrb[36].mxu0 %vm71_vm1, %v14994_v30  ;;  %12532 = vmatprep.subr.msk.mxu1 %vm84_vm0, %v14979_v36 }
 0x4bf   :  { %12511 = vmatmul.mubr.msk.f32.gmra.mrb[36].mxu1 %vm71_vm1, %v14994_v30  ;;  %6020 = vmatprep.mubr.f32.mxu0 %v16919_v42  ;;  %v16946_v30 = vld [vmem:[#allocation6_spill] sm:$0xff] }
 0x4c0   :  { %6109 = vmatprep.mubr.f32.mxu1 %v16919_v42  ;;  %16957 = vst [vmem:[#allocation6_spill] sm:$0xff] %v15585_v38 }
 0x4c2   :  { %12506 = vmatmul.mubr.msk.f32.gmra.mrb[38].mxu0 %vm71_vm1, %v15007_v25 }
 0x4c3   :  { %12512 = vmatmul.mubr.msk.f32.gmra.mrb[38].mxu1 %vm71_vm1, %v15007_v25  ;;  %6026 = vmatprep.mubr.f32.mxu0 %v16919_v42  ;;  %v16947_v25 = vld [vmem:[#allocation7_spill] sm:$0xff] }
 0x4c4   :  { %6115 = vmatprep.mubr.f32.mxu1 %v16919_v42  ;;  %16958 = vst [vmem:[#allocation7_spill] sm:$0xff] %v15600_v20 }
 0x4c6   :  { %12507 = vmatmul.mubr.msk.f32.gmra.mrb[40].mxu0 %vm71_vm1, %v16944_v40 }
 0x4c7   :  { %12513 = vmatmul.mubr.msk.f32.gmra.mrb[40].mxu1 %vm71_vm1, %v16944_v40  ;;  %6202 = vmatprep.mubr.f32.mxu0 %v16919_v42 }
 0x4c8   :  { %6291 = vmatprep.mubr.f32.mxu1 %v16919_v42 }
 0x4ca   :  { %12516 = vmatmul.mubr.msk.f32.vlgmr.msra.gmra.mrb[34].mxu0 %vm71_vm1, %v16945_v62 }
 0x4cb   :  { %12522 = vmatmul.mubr.msk.f32.vlgmr.msra.gmra.mrb[34].mxu1 %vm71_vm1, %v16945_v62  ;;  %6208 = vmatprep.mubr.f32.mxu0 %v16919_v42  ;;  %v16965_v62 = vld [vmem:[#allocation10_spill] sm:$0xff] }
 0x4cc   :  { %6297 = vmatprep.mubr.f32.mxu1 %v16919_v42  ;;  %12527 = vmatpush1.msk.msra.mxu0 %vm84_vm0, %v16946_v30 }
 0x4cd   :  { %12533 = vmatpush1.msk.msra.mxu1 %vm84_vm0, %v16947_v25  ;;  %12538 = vmatprep.subr.msk.mxu0 %vm84_vm0, %v16948_v1 }
 0x4ce   :  { %12517 = vmatmul.mubr.msk.f32.gmra.mrb[36].mxu0 %vm71_vm1, %v16949_v15  ;;  %12544 = vmatprep.subr.msk.mxu1 %vm84_vm0, %v16950_v35 }
 0x4cf   :  { %12523 = vmatmul.mubr.msk.f32.gmra.mrb[36].mxu1 %vm71_vm1, %v16949_v15  ;;  %6214 = vmatprep.mubr.f32.mxu0 %v16919_v42 }
 0x4d0   :  { %6303 = vmatprep.mubr.f32.mxu1 %v16919_v42 }
 0x4d2   :  { %12518 = vmatmul.mubr.msk.f32.gmra.mrb[38].mxu0 %vm71_vm1, %v16951_v60 }
 0x4d3   :  { %12524 = vmatmul.mubr.msk.f32.gmra.mrb[38].mxu1 %vm71_vm1, %v16951_v60  ;;  %6220 = vmatprep.mubr.f32.mxu0 %v16919_v42 }
 0x4d4   :  { %6309 = vmatprep.mubr.f32.mxu1 %v16919_v42 }
 0x4d6   :  { %12519 = vmatmul.mubr.msk.f32.gmra.mrb[40].mxu0 %vm71_vm1, %v16952_v17 }
 0x4d7   :  { %12525 = vmatmul.mubr.msk.f32.gmra.mrb[40].mxu1 %vm71_vm1, %v16952_v17  ;;  %6396 = vmatprep.mubr.f32.mxu0 %v16919_v42 }
 0x4d8   :  { %6485 = vmatprep.mubr.f32.mxu1 %v16919_v42 }
 0x4da   :  { %12528 = vmatmul.mubr.msk.f32.vlgmr.msra.gmra.mrb[34].mxu0 %vm71_vm1, %v15529_v14 }
 0x4db   :  { %12534 = vmatmul.mubr.msk.f32.vlgmr.msra.gmra.mrb[34].mxu1 %vm71_vm1, %v15529_v14  ;;  %6402 = vmatprep.mubr.f32.mxu0 %v16919_v42 }
 0x4dc   :  { %6491 = vmatprep.mubr.f32.mxu1 %v16919_v42  ;;  %12539 = vmatpush1.msk.msra.mxu0 %vm84_vm0, %v16953_v61  ;;  %v16966_v61 = vld [vmem:[#allocation12_spill] sm:$0xff] }
 0x4dd   :  { %12545 = vmatpush1.msk.msra.mxu1 %vm84_vm0, %v16954_v22  ;;  %12550 = vmatprep.subr.msk.mxu0 %vm84_vm0, %v15524_v8 }
 0x4de   :  { %12529 = vmatmul.mubr.msk.f32.gmra.mrb[36].mxu0 %vm71_vm1, %v15550_v12  ;;  %12556 = vmatprep.subr.msk.mxu1 %vm84_vm0, %v15535_v37 }
 0x4df   :  { %12535 = vmatmul.mubr.msk.f32.gmra.mrb[36].mxu1 %vm71_vm1, %v15550_v12  ;;  %6408 = vmatprep.mubr.f32.mxu0 %v16919_v42 }
 0x4e0   :  { %6497 = vmatprep.mubr.f32.mxu1 %v16919_v42 }
 0x4e2   :  { %12530 = vmatmul.mubr.msk.f32.gmra.mrb[38].mxu0 %vm71_vm1, %v15563_v16 }
 0x4e3   :  { %12536 = vmatmul.mubr.msk.f32.gmra.mrb[38].mxu1 %vm71_vm1, %v15563_v16  ;;  %6414 = vmatprep.mubr.f32.mxu0 %v16919_v42 }
 0x4e4   :  { %6503 = vmatprep.mubr.f32.mxu1 %v16919_v42 }
 0x4e6   :  { %12531 = vmatmul.mubr.msk.f32.gmra.mrb[40].mxu0 %vm71_vm1, %v15574_v63 }
 0x4e7   :  { %12537 = vmatmul.mubr.msk.f32.gmra.mrb[40].mxu1 %vm71_vm1, %v15574_v63  ;;  %6590 = vmatprep.mubr.f32.mxu0 %v16919_v42  ;;  %v16969_v63 = vld [vmem:[#allocation16_spill] sm:$0xff] }
 0x4e8   :  { %6679 = vmatprep.mubr.f32.mxu1 %v16919_v42 }
 0x4ea   :  { %12540 = vmatmul.mubr.msk.f32.vlgmr.msra.gmra.mrb[34].mxu0 %vm71_vm1, %v15585_v38 }
 0x4eb   :  { %12546 = vmatmul.mubr.msk.f32.vlgmr.msra.gmra.mrb[34].mxu1 %vm71_vm1, %v15585_v38  ;;  %6596 = vmatprep.mubr.f32.mxu0 %v16919_v42 }
 0x4ec   :  { %6685 = vmatprep.mubr.f32.mxu1 %v16919_v42  ;;  %12551 = vmatpush1.msk.msra.mxu0 %vm84_vm0, %v15511_v43 }
 0x4ed   :  { %12557 = vmatpush1.msk.msra.mxu1 %vm84_vm0, %v15519_v41 }
 0x4ee   :  { %12541 = vmatmul.mubr.msk.f32.gmra.mrb[36].mxu0 %vm71_vm1, %v15600_v20 }
 0x4ef   :  { %12547 = vmatmul.mubr.msk.f32.gmra.mrb[36].mxu1 %vm71_vm1, %v15600_v20  ;;  %6602 = vmatprep.mubr.f32.mxu0 %v16919_v42 }
 0x4f0   :  { %6691 = vmatprep.mubr.f32.mxu1 %v16919_v42 }
 0x4f2   :  { %12542 = vmatmul.mubr.msk.f32.gmra.mrb[38].mxu0 %vm71_vm1, %v15611_v23 }
 0x4f3   :  { %12548 = vmatmul.mubr.msk.f32.gmra.mrb[38].mxu1 %vm71_vm1, %v15611_v23  ;;  %6608 = vmatprep.mubr.f32.mxu0 %v16919_v42  ;;  %v16968_v23 = vld [vmem:[#allocation11_spill] sm:$0xff] }
 0x4f4   :  { %6697 = vmatprep.mubr.f32.mxu1 %v16919_v42 }
 0x4f6   :  { %12543 = vmatmul.mubr.msk.f32.gmra.mrb[40].mxu0 %vm71_vm1, %v16960_v52 }
 0x4f7   :  { %12549 = vmatmul.mubr.msk.f32.gmra.mrb[40].mxu1 %vm71_vm1, %v16960_v52  ;;  %6796 = vmatprep.mubr.f32.mxu0 %v16919_v42 }
 0x4f8   :  { %6885 = vmatprep.mubr.f32.mxu1 %v16919_v42 }
 0x4fa   :  { %12552 = vmatmul.mubr.msk.f32.vlgmr.msra.gmra.mrb[34].mxu0 %vm71_vm1, %v16961_v59 }
 0x4fb   :  { %12558 = vmatmul.mubr.msk.f32.vlgmr.msra.gmra.mrb[34].mxu1 %vm71_vm1, %v16961_v59  ;;  %6802 = vmatprep.mubr.f32.mxu0 %v16919_v42 }
 0x4fc   :  { %6891 = vmatprep.mubr.f32.mxu1 %v16919_v42 }
 0x4fe   :  { %12553 = vmatmul.mubr.msk.f32.gmra.mrb[36].mxu0 %vm71_vm1, %v16962_v7 }
 0x4ff   :  { %12559 = vmatmul.mubr.msk.f32.gmra.mrb[36].mxu1 %vm71_vm1, %v16962_v7  ;;  %6808 = vmatprep.mubr.f32.mxu0 %v16919_v42 }
 0x500   :  { %6897 = vmatprep.mubr.f32.mxu1 %v16919_v42 }
 0x502   :  { %12554 = vmatmul.mubr.msk.f32.gmra.mrb[38].mxu0 %vm71_vm1, %v16963_v32 }
 0x503   :  { %12560 = vmatmul.mubr.msk.f32.gmra.mrb[38].mxu1 %vm71_vm1, %v16963_v32  ;;  %6814 = vmatprep.mubr.f32.mxu0 %v16919_v42 }
 0x504   :  { %6903 = vmatprep.mubr.f32.mxu1 %v16919_v42 }
 0x506   :  { %12555 = vmatmul.mubr.msk.f32.gmra.mrb[40].mxu0 %vm71_vm1, %v16964_v31 }
 0x507   :  { %12561 = vmatmul.mubr.msk.f32.gmra.mrb[40].mxu1 %vm71_vm1, %v16964_v31  ;;  %7117 = vmatprep.mubr.f32.mxu0 %v16919_v42 }
 0x508   :  { %7188 = vmatprep.mubr.f32.mxu1 %v16919_v42 }
 0x5cd   :  { %v6798_v9 = vpop.f32.mrb[34].mxu0 }
 0x5ce   :  { %v6887_v13 = vpop.f32.mrb[34].mxu1  ;;  %v6800_v53 = vpop.f32.mrb[35].mxu0  ;;  %v6926_v30 = vadd.f32 %v6798_v9, %v16965_v62 }
 0x5cf   :  { %v6889_v40 = vpop.f32.mrb[35].mxu1  ;;  %v6928_v25 = vadd.f32 %v6887_v13, %v16965_v62  ;;  %v6927_v15 = vadd.f32 %v6800_v53, %v16965_v62 }
 0x5d0   :  { %v6929_v17 = vadd.f32 %v6889_v40, %v16965_v62  ;;  %v6942_v36 = vmul.f32 %v6926_v30, %v14448_v0 }
 0x5d1   :  { %v6804_v60 = vpop.f32.mrb[36].mxu0  ;;  %v6944_v53 = vmul.f32 %v6928_v25, %v14448_v0  ;;  %v6943_v11 = vmul.f32 %v6927_v15, %v14448_v0 }
 0x5d2   :  { %v6930_v22 = vadd.f32 %v6804_v60, %v16966_v61  ;;  %v6893_v52 = vpop.f32.mrb[36].mxu1  ;;  %v6806_v59 = vpop.f32.mrb[37].mxu0 }
 0x5d3   :  { %v6932_v7 = vadd.f32 %v6893_v52, %v16966_v61  ;;  %v6931_v32 = vadd.f32 %v6806_v59, %v16966_v61  ;;  %v6895_v31 = vpop.f32.mrb[37].mxu1  ;;  %v6945_v52 = vmul.f32 %v6929_v17, %v14448_v0 }
 0x5d4   :  { %v6946_v9 = vmul.f32 %v6930_v22, %v16967_v10  ;;  %v6933_v13 = vadd.f32 %v6895_v31, %v16966_v61 }
 0x5d5   :  { %v6948_v40 = vmul.f32 %v6932_v7, %v16967_v10  ;;  %v6947_v60 = vmul.f32 %v6931_v32, %v16967_v10  ;;  %v6810_v50 = vpop.f32.mrb[38].mxu0 }
 0x5d6   :  { %v6958_v62 = vadd.f32 %v6946_v9, %v6942_v36  ;;  %v6949_v59 = vmul.f32 %v6933_v13, %v16967_v10  ;;  %v6934_v30 = vadd.f32 %v6810_v50, %v16968_v23  ;;  %v6899_v20 = vpop.f32.mrb[38].mxu1  ;;  %v6812_v22 = vpop.f32.mrb[39].mxu0 }
 0x5d7   :  { %v6976_v38 = vadd.f32 %v6948_v40, %v6944_v53  ;;  %v6967_v31 = vadd.f32 %v6947_v60, %v6943_v11  ;;  %v6936_v25 = vadd.f32 %v6899_v20, %v16968_v23  ;;  %v6935_v15 = vadd.f32 %v6812_v22, %v16968_v23  ;;  %v6901_v61 = vpop.f32.mrb[39].mxu1  ;;  %v16970_v53 = vld [vmem:[#allocation15_spill] sm:$0xff] }
 0x5d8   :  { %v6985_v7 = vadd.f32 %v6949_v59, %v6945_v52  ;;  %v6950_v32 = vmul.f32 %v6934_v30, %v16969_v63  ;;  %v6937_v16 = vadd.f32 %v6901_v61, %v16968_v23 }
 0x5d9   :  { %v6952_v36 = vmul.f32 %v6936_v25, %v16969_v63  ;;  %v6951_v17 = vmul.f32 %v6935_v15, %v16969_v63  ;;  %v6816_v9 = vpop.f32.mrb[40].mxu0 }
 0x5da   :  { %v6959_v50 = vadd.f32 %v6958_v62, %v6950_v32  ;;  %v6953_v13 = vmul.f32 %v6937_v16, %v16969_v63  ;;  %v6938_v11 = vadd.f32 %v6816_v9, %v16970_v53  ;;  %v6905_v40 = vpop.f32.mrb[40].mxu1  ;;  %v6818_v20 = vpop.f32.mrb[41].mxu0 }
 0x5db   :  { %v6977_v60 = vadd.f32 %v6976_v38, %v6952_v36  ;;  %v6968_v22 = vadd.f32 %v6967_v31, %v6951_v17  ;;  %v6940_v52 = vadd.f32 %v6905_v40, %v16970_v53  ;;  %v6939_v59 = vadd.f32 %v6818_v20, %v16970_v53  ;;  %v6907_v30 = vpop.f32.mrb[41].mxu1 }
 0x5dc   :  { %v6986_v61 = vadd.f32 %v6985_v7, %v6953_v13  ;;  %v6954_v25 = vmul.f32 %v6938_v11, %v14476_v21  ;;  %v6941_v15 = vadd.f32 %v6907_v30, %v16970_v53 }
 0x5dd   :  { %v6956_v62 = vmul.f32 %v6940_v52, %v14476_v21  ;;  %v6955_v16 = vmul.f32 %v6939_v59, %v14476_v21 }
 0x5de   :  { %v6960_v32 = vadd.f32 %v6959_v50, %v6954_v25  ;;  %v6957_v9 = vmul.f32 %v6941_v15, %v14476_v21 }
 0x5df   :  { %v6978_v63 = vadd.f32 %v6977_v60, %v6956_v62  ;;  %v6969_v38 = vadd.f32 %v6968_v22, %v6955_v16 }
 0x5e0   :  { %v6961_v31 = vrot.slane %v6960_v32, 4  ;;  %v6987_v36 = vadd.f32 %v6986_v61, %v6957_v9 }
 0x5e1   :  { %v6979_v17 = vrot.slane %v6978_v63, 4  ;;  %v6970_v40 = vrot.slane %v6969_v38, 4 }
 0x5e2   :  { %v6962_v20 = vadd.f32 %v6961_v31, %v6960_v32  ;;  %v6988_v23 = vrot.slane %v6987_v36, 4 }
 0x5e3   :  { %v6980_v7 = vadd.f32 %v6979_v17, %v6978_v63  ;;  %v6971_v13 = vadd.f32 %v6970_v40, %v6969_v38 }
 0x5e4   :  { %v6963_v11 = vrot.slane %v6962_v20, 2  ;;  %v6989_v10 = vadd.f32 %v6988_v23, %v6987_v36 }
 0x5e5   :  { %v6981_v30 = vrot.slane %v6980_v7, 2  ;;  %v6972_v53 = vrot.slane %v6971_v13, 2 }
 0x5e6   :  { %v6964_v52 = vadd.f32 %v6963_v11, %v6962_v20  ;;  %v6990_v0 = vrot.slane %v6989_v10, 2 }
 0x5e7   :  { %v6982_v59 = vadd.f32 %v6981_v30, %v6980_v7  ;;  %v6973_v50 = vadd.f32 %v6972_v53, %v6971_v13 }
 0x5e8   :  { %v6965_v25 = vrot.slane %v6964_v52, 1  ;;  %v6991_v15 = vadd.f32 %v6990_v0, %v6989_v10 }
 0x5e9   :  { %v6983_v60 = vrot.slane %v6982_v59, 1  ;;  %v6974_v22 = vrot.slane %v6973_v50, 1 }
 0x5ea   :  { %v6966_v62 = vadd.f32 %v6965_v25, %v6964_v52  ;;  %v6992_v61 = vrot.slane %v6991_v15, 1 }
 0x5eb   :  { %v6984_v16 = vadd.f32 %v6983_v60, %v6982_v59  ;;  %v6975_v9 = vadd.f32 %v6974_v22, %v6973_v50 }
 0x5ec   :  { %v6994_v32 = vadd.f32 %v6966_v62, %v14492_v18  ;;  %v6993_v63 = vadd.f32 %v6992_v61, %v6991_v15 }
 0x5ed   :  { %v6996_v38 = vadd.f32 %v6984_v16, %v14492_v18  ;;  %v6995_v23 = vadd.f32 %v6975_v9, %v14492_v18 }
 0x5ee   :  { %v12562_v31 = vmul.f32 -1.442695, %v6994_v32  ;;  %v6997_v36 = vadd.f32 %v6993_v63, %v14492_v18 }
 0x5ef   :  { %v12564_v17 = vmul.f32 -1.442695, %v6996_v38  ;;  %v12563_v53 = vmul.f32 -1.442695, %v6995_v23 }
 0x5f0   :  { %13616 = vpow2.f32 %v12562_v31  ;;  %v12565_v0 = vmul.f32 -1.442695, %v6997_v36 }
 0x5f1   :  { %13618 = vpow2.f32 %v12564_v17  ;;  %v12566_v17 = vld [vmem:[%s16812_s5 + $0x10] sm:$0xf] }
 0x5f2   :  { %13620 = vpow2.f32 %v12563_v53 }
 0x5f3   :  { %13622 = vpow2.f32 %v12565_v0 }
 0x5fa   :  { %v13617_v10 = vpop.eup %13616 }
 0x5fb   :  { %v13619_v40 = vpop.eup %13618  ;;  %v7010_v20 = vadd.f32 1.0, %v13617_v10  ;;  %v16977_v10 = vld [vmem:[#allocation10_spill] sm:$0xff] }
 0x5fc   :  { %v13621_v7 = vpop.eup %13620  ;;  %v7012_v13 = vadd.f32 1.0, %v13619_v40 }
 0x5fd   :  { %v13623_v11 = vpop.eup %13622  ;;  %13624 = vrcp.f32 %v7010_v20  ;;  %v7011_v30 = vadd.f32 1.0, %v13621_v7 }
 0x5fe   :  { %13626 = vrcp.f32 %v7012_v13  ;;  %v7013_v52 = vadd.f32 1.0, %v13623_v11 }
 0x5ff   :  { %13628 = vrcp.f32 %v7011_v30  ;;  %v16978_v30 = vld [vmem:[#allocation12_spill] sm:$0xff] }
 0x600   :  { %13630 = vrcp.f32 %v7013_v52 }
 0x607   :  { %v13625_v59 = vpop.eup %13624 }
 0x608   :  { %v13627_v50 = vpop.eup %13626  ;;  %v15687_v25 = vsel %vm84_vm0, %v15210_v29, %v13625_v59  ;;  %v7022_v15 = vadd.f32 1.0, %v13625_v59 }
 0x609   :  { %v13629_v60 = vpop.eup %13628  ;;  %v15691_v22 = vsel %vm84_vm0, %v15213_v34, %v13627_v50  ;;  %v7024_v62 = vadd.f32 1.0, %v13627_v50 }
 0x60a   :  { %v13631_v61 = vpop.eup %13630  ;;  %v15695_v16 = vsel %vm84_vm0, %v15216_v28, %v13629_v60  ;;  %v7023_v9 = vadd.f32 1.0, %v13629_v60  ;;  %v13741_v28 = vld [vmem:[%s16807_s0 + $0x20] sm:$0xff] }
 0x60b   :  { %v15699_v32 = vsel %vm84_vm0, %v15219_v45, %v13631_v61  ;;  %v7025_v63 = vadd.f32 1.0, %v13631_v61  ;;  %v13742_v45 = vld [vmem:[%s16807_s0 + $0x28] sm:$0xff] }
 0x60c   :  { %v7030_v29 = vcombine.low %v7022_v15, %v7023_v9  ;;  %v16979_v61 = vld [vmem:[#allocation13_spill] sm:$0xff] }
 0x60d   :  { %v7031_v38 = vcombine.low %v7024_v62, %v7025_v63  ;;  %v16980_v63 = vld [vmem:[#allocation14_spill] sm:$0xff] }
 0x60e   :  { %v7034_v23 = vmul.f32 %v15390_v46, %v7030_v29 }
 0x60f   :  { %v7035_v31 = vmul.f32 %v15397_v49, %v7031_v38 }
 0x610   :  { %v7040_v34 = vcombine.high %v7034_v23, %v7034_v23 }
 0x611   :  { %v7041_v36 = vcombine.high %v7035_v31, %v7035_v31 }
 0x612   :  { %12567 = vmatprep.subr.msk.mxu0 %vm84_vm0, %v7040_v34 }
 0x613   :  { %12570 = vmatprep.subr.msk.mxu1 %vm84_vm0, %v7041_v36  ;;  %12568 = vmatpush1.msk.msra.mxu0 %vm84_vm0, %v7034_v23 }
 0x614   :  { %12571 = vmatpush1.msk.msra.mxu1 %vm84_vm0, %v7035_v31  ;;  %12569 = vmatmul.mubr.msk.f32.vlgmr.msra.gmra.mrb[16].mxu0 %vm71_vm1, %v12566_v17 }
 0x615   :  { %12572 = vmatmul.mubr.msk.f32.vlgmr.msra.gmra.mrb[16].mxu1 %vm71_vm1, %v12566_v17  ;;  %12573 = vmatprep.subr.msk.mxu0 %vm84_vm0, %v14198_v47  ;;  %v15729_v47 = vld [vmem:[%s16808_s1 + $0x20] sm:$0xff] }
 0x616   :  { %12579 = vmatprep.subr.msk.mxu1 %vm84_vm0, %v14202_v48  ;;  %12574 = vmatpush1.msk.msra.mxu0 %vm84_vm0, %v13741_v28  ;;  %v15746_v48 = vld [vmem:[%s16808_s1 + $0x28] sm:$0xff] }
 0x617   :  { %7263 = vmatprep.mubr.f32.mxu0 %v16919_v42  ;;  %12580 = vmatpush1.msk.msra.mxu1 %vm84_vm0, %v13742_v45 }
 0x618   :  { %7352 = vmatprep.mubr.f32.mxu1 %v16919_v42  ;;  %12575 = vmatmul.mubr.msk.f32.vlgmr.msra.gmra.mrb[42].mxu0 %vm71_vm1, %v15729_v47 }
 0x619   :  { %12581 = vmatmul.mubr.msk.f32.vlgmr.msra.gmra.mrb[42].mxu1 %vm71_vm1, %v15729_v47  ;;  %7269 = vmatprep.mubr.f32.mxu0 %v16919_v42 }
 0x61a   :  { %7358 = vmatprep.mubr.f32.mxu1 %v16919_v42  ;;  %12585 = vmatprep.subr.msk.mxu0 %vm84_vm0, %v13877_v3  ;;  %v15763_v3 = vld [vmem:[%s16808_s1 + $0x30] sm:$0xff] }
 0x61b   :  { %12591 = vmatprep.subr.msk.mxu1 %vm84_vm0, %v13881_v4  ;;  %12586 = vmatpush1.msk.msra.mxu0 %vm84_vm0, %v15239_v19  ;;  %v15774_v4 = vld [vmem:[%s16808_s1 + $0x38] sm:$0xff]  ;;  %v15849_v19 = vld [vmem:[%s16808_s1 + $0x80] sm:$0xff] }
 0x61c   :  { %12576 = vmatmul.mubr.msk.f32.gmra.mrb[44].mxu0 %vm71_vm1, %v15746_v48  ;;  %12592 = vmatpush1.msk.msra.mxu1 %vm84_vm0, %v15247_v2  ;;  %v15860_v2 = vld [vmem:[%s16807_s0 + $0x70] sm:$0xff] }
 0x61d   :  { %12582 = vmatmul.mubr.msk.f32.gmra.mrb[44].mxu1 %vm71_vm1, %v15746_v48  ;;  %7275 = vmatprep.mubr.f32.mxu0 %v16919_v42 }
 0x61e   :  { %7364 = vmatprep.mubr.f32.mxu1 %v16919_v42  ;;  %12597 = vmatprep.subr.msk.mxu0 %vm84_vm0, %v14014_v26 }
 0x61f   :  { %12603 = vmatprep.subr.msk.mxu1 %vm84_vm0, %v14018_v27 }
 0x620   :  { %12577 = vmatmul.mubr.msk.f32.gmra.mrb[46].mxu0 %vm71_vm1, %v15763_v3 }
 0x621   :  { %12583 = vmatmul.mubr.msk.f32.gmra.mrb[46].mxu1 %vm71_vm1, %v15763_v3  ;;  %7281 = vmatprep.mubr.f32.mxu0 %v16919_v42 }
 0x622   :  { %7370 = vmatprep.mubr.f32.mxu1 %v16919_v42 }
 0x624   :  { %12578 = vmatmul.mubr.msk.f32.gmra.mrb[48].mxu0 %vm71_vm1, %v15774_v4 }
 0x625   :  { %12584 = vmatmul.mubr.msk.f32.gmra.mrb[48].mxu1 %vm71_vm1, %v15774_v4  ;;  %7441 = vmatprep.mubr.f32.mxu0 %v16919_v42 }
 0x626   :  { %7530 = vmatprep.mubr.f32.mxu1 %v16919_v42 }
 0x628   :  { %12587 = vmatmul.mubr.msk.f32.vlgmr.msra.gmra.mrb[42].mxu0 %vm71_vm1, %v15294_v44 }
 0x629   :  { %12593 = vmatmul.mubr.msk.f32.vlgmr.msra.gmra.mrb[42].mxu1 %vm71_vm1, %v15294_v44  ;;  %7447 = vmatprep.mubr.f32.mxu0 %v16919_v42  ;;  %v15867_v44 = vld [vmem:[%s16807_s0 + $0x78] sm:$0xff] }
 0x62a   :  { %7536 = vmatprep.mubr.f32.mxu1 %v16919_v42  ;;  %12598 = vmatpush1.msk.msra.mxu0 %vm84_vm0, %v15390_v46 }
 0x62b   :  { %12604 = vmatpush1.msk.msra.mxu1 %vm84_vm0, %v15397_v49  ;;  %12609 = vmatprep.subr.msk.mxu0 %vm84_vm0, %v14337_v56 }
 0x62c   :  { %12588 = vmatmul.mubr.msk.f32.gmra.mrb[44].mxu0 %vm71_vm1, %v15305_v24  ;;  %12615 = vmatprep.subr.msk.mxu1 %vm84_vm0, %v14341_v57 }
 0x62d   :  { %12594 = vmatmul.mubr.msk.f32.gmra.mrb[44].mxu1 %vm71_vm1, %v15305_v24  ;;  %7453 = vmatprep.mubr.f32.mxu0 %v16919_v42  ;;  %v15876_v24 = vld [vmem:[%s16808_s1 + $0x88] sm:$0xff] }
 0x62e   :  { %7542 = vmatprep.mubr.f32.mxu1 %v16919_v42 }
 0x630   :  { %12589 = vmatmul.mubr.msk.f32.gmra.mrb[46].mxu0 %vm71_vm1, %v15324_v33 }
 0x631   :  { %12595 = vmatmul.mubr.msk.f32.gmra.mrb[46].mxu1 %vm71_vm1, %v15324_v33  ;;  %7459 = vmatprep.mubr.f32.mxu0 %v16919_v42  ;;  %v15889_v33 = vld [vmem:[%s16808_s1 + $0x90] sm:$0xff] }
 0x632   :  { %7548 = vmatprep.mubr.f32.mxu1 %v16919_v42 }
 0x634   :  { %12590 = vmatmul.mubr.msk.f32.gmra.mrb[48].mxu0 %vm71_vm1, %v15335_v6 }
 0x635   :  { %12596 = vmatmul.mubr.msk.f32.gmra.mrb[48].mxu1 %vm71_vm1, %v15335_v6  ;;  %7619 = vmatprep.mubr.f32.mxu0 %v16919_v42  ;;  %v15900_v6 = vld [vmem:[%s16808_s1 + $0x98] sm:$0xff] }
 0x636   :  { %7708 = vmatprep.mubr.f32.mxu1 %v16919_v42  ;;  %16971 = vst [vmem:[#allocation25_spill] sm:$0xff] %v15900_v6 }
 0x638   :  { %12599 = vmatmul.mubr.msk.f32.vlgmr.msra.gmra.mrb[42].mxu0 %vm71_vm1, %v15379_v39 }
 0x639   :  { %12605 = vmatmul.mubr.msk.f32.vlgmr.msra.gmra.mrb[42].mxu1 %vm71_vm1, %v15379_v39  ;;  %7625 = vmatprep.mubr.f32.mxu0 %v16919_v42  ;;  %v16972_v39 = vld [vmem:[#allocation19_spill] sm:$0xff] }
 0x63a   :  { %7714 = vmatprep.mubr.f32.mxu1 %v16919_v42  ;;  %12610 = vmatpush1.msk.msra.mxu0 %vm84_vm0, %v15447_v55 }
 0x63b   :  { %12616 = vmatpush1.msk.msra.mxu1 %vm84_vm0, %v15454_v58  ;;  %12621 = vmatprep.subr.msk.mxu0 %vm84_vm0, %v16948_v1 }
 0x63c   :  { %12600 = vmatmul.mubr.msk.f32.gmra.mrb[44].mxu0 %vm71_vm1, %v15406_v5  ;;  %12627 = vmatprep.subr.msk.mxu1 %vm84_vm0, %v16950_v35 }
 0x63d   :  { %12606 = vmatmul.mubr.msk.f32.gmra.mrb[44].mxu1 %vm71_vm1, %v15406_v5  ;;  %7631 = vmatprep.mubr.f32.mxu0 %v16919_v42  ;;  %v16973_v5 = vld [vmem:[#allocation23_spill] sm:$0xff] }
 0x63e   :  { %7720 = vmatprep.mubr.f32.mxu1 %v16919_v42 }
 0x640   :  { %12601 = vmatmul.mubr.msk.f32.gmra.mrb[46].mxu0 %vm71_vm1, %v15419_v54 }
 0x641   :  { %12607 = vmatmul.mubr.msk.f32.gmra.mrb[46].mxu1 %vm71_vm1, %v15419_v54  ;;  %7637 = vmatprep.mubr.f32.mxu0 %v16919_v42  ;;  %v16974_v54 = vld [vmem:[#allocation6_spill] sm:$0xff] }
 0x642   :  { %7726 = vmatprep.mubr.f32.mxu1 %v16919_v42 }
 0x644   :  { %12602 = vmatmul.mubr.msk.f32.gmra.mrb[48].mxu0 %vm71_vm1, %v15430_v51 }
 0x645   :  { %12608 = vmatmul.mubr.msk.f32.gmra.mrb[48].mxu1 %vm71_vm1, %v15430_v51  ;;  %7813 = vmatprep.mubr.f32.mxu0 %v16919_v42  ;;  %v16975_v51 = vld [vmem:[#allocation7_spill] sm:$0xff] }
 0x646   :  { %7902 = vmatprep.mubr.f32.mxu1 %v16919_v42 }
 0x648   :  { %12611 = vmatmul.mubr.msk.f32.vlgmr.msra.gmra.mrb[42].mxu0 %vm71_vm1, %v15849_v19 }
 0x649   :  { %12617 = vmatmul.mubr.msk.f32.vlgmr.msra.gmra.mrb[42].mxu1 %vm71_vm1, %v15849_v19  ;;  %7819 = vmatprep.mubr.f32.mxu0 %v16919_v42 }
 0x64a   :  { %7908 = vmatprep.mubr.f32.mxu1 %v16919_v42  ;;  %12622 = vmatpush1.msk.msra.mxu0 %vm84_vm0, %v15860_v2 }
 0x64b   :  { %12628 = vmatpush1.msk.msra.mxu1 %vm84_vm0, %v15867_v44  ;;  %12633 = vmatprep.subr.msk.mxu0 %vm84_vm0, %v15524_v8 }
 0x64c   :  { %12612 = vmatmul.mubr.msk.f32.gmra.mrb[44].mxu0 %vm71_vm1, %v15876_v24  ;;  %12639 = vmatprep.subr.msk.mxu1 %vm84_vm0, %v15535_v37 }
 0x64d   :  { %12618 = vmatmul.mubr.msk.f32.gmra.mrb[44].mxu1 %vm71_vm1, %v15876_v24  ;;  %7825 = vmatprep.mubr.f32.mxu0 %v16919_v42 }
 0x64e   :  { %7914 = vmatprep.mubr.f32.mxu1 %v16919_v42 }
 0x650   :  { %12613 = vmatmul.mubr.msk.f32.gmra.mrb[46].mxu0 %vm71_vm1, %v15889_v33 }
 0x651   :  { %12619 = vmatmul.mubr.msk.f32.gmra.mrb[46].mxu1 %vm71_vm1, %v15889_v33  ;;  %7831 = vmatprep.mubr.f32.mxu0 %v16919_v42 }
 0x652   :  { %7920 = vmatprep.mubr.f32.mxu1 %v16919_v42 }
 0x654   :  { %12614 = vmatmul.mubr.msk.f32.gmra.mrb[48].mxu0 %vm71_vm1, %v15900_v6 }
 0x655   :  { %12620 = vmatmul.mubr.msk.f32.gmra.mrb[48].mxu1 %vm71_vm1, %v15900_v6  ;;  %8007 = vmatprep.mubr.f32.mxu0 %v16919_v42 }
 0x656   :  { %8096 = vmatprep.mubr.f32.mxu1 %v16919_v42 }
 0x658   :  { %12623 = vmatmul.mubr.msk.f32.vlgmr.msra.gmra.mrb[42].mxu0 %vm71_vm1, %v15529_v14 }
 0x659   :  { %12629 = vmatmul.mubr.msk.f32.vlgmr.msra.gmra.mrb[42].mxu1 %vm71_vm1, %v15529_v14  ;;  %8013 = vmatprep.mubr.f32.mxu0 %v16919_v42 }
 0x65a   :  { %8102 = vmatprep.mubr.f32.mxu1 %v16919_v42  ;;  %12634 = vmatpush1.msk.msra.mxu0 %vm84_vm0, %v15511_v43  ;;  %v16976_v43 = vld [vmem:[#allocation22_spill] sm:$0xff] }
 0x65b   :  { %12640 = vmatpush1.msk.msra.mxu1 %vm84_vm0, %v15519_v41  ;;  %v13753_v41 = vld [vmem:[%s16808_s1 + $0xf8] sm:$0xff] }
 0x65c   :  { %12624 = vmatmul.mubr.msk.f32.gmra.mrb[44].mxu0 %vm71_vm1, %v15550_v12 }
 0x65d   :  { %12630 = vmatmul.mubr.msk.f32.gmra.mrb[44].mxu1 %vm71_vm1, %v15550_v12  ;;  %8019 = vmatprep.mubr.f32.mxu0 %v16919_v42 }
 0x65e   :  { %8108 = vmatprep.mubr.f32.mxu1 %v16919_v42 }
 0x660   :  { %12625 = vmatmul.mubr.msk.f32.gmra.mrb[46].mxu0 %vm71_vm1, %v16972_v39 }
 0x661   :  { %12631 = vmatmul.mubr.msk.f32.gmra.mrb[46].mxu1 %vm71_vm1, %v16972_v39  ;;  %8025 = vmatprep.mubr.f32.mxu0 %v16919_v42 }
 0x662   :  { %8114 = vmatprep.mubr.f32.mxu1 %v16919_v42 }
 0x664   :  { %12626 = vmatmul.mubr.msk.f32.gmra.mrb[48].mxu0 %vm71_vm1, %v16973_v5 }
 0x665   :  { %12632 = vmatmul.mubr.msk.f32.gmra.mrb[48].mxu1 %vm71_vm1, %v16973_v5  ;;  %8201 = vmatprep.mubr.f32.mxu0 %v16919_v42  ;;  %v16981_v5 = vld [vmem:[#allocation11_spill] sm:$0xff] }
 0x666   :  { %8290 = vmatprep.mubr.f32.mxu1 %v16919_v42 }
 0x668   :  { %12635 = vmatmul.mubr.msk.f32.vlgmr.msra.gmra.mrb[42].mxu0 %vm71_vm1, %v16974_v54 }
 0x669   :  { %12641 = vmatmul.mubr.msk.f32.vlgmr.msra.gmra.mrb[42].mxu1 %vm71_vm1, %v16974_v54  ;;  %8207 = vmatprep.mubr.f32.mxu0 %v16919_v42 }
 0x66a   :  { %8296 = vmatprep.mubr.f32.mxu1 %v16919_v42 }
 0x66c   :  { %12636 = vmatmul.mubr.msk.f32.gmra.mrb[44].mxu0 %vm71_vm1, %v16975_v51 }
 0x66d   :  { %12642 = vmatmul.mubr.msk.f32.gmra.mrb[44].mxu1 %vm71_vm1, %v16975_v51  ;;  %8213 = vmatprep.mubr.f32.mxu0 %v16919_v42 }
 0x66e   :  { %8302 = vmatprep.mubr.f32.mxu1 %v16919_v42 }
 0x670   :  { %12637 = vmatmul.mubr.msk.f32.gmra.mrb[46].mxu0 %vm71_vm1, %v16976_v43 }
 0x671   :  { %12643 = vmatmul.mubr.msk.f32.gmra.mrb[46].mxu1 %vm71_vm1, %v16976_v43  ;;  %8219 = vmatprep.mubr.f32.mxu0 %v16919_v42 }
 0x672   :  { %8308 = vmatprep.mubr.f32.mxu1 %v16919_v42 }
 0x674   :  { %12638 = vmatmul.mubr.msk.f32.gmra.mrb[48].mxu0 %vm71_vm1, %v13753_v41 }
 0x675   :  { %12644 = vmatmul.mubr.msk.f32.gmra.mrb[48].mxu1 %vm71_vm1, %v13753_v41  ;;  %8522 = vmatprep.mubr.f32.mxu0 %v16919_v42 }
 0x676   :  { %8593 = vmatprep.mubr.f32.mxu1 %v16919_v42 }
 0x73b   :  { %v8203_v14 = vpop.f32.mrb[42].mxu0 }
 0x73c   :  { %v8292_v12 = vpop.f32.mrb[42].mxu1  ;;  %v8205_v53 = vpop.f32.mrb[43].mxu0  ;;  %v8331_v40 = vadd.f32 %v8203_v14, %v16977_v10 }
 0x73d   :  { %v8294_v0 = vpop.f32.mrb[43].mxu1  ;;  %v8333_v20 = vadd.f32 %v8292_v12, %v16977_v10  ;;  %v8332_v7 = vadd.f32 %v8205_v53, %v16977_v10 }
 0x73e   :  { %v8334_v11 = vadd.f32 %v8294_v0, %v16977_v10  ;;  %v8347_v9 = vmul.f32 %v8331_v40, %v16979_v61 }
 0x73f   :  { %v8209_v13 = vpop.f32.mrb[44].mxu0  ;;  %v8349_v23 = vmul.f32 %v8333_v20, %v16979_v61  ;;  %v8348_v31 = vmul.f32 %v8332_v7, %v16979_v61  ;;  %v16982_v20 = vld [vmem:[#allocation16_spill] sm:$0xff] }
 0x740   :  { %v8335_v52 = vadd.f32 %v8209_v13, %v16978_v30  ;;  %v8298_v59 = vpop.f32.mrb[44].mxu1  ;;  %v8211_v50 = vpop.f32.mrb[45].mxu0  ;;  %v8350_v28 = vmul.f32 %v8334_v11, %v16979_v61 }
 0x741   :  { %v8337_v15 = vadd.f32 %v8298_v59, %v16978_v30  ;;  %v8336_v60 = vadd.f32 %v8211_v50, %v16978_v30  ;;  %v8300_v62 = vpop.f32.mrb[45].mxu1 }
 0x742   :  { %v8351_v29 = vmul.f32 %v8335_v52, %v16980_v63  ;;  %v8338_v38 = vadd.f32 %v8300_v62, %v16978_v30 }
 0x743   :  { %v8353_v34 = vmul.f32 %v8337_v15, %v16980_v63  ;;  %v8352_v36 = vmul.f32 %v8336_v60, %v16980_v63  ;;  %v8215_v17 = vpop.f32.mrb[46].mxu0  ;;  %v16983_v60 = vld [vmem:[#allocation15_spill] sm:$0xff] }
 0x744   :  { %v8363_v45 = vadd.f32 %v8351_v29, %v8347_v9  ;;  %v8354_v39 = vmul.f32 %v8338_v38, %v16980_v63  ;;  %v8339_v54 = vadd.f32 %v8215_v17, %v16981_v5  ;;  %v8304_v51 = vpop.f32.mrb[46].mxu1  ;;  %v8217_v43 = vpop.f32.mrb[47].mxu0 }
 0x745   :  { %v8381_v41 = vadd.f32 %v8353_v34, %v8349_v23  ;;  %v8372_v14 = vadd.f32 %v8352_v36, %v8348_v31  ;;  %v8341_v12 = vadd.f32 %v8304_v51, %v16981_v5  ;;  %v8340_v53 = vadd.f32 %v8217_v43, %v16981_v5  ;;  %v8306_v0 = vpop.f32.mrb[47].mxu1 }
 0x746   :  { %v8390_v40 = vadd.f32 %v8354_v39, %v8350_v28  ;;  %v8355_v7 = vmul.f32 %v8339_v54, %v16982_v20  ;;  %v8342_v13 = vadd.f32 %v8306_v0, %v16981_v5 }
 0x747   :  { %v8357_v11 = vmul.f32 %v8341_v12, %v16982_v20  ;;  %v8356_v52 = vmul.f32 %v8340_v53, %v16982_v20  ;;  %v8221_v59 = vpop.f32.mrb[48].mxu0 }
 0x748   :  { %v8364_v50 = vadd.f32 %v8363_v45, %v8355_v7  ;;  %v8358_v15 = vmul.f32 %v8342_v13, %v16982_v20  ;;  %v8343_v62 = vadd.f32 %v8221_v59, %v16983_v60  ;;  %v8310_v9 = vpop.f32.mrb[48].mxu1  ;;  %v8223_v29 = vpop.f32.mrb[49].mxu0 }
 0x749   :  { %v8382_v38 = vadd.f32 %v8381_v41, %v8357_v11  ;;  %v8373_v23 = vadd.f32 %v8372_v14, %v8356_v52  ;;  %v8345_v31 = vadd.f32 %v8310_v9, %v16983_v60  ;;  %v8344_v34 = vadd.f32 %v8223_v29, %v16983_v60  ;;  %v8312_v36 = vpop.f32.mrb[49].mxu1 }
 0x74a   :  { %v8391_v17 = vadd.f32 %v8390_v40, %v8358_v15  ;;  %v8359_v28 = vmul.f32 %v8343_v62, %v14476_v21  ;;  %v8346_v39 = vadd.f32 %v8312_v36, %v16983_v60 }
 0x74b   :  { %v8361_v45 = vmul.f32 %v8345_v31, %v14476_v21  ;;  %v8360_v54 = vmul.f32 %v8344_v34, %v14476_v21 }
 0x74c   :  { %v8365_v51 = vadd.f32 %v8364_v50, %v8359_v28  ;;  %v8362_v43 = vmul.f32 %v8346_v39, %v14476_v21 }
 0x74d   :  { %v8383_v12 = vadd.f32 %v8382_v38, %v8361_v45  ;;  %v8374_v41 = vadd.f32 %v8373_v23, %v8360_v54 }
 0x74e   :  { %v8366_v14 = vrot.slane %v8365_v51, 4  ;;  %v8392_v53 = vadd.f32 %v8391_v17, %v8362_v43 }
 0x74f   :  { %v8384_v0 = vrot.slane %v8383_v12, 4  ;;  %v8375_v7 = vrot.slane %v8374_v41, 4 }
 0x750   :  { %v8367_v13 = vadd.f32 %v8366_v14, %v8365_v51  ;;  %v8393_v11 = vrot.slane %v8392_v53, 4 }
 0x751   :  { %v8385_v40 = vadd.f32 %v8384_v0, %v8383_v12  ;;  %v8376_v52 = vadd.f32 %v8375_v7, %v8374_v41 }
 0x752   :  { %v8368_v59 = vrot.slane %v8367_v13, 2  ;;  %v8394_v15 = vadd.f32 %v8393_v11, %v8392_v53 }
 0x753   :  { %v8386_v62 = vrot.slane %v8385_v40, 2  ;;  %v8377_v9 = vrot.slane %v8376_v52, 2 }
 0x754   :  { %v8369_v29 = vadd.f32 %v8368_v59, %v8367_v13  ;;  %v8395_v31 = vrot.slane %v8394_v15, 2 }
 0x755   :  { %v8387_v34 = vadd.f32 %v8386_v62, %v8385_v40  ;;  %v8378_v50 = vadd.f32 %v8377_v9, %v8376_v52 }
 0x756   :  { %v8370_v36 = vrot.slane %v8369_v29, 1  ;;  %v8396_v28 = vadd.f32 %v8395_v31, %v8394_v15 }
 0x757   :  { %v8388_v38 = vrot.slane %v8387_v34, 1  ;;  %v8379_v23 = vrot.slane %v8378_v50, 1 }
 0x758   :  { %v8371_v39 = vadd.f32 %v8370_v36, %v8369_v29  ;;  %v8397_v17 = vrot.slane %v8396_v28, 1 }
 0x759   :  { %v8389_v45 = vadd.f32 %v8388_v38, %v8387_v34  ;;  %v8380_v54 = vadd.f32 %v8379_v23, %v8378_v50 }
 0x75a   :  { %v8399_v51 = vadd.f32 %v8371_v39, %v14492_v18  ;;  %v8398_v43 = vadd.f32 %v8397_v17, %v8396_v28 }
 0x75b   :  { %v8401_v12 = vadd.f32 %v8389_v45, %v14492_v18  ;;  %v8400_v41 = vadd.f32 %v8380_v54, %v14492_v18 }
 0x75c   :  { %v12645_v14 = vmul.f32 -1.442695, %v8399_v51  ;;  %v8402_v53 = vadd.f32 %v8398_v43, %v14492_v18 }
 0x75d   :  { %v12647_v0 = vmul.f32 -1.442695, %v8401_v12  ;;  %v12646_v7 = vmul.f32 -1.442695, %v8400_v41 }
 0x75e   :  { %13632 = vpow2.f32 %v12645_v14  ;;  %v12648_v13 = vmul.f32 -1.442695, %v8402_v53 }
 0x75f   :  { %13634 = vpow2.f32 %v12647_v0  ;;  %v16986_v0 = vld [vmem:[#allocation17_spill] sm:$0xff] }
 0x760   :  { %13636 = vpow2.f32 %v12646_v7  ;;  %v16987_v7 = vld [vmem:[#allocation18_spill] sm:$0xff] }
 0x761   :  { %13638 = vpow2.f32 %v12648_v13  ;;  %v16077_v13 = vld [vmem:[%s16808_s1 + $0x50] sm:$0xff] }
 0x768   :  { %v13633_v11 = vpop.eup %13632 }
 0x769   :  { %v13635_v40 = vpop.eup %13634  ;;  %v8415_v52 = vadd.f32 1.0, %v13633_v11  ;;  %v16088_v11 = vld [vmem:[%s16808_s1 + $0x58] sm:$0xff] }
 0x76a   :  { %v13637_v59 = vpop.eup %13636  ;;  %v8417_v15 = vadd.f32 1.0, %v13635_v40  ;;  %v16105_v40 = vld [vmem:[%s16807_s0 + $0x60] sm:$0xff] }
 0x76b   :  { %v13639_v62 = vpop.eup %13638  ;;  %13640 = vrcp.f32 %v8415_v52  ;;  %v8416_v9 = vadd.f32 1.0, %v13637_v59  ;;  %v16112_v52 = vld [vmem:[%s16807_s0 + $0x68] sm:$0xff]  ;;  %v16169_v59 = vld [vmem:[%s16808_s1 + $0xa0] sm:$0xff] }
 0x76c   :  { %13642 = vrcp.f32 %v8417_v15  ;;  %v8418_v29 = vadd.f32 1.0, %v13639_v62  ;;  %16988 = vst [vmem:[#allocation24_spill] sm:$0xff] %v16169_v59  ;;  %v16180_v15 = vld [vmem:[%s16808_s1 + $0xa8] sm:$0xff]  ;;  %v16191_v62 = vld [vmem:[%s16808_s1 + $0xb0] sm:$0xff] }
 0x76d   :  { %13644 = vrcp.f32 %v8416_v9  ;;  %16989 = vst [vmem:[#allocation26_spill] sm:$0xff] %v16180_v15  ;;  %16990 = vst [vmem:[#allocation27_spill] sm:$0xff] %v16191_v62  ;;  %v16202_v9 = vld [vmem:[%s16808_s1 + $0xb8] sm:$0xff] }
 0x76e   :  { %13646 = vrcp.f32 %v8418_v29  ;;  %16991 = vst [vmem:[#allocation20_spill] sm:$0xff] %v16202_v9 }
 0x775   :  { %v13641_v31 = vpop.eup %13640 }
 0x776   :  { %v13643_v34 = vpop.eup %13642  ;;  %v15998_v50 = vsel %vm12082_vm5, %v15687_v25, %v13641_v31  ;;  %v8427_v36 = vadd.f32 1.0, %v13641_v31 }
 0x777   :  { %v13645_v28 = vpop.eup %13644  ;;  %v16001_v38 = vsel %vm12082_vm5, %v15691_v22, %v13643_v34  ;;  %v8429_v23 = vadd.f32 1.0, %v13643_v34  ;;  %v12649_v22 = vld [vmem:[%s16812_s5 + $0x14] sm:$0xf] }
 0x778   :  { %v13647_v39 = vpop.eup %13646  ;;  %v16004_v17 = vsel %vm12082_vm5, %v15695_v16, %v13645_v28  ;;  %v8428_v45 = vadd.f32 1.0, %v13645_v28  ;;  %v16055_v16 = vld [vmem:[%s16808_s1 + $0x48] sm:$0xff] }
 0x779   :  { %v16007_v54 = vsel %vm12082_vm5, %v15699_v32, %v13647_v39  ;;  %v8430_v51 = vadd.f32 1.0, %v13647_v39  ;;  %v16062_v32 = vld [vmem:[%s16807_s0 + $0x38] sm:$0xff] }
 0x77a   :  { %v8435_v43 = vcombine.low %v8427_v36, %v8428_v45 }
 0x77b   :  { %v8436_v12 = vcombine.low %v8429_v23, %v8430_v51 }
 0x77c   :  { %v8439_v25 = vmul.f32 %v15447_v55, %v8435_v43  ;;  %v16033_v55 = vld [vmem:[%s16808_s1 + $0x40] sm:$0xff] }
 0x77d   :  { %v8440_v41 = vmul.f32 %v15454_v58, %v8436_v12  ;;  %v16048_v58 = vld [vmem:[%s16807_s0 + $0x30] sm:$0xff] }
 0x77e   :  { %v8445_v14 = vcombine.high %v8439_v25, %v8439_v25 }
 0x77f   :  { %v8446_v53 = vcombine.high %v8440_v41, %v8440_v41 }
 0x780   :  { %12650 = vmatprep.subr.msk.mxu0 %vm84_vm0, %v8445_v14 }
 0x781   :  { %12653 = vmatprep.subr.msk.mxu1 %vm84_vm0, %v8446_v53  ;;  %12651 = vmatpush1.msk.msra.mxu0 %vm84_vm0, %v8439_v25 }
 0x782   :  { %12654 = vmatpush1.msk.msra.mxu1 %vm84_vm0, %v8440_v41  ;;  %12652 = vmatmul.mubr.msk.f32.vlgmr.msra.gmra.mrb[16].mxu0 %vm71_vm1, %v12649_v22 }
 0x783   :  { %12655 = vmatmul.mubr.msk.f32.vlgmr.msra.gmra.mrb[16].mxu1 %vm71_vm1, %v12649_v22  ;;  %12656 = vmatprep.subr.msk.mxu0 %vm84_vm0, %v14014_v26 }
 0x784   :  { %12662 = vmatprep.subr.msk.mxu1 %vm84_vm0, %v14018_v27  ;;  %12657 = vmatpush1.msk.msra.mxu0 %vm84_vm0, %v15390_v46  ;;  %v16984_v46 = vld [vmem:[#allocation8_spill] sm:$0xff] }
 0x785   :  { %8668 = vmatprep.mubr.f32.mxu0 %v16919_v42  ;;  %12663 = vmatpush1.msk.msra.mxu1 %vm84_vm0, %v15397_v49  ;;  %v16985_v49 = vld [vmem:[#allocation9_spill] sm:$0xff] }
 0x786   :  { %8757 = vmatprep.mubr.f32.mxu1 %v16919_v42  ;;  %12658 = vmatmul.mubr.msk.f32.vlgmr.msra.gmra.mrb[50].mxu0 %vm71_vm1, %v16033_v55 }
 0x787   :  { %12664 = vmatmul.mubr.msk.f32.vlgmr.msra.gmra.mrb[50].mxu1 %vm71_vm1, %v16033_v55  ;;  %8674 = vmatprep.mubr.f32.mxu0 %v16919_v42 }
 0x788   :  { %8763 = vmatprep.mubr.f32.mxu1 %v16919_v42  ;;  %12668 = vmatprep.subr.msk.mxu0 %vm84_vm0, %v16984_v46 }
 0x789   :  { %12674 = vmatprep.subr.msk.mxu1 %vm84_vm0, %v16985_v49  ;;  %12669 = vmatpush1.msk.msra.mxu0 %vm84_vm0, %v16048_v58 }
 0x78a   :  { %12659 = vmatmul.mubr.msk.f32.gmra.mrb[52].mxu0 %vm71_vm1, %v16055_v16  ;;  %12675 = vmatpush1.msk.msra.mxu1 %vm84_vm0, %v16062_v32 }
 0x78b   :  { %12665 = vmatmul.mubr.msk.f32.gmra.mrb[52].mxu1 %vm71_vm1, %v16055_v16  ;;  %8680 = vmatprep.mubr.f32.mxu0 %v16919_v42 }
 0x78c   :  { %8769 = vmatprep.mubr.f32.mxu1 %v16919_v42  ;;  %12680 = vmatprep.subr.msk.mxu0 %vm84_vm0, %v16986_v0 }
 0x78d   :  { %12686 = vmatprep.subr.msk.mxu1 %vm84_vm0, %v16987_v7 }
 0x78e   :  { %12660 = vmatmul.mubr.msk.f32.gmra.mrb[54].mxu0 %vm71_vm1, %v16077_v13 }
 0x78f   :  { %12666 = vmatmul.mubr.msk.f32.gmra.mrb[54].mxu1 %vm71_vm1, %v16077_v13  ;;  %8686 = vmatprep.mubr.f32.mxu0 %v16919_v42 }
 0x790   :  { %8775 = vmatprep.mubr.f32.mxu1 %v16919_v42 }
 0x792   :  { %12661 = vmatmul.mubr.msk.f32.gmra.mrb[56].mxu0 %vm71_vm1, %v16088_v11 }
 0x793   :  { %12667 = vmatmul.mubr.msk.f32.gmra.mrb[56].mxu1 %vm71_vm1, %v16088_v11  ;;  %8846 = vmatprep.mubr.f32.mxu0 %v16919_v42 }
 0x794   :  { %8935 = vmatprep.mubr.f32.mxu1 %v16919_v42 }
 0x796   :  { %12670 = vmatmul.mubr.msk.f32.vlgmr.msra.gmra.mrb[50].mxu0 %vm71_vm1, %v15729_v47 }
 0x797   :  { %12676 = vmatmul.mubr.msk.f32.vlgmr.msra.gmra.mrb[50].mxu1 %vm71_vm1, %v15729_v47  ;;  %8852 = vmatprep.mubr.f32.mxu0 %v16919_v42 }
 0x798   :  { %8941 = vmatprep.mubr.f32.mxu1 %v16919_v42  ;;  %12681 = vmatpush1.msk.msra.mxu0 %vm84_vm0, %v16105_v40 }
 0x799   :  { %12687 = vmatpush1.msk.msra.mxu1 %vm84_vm0, %v16112_v52  ;;  %12692 = vmatprep.subr.msk.mxu0 %vm84_vm0, %v16948_v1 }
 0x79a   :  { %12671 = vmatmul.mubr.msk.f32.gmra.mrb[52].mxu0 %vm71_vm1, %v15746_v48  ;;  %12698 = vmatprep.subr.msk.mxu1 %vm84_vm0, %v16950_v35 }
 0x79b   :  { %12677 = vmatmul.mubr.msk.f32.gmra.mrb[52].mxu1 %vm71_vm1, %v15746_v48  ;;  %8858 = vmatprep.mubr.f32.mxu0 %v16919_v42 }
 0x79c   :  { %8947 = vmatprep.mubr.f32.mxu1 %v16919_v42 }
 0x79e   :  { %12672 = vmatmul.mubr.msk.f32.gmra.mrb[54].mxu0 %vm71_vm1, %v15763_v3 }
 0x79f   :  { %12678 = vmatmul.mubr.msk.f32.gmra.mrb[54].mxu1 %vm71_vm1, %v15763_v3  ;;  %8864 = vmatprep.mubr.f32.mxu0 %v16919_v42 }
 0x7a0   :  { %8953 = vmatprep.mubr.f32.mxu1 %v16919_v42 }
 0x7a2   :  { %12673 = vmatmul.mubr.msk.f32.gmra.mrb[56].mxu0 %vm71_vm1, %v15774_v4 }
 0x7a3   :  { %12679 = vmatmul.mubr.msk.f32.gmra.mrb[56].mxu1 %vm71_vm1, %v15774_v4  ;;  %9024 = vmatprep.mubr.f32.mxu0 %v16919_v42 }
 0x7a4   :  { %9113 = vmatprep.mubr.f32.mxu1 %v16919_v42 }
 0x7a6   :  { %12682 = vmatmul.mubr.msk.f32.vlgmr.msra.gmra.mrb[50].mxu0 %vm71_vm1, %v15849_v19 }
 0x7a7   :  { %12688 = vmatmul.mubr.msk.f32.vlgmr.msra.gmra.mrb[50].mxu1 %vm71_vm1, %v15849_v19  ;;  %9030 = vmatprep.mubr.f32.mxu0 %v16919_v42 }
 0x7a8   :  { %9119 = vmatprep.mubr.f32.mxu1 %v16919_v42  ;;  %12693 = vmatpush1.msk.msra.mxu0 %vm84_vm0, %v15860_v2 }
 0x7a9   :  { %12699 = vmatpush1.msk.msra.mxu1 %vm84_vm0, %v15867_v44 }
 0x7aa   :  { %12683 = vmatmul.mubr.msk.f32.gmra.mrb[52].mxu0 %vm71_vm1, %v15876_v24 }
 0x7ab   :  { %12689 = vmatmul.mubr.msk.f32.gmra.mrb[52].mxu1 %vm71_vm1, %v15876_v24  ;;  %9036 = vmatprep.mubr.f32.mxu0 %v16919_v42 }
 0x7ac   :  { %9125 = vmatprep.mubr.f32.mxu1 %v16919_v42 }
 0x7ae   :  { %12684 = vmatmul.mubr.msk.f32.gmra.mrb[54].mxu0 %vm71_vm1, %v15889_v33 }
 0x7af   :  { %12690 = vmatmul.mubr.msk.f32.gmra.mrb[54].mxu1 %vm71_vm1, %v15889_v33  ;;  %9042 = vmatprep.mubr.f32.mxu0 %v16919_v42 }
 0x7b0   :  { %9131 = vmatprep.mubr.f32.mxu1 %v16919_v42 }
 0x7b2   :  { %12685 = vmatmul.mubr.msk.f32.gmra.mrb[56].mxu0 %vm71_vm1, %v15900_v6 }
 0x7b3   :  { %12691 = vmatmul.mubr.msk.f32.gmra.mrb[56].mxu1 %vm71_vm1, %v15900_v6  ;;  %9218 = vmatprep.mubr.f32.mxu0 %v16919_v42 }
 0x7b4   :  { %9307 = vmatprep.mubr.f32.mxu1 %v16919_v42 }
 0x7b6   :  { %12694 = vmatmul.mubr.msk.f32.vlgmr.msra.gmra.mrb[50].mxu0 %vm71_vm1, %v16169_v59 }
 0x7b7   :  { %12700 = vmatmul.mubr.msk.f32.vlgmr.msra.gmra.mrb[50].mxu1 %vm71_vm1, %v16169_v59  ;;  %9224 = vmatprep.mubr.f32.mxu0 %v16919_v42 }
 0x7b8   :  { %9313 = vmatprep.mubr.f32.mxu1 %v16919_v42 }
 0x7ba   :  { %12695 = vmatmul.mubr.msk.f32.gmra.mrb[52].mxu0 %vm71_vm1, %v16180_v15 }
 0x7bb   :  { %12701 = vmatmul.mubr.msk.f32.gmra.mrb[52].mxu1 %vm71_vm1, %v16180_v15  ;;  %9230 = vmatprep.mubr.f32.mxu0 %v16919_v42 }
 0x7bc   :  { %9319 = vmatprep.mubr.f32.mxu1 %v16919_v42 }
 0x7be   :  { %12696 = vmatmul.mubr.msk.f32.gmra.mrb[54].mxu0 %vm71_vm1, %v16191_v62 }
 0x7bf   :  { %12702 = vmatmul.mubr.msk.f32.gmra.mrb[54].mxu1 %vm71_vm1, %v16191_v62  ;;  %9236 = vmatprep.mubr.f32.mxu0 %v16919_v42 }
 0x7c0   :  { %9325 = vmatprep.mubr.f32.mxu1 %v16919_v42 }
 0x7c2   :  { %12697 = vmatmul.mubr.msk.f32.gmra.mrb[56].mxu0 %vm71_vm1, %v16202_v9 }
 0x7c3   :  { %12703 = vmatmul.mubr.msk.f32.gmra.mrb[56].mxu1 %vm71_vm1, %v16202_v9  ;;  %9539 = vmatprep.mubr.f32.mxu0 %v16919_v42 }
 0x7c4   :  { %9610 = vmatprep.mubr.f32.mxu1 %v16919_v42 }
 0x889   :  { %v9220_v29 = vpop.f32.mrb[50].mxu0 }
 0x88a   :  { %v9309_v31 = vpop.f32.mrb[50].mxu1  ;;  %v9222_v34 = vpop.f32.mrb[51].mxu0  ;;  %v9348_v28 = vadd.f32 %v9220_v29, %v16977_v10 }
 0x88b   :  { %v9311_v36 = vpop.f32.mrb[51].mxu1  ;;  %v9350_v23 = vadd.f32 %v9309_v31, %v16977_v10  ;;  %v9349_v39 = vadd.f32 %v9222_v34, %v16977_v10 }
 0x88c   :  { %v9351_v51 = vadd.f32 %v9311_v36, %v16977_v10  ;;  %v9364_v22 = vmul.f32 %v9348_v28, %v16979_v61 }
 0x88d   :  { %v9226_v45 = vpop.f32.mrb[52].mxu0  ;;  %v9366_v34 = vmul.f32 %v9350_v23, %v16979_v61  ;;  %v9365_v9 = vmul.f32 %v9349_v39, %v16979_v61 }
 0x88e   :  { %v9352_v43 = vadd.f32 %v9226_v45, %v16978_v30  ;;  %v9315_v12 = vpop.f32.mrb[52].mxu1  ;;  %v9228_v25 = vpop.f32.mrb[53].mxu0 }
 0x88f   :  { %v9354_v41 = vadd.f32 %v9315_v12, %v16978_v30  ;;  %v9353_v14 = vadd.f32 %v9228_v25, %v16978_v30  ;;  %v9317_v53 = vpop.f32.mrb[53].mxu1  ;;  %v9367_v12 = vmul.f32 %v9351_v51, %v16979_v61 }
 0x890   :  { %v9368_v29 = vmul.f32 %v9352_v43, %v16980_v63  ;;  %v9355_v31 = vadd.f32 %v9317_v53, %v16978_v30 }
 0x891   :  { %v9370_v36 = vmul.f32 %v9354_v41, %v16980_v63  ;;  %v9369_v45 = vmul.f32 %v9353_v14, %v16980_v63  ;;  %v9232_v10 = vpop.f32.mrb[54].mxu0 }
 0x892   :  { %v9380_v62 = vadd.f32 %v9368_v29, %v9364_v22  ;;  %v9371_v25 = vmul.f32 %v9355_v31, %v16980_v63  ;;  %v9356_v28 = vadd.f32 %v9232_v10, %v16981_v5  ;;  %v9321_v15 = vpop.f32.mrb[54].mxu1  ;;  %v9234_v43 = vpop.f32.mrb[55].mxu0 }
 0x893   :  { %v9398_v59 = vadd.f32 %v9370_v36, %v9366_v34  ;;  %v9389_v53 = vadd.f32 %v9369_v45, %v9365_v9  ;;  %v9358_v23 = vadd.f32 %v9321_v15, %v16981_v5  ;;  %v9357_v39 = vadd.f32 %v9234_v43, %v16981_v5  ;;  %v9323_v30 = vpop.f32.mrb[55].mxu1 }
 0x894   :  { %v9407_v41 = vadd.f32 %v9371_v25, %v9367_v12  ;;  %v9372_v14 = vmul.f32 %v9356_v28, %v16982_v20  ;;  %v9359_v6 = vadd.f32 %v9323_v30, %v16981_v5 }
 0x895   :  { %v9374_v51 = vmul.f32 %v9358_v23, %v16982_v20  ;;  %v9373_v22 = vmul.f32 %v9357_v39, %v16982_v20  ;;  %v9238_v29 = vpop.f32.mrb[56].mxu0 }
 0x896   :  { %v9381_v10 = vadd.f32 %v9380_v62, %v9372_v14  ;;  %v9375_v31 = vmul.f32 %v9359_v6, %v16982_v20  ;;  %v9360_v9 = vadd.f32 %v9238_v29, %v16983_v60  ;;  %v9327_v34 = vpop.f32.mrb[56].mxu1  ;;  %v9240_v15 = vpop.f32.mrb[57].mxu0 }
 0x897   :  { %v9399_v36 = vadd.f32 %v9398_v59, %v9374_v51  ;;  %v9390_v45 = vadd.f32 %v9389_v53, %v9373_v22  ;;  %v9362_v12 = vadd.f32 %v9327_v34, %v16983_v60  ;;  %v9361_v25 = vadd.f32 %v9240_v15, %v16983_v60  ;;  %v9329_v28 = vpop.f32.mrb[57].mxu1 }
 0x898   :  { %v9408_v30 = vadd.f32 %v9407_v41, %v9375_v31  ;;  %v9376_v43 = vmul.f32 %v9360_v9, %v14476_v21  ;;  %v9363_v23 = vadd.f32 %v9329_v28, %v16983_v60 }
 0x899   :  { %v9378_v62 = vmul.f32 %v9362_v12, %v14476_v21  ;;  %v9377_v6 = vmul.f32 %v9361_v25, %v14476_v21 }
 0x89a   :  { %v9382_v39 = vadd.f32 %v9381_v10, %v9376_v43  ;;  %v9379_v14 = vmul.f32 %v9363_v23, %v14476_v21 }
 0x89b   :  { %v9400_v29 = vadd.f32 %v9399_v36, %v9378_v62  ;;  %v9391_v59 = vadd.f32 %v9390_v45, %v9377_v6 }
 0x89c   :  { %v9383_v53 = vrot.slane %v9382_v39, 4  ;;  %v9409_v51 = vadd.f32 %v9408_v30, %v9379_v14 }
 0x89d   :  { %v9401_v22 = vrot.slane %v9400_v29, 4  ;;  %v9392_v34 = vrot.slane %v9391_v59, 4 }
 0x89e   :  { %v9384_v15 = vadd.f32 %v9383_v53, %v9382_v39  ;;  %v9410_v20 = vrot.slane %v9409_v51, 4 }
 0x89f   :  { %v9402_v41 = vadd.f32 %v9401_v22, %v9400_v29  ;;  %v9393_v31 = vadd.f32 %v9392_v34, %v9391_v59 }
 0x8a0   :  { %v9385_v9 = vrot.slane %v9384_v15, 2  ;;  %v9411_v5 = vadd.f32 %v9410_v20, %v9409_v51 }
 0x8a1   :  { %v9403_v28 = vrot.slane %v9402_v41, 2  ;;  %v9394_v60 = vrot.slane %v9393_v31, 2 }
 0x8a2   :  { %v9386_v12 = vadd.f32 %v9385_v9, %v9384_v15  ;;  %v9412_v63 = vrot.slane %v9411_v5, 2 }
 0x8a3   :  { %v9404_v25 = vadd.f32 %v9403_v28, %v9402_v41  ;;  %v9395_v10 = vadd.f32 %v9394_v60, %v9393_v31 }
 0x8a4   :  { %v9387_v43 = vrot.slane %v9386_v12, 1  ;;  %v9413_v23 = vadd.f32 %v9412_v63, %v9411_v5 }
 0x8a5   :  { %v9405_v36 = vrot.slane %v9404_v25, 1  ;;  %v9396_v45 = vrot.slane %v9395_v10, 1 }
 0x8a6   :  { %v9388_v62 = vadd.f32 %v9387_v43, %v9386_v12  ;;  %v9414_v30 = vrot.slane %v9413_v23, 1 }
 0x8a7   :  { %v9406_v6 = vadd.f32 %v9405_v36, %v9404_v25  ;;  %v9397_v14 = vadd.f32 %v9396_v45, %v9395_v10 }
 0x8a8   :  { %v9416_v39 = vadd.f32 %v9388_v62, %v14492_v18  ;;  %v9415_v29 = vadd.f32 %v9414_v30, %v9413_v23 }
 0x8a9   :  { %v9418_v59 = vadd.f32 %v9406_v6, %v14492_v18  ;;  %v9417_v20 = vadd.f32 %v9397_v14, %v14492_v18 }
 0x8aa   :  { %v12704_v53 = vmul.f32 -1.442695, %v9416_v39  ;;  %v9419_v51 = vadd.f32 %v9415_v29, %v14492_v18 }
 0x8ab   :  { %v12706_v22 = vmul.f32 -1.442695, %v9418_v59  ;;  %v12705_v60 = vmul.f32 -1.442695, %v9417_v20 }
 0x8ac   :  { %13648 = vpow2.f32 %v12704_v53  ;;  %v12707_v63 = vmul.f32 -1.442695, %v9419_v51 }
 0x8ad   :  { %13650 = vpow2.f32 %v12706_v22 }
 0x8ae   :  { %13652 = vpow2.f32 %v12705_v60  ;;  %v16997_v60 = vld [vmem:[#allocation10_spill] sm:$0xff] }
 0x8af   :  { %13654 = vpow2.f32 %v12707_v63 }
 0x8b6   :  { %v13649_v5 = vpop.eup %13648 }
 0x8b7   :  { %v13651_v34 = vpop.eup %13650  ;;  %v9432_v15 = vadd.f32 1.0, %v13649_v5 }
 0x8b8   :  { %v13653_v41 = vpop.eup %13652  ;;  %v9434_v31 = vadd.f32 1.0, %v13651_v34 }
 0x8b9   :  { %v13655_v9 = vpop.eup %13654  ;;  %13656 = vrcp.f32 %v9432_v15  ;;  %v9433_v28 = vadd.f32 1.0, %v13653_v41 }
 0x8ba   :  { %13658 = vrcp.f32 %v9434_v31  ;;  %v9435_v12 = vadd.f32 1.0, %v13655_v9  ;;  %v16998_v31 = vld [vmem:[#allocation12_spill] sm:$0xff] }
 0x8bb   :  { %13660 = vrcp.f32 %v9433_v28 }
 0x8bc   :  { %13662 = vrcp.f32 %v9435_v12 }
 0x8c3   :  { %v13657_v25 = vpop.eup %13656 }
 0x8c4   :  { %v13659_v10 = vpop.eup %13658  ;;  %v16247_v43 = vsel %vm12087_vm6, %v15998_v50, %v13657_v25  ;;  %v9444_v23 = vadd.f32 1.0, %v13657_v25 }
 0x8c5   :  { %v13661_v36 = vpop.eup %13660  ;;  %v16250_v45 = vsel %vm12087_vm6, %v16001_v38, %v13659_v10  ;;  %v9446_v62 = vadd.f32 1.0, %v13659_v10  ;;  %v12708_v38 = vld [vmem:[%s16812_s5 + $0x18] sm:$0xf] }
 0x8c6   :  { %v13663_v30 = vpop.eup %13662  ;;  %v16253_v6 = vsel %vm12087_vm6, %v16004_v17, %v13661_v36  ;;  %v9445_v14 = vadd.f32 1.0, %v13661_v36  ;;  %v16276_v17 = vld [vmem:[%s16807_s0 + $0x40] sm:$0xff] }
 0x8c7   :  { %v16256_v39 = vsel %vm12087_vm6, %v16007_v54, %v13663_v30  ;;  %v9447_v29 = vadd.f32 1.0, %v13663_v30  ;;  %v16284_v54 = vld [vmem:[%s16807_s0 + $0x48] sm:$0xff] }
 0x8c8   :  { %v9452_v59 = vcombine.low %v9444_v23, %v9445_v14 }
 0x8c9   :  { %v9453_v20 = vcombine.low %v9446_v62, %v9447_v29  ;;  %v16999_v62 = vld [vmem:[#allocation14_spill] sm:$0xff] }
 0x8ca   :  { %v9456_v50 = vmul.f32 %v16105_v40, %v9452_v59 }
 0x8cb   :  { %v9457_v53 = vmul.f32 %v16112_v52, %v9453_v20 }
 0x8cc   :  { %v9462_v51 = vcombine.high %v9456_v50, %v9456_v50 }
 0x8cd   :  { %v9463_v22 = vcombine.high %v9457_v53, %v9457_v53 }
 0x8ce   :  { %12709 = vmatprep.subr.msk.mxu0 %vm84_vm0, %v9462_v51 }
 0x8cf   :  { %12712 = vmatprep.subr.msk.mxu1 %vm84_vm0, %v9463_v22  ;;  %12710 = vmatpush1.msk.msra.mxu0 %vm84_vm0, %v9456_v50 }
 0x8d0   :  { %12713 = vmatpush1.msk.msra.mxu1 %vm84_vm0, %v9457_v53  ;;  %12711 = vmatmul.mubr.msk.f32.vlgmr.msra.gmra.mrb[16].mxu0 %vm71_vm1, %v12708_v38 }
 0x8d1   :  { %12714 = vmatmul.mubr.msk.f32.vlgmr.msra.gmra.mrb[16].mxu1 %vm71_vm1, %v12708_v38  ;;  %12715 = vmatprep.subr.msk.mxu0 %vm84_vm0, %v14014_v26 }
 0x8d2   :  { %12721 = vmatprep.subr.msk.mxu1 %vm84_vm0, %v14018_v27  ;;  %12716 = vmatpush1.msk.msra.mxu0 %vm84_vm0, %v16276_v17 }
 0x8d3   :  { %9685 = vmatprep.mubr.f32.mxu0 %v16919_v42  ;;  %12722 = vmatpush1.msk.msra.mxu1 %vm84_vm0, %v16284_v54 }
 0x8d4   :  { %9774 = vmatprep.mubr.f32.mxu1 %v16919_v42  ;;  %12717 = vmatmul.mubr.msk.f32.vlgmr.msra.gmra.mrb[58].mxu0 %vm71_vm1, %v15729_v47 }
 0x8d5   :  { %12723 = vmatmul.mubr.msk.f32.vlgmr.msra.gmra.mrb[58].mxu1 %vm71_vm1, %v15729_v47  ;;  %9691 = vmatprep.mubr.f32.mxu0 %v16919_v42  ;;  %v16328_v47 = vld [vmem:[%s16808_s1] sm:$0xff] }
 0x8d6   :  { %9780 = vmatprep.mubr.f32.mxu1 %v16919_v42  ;;  %12727 = vmatprep.subr.msk.mxu0 %vm84_vm0, %v16984_v46  ;;  %v16368_v46 = vld [vmem:[%s16808_s1 + $0x10] sm:$0xff] }
 0x8d7   :  { %12733 = vmatprep.subr.msk.mxu1 %vm84_vm0, %v16985_v49  ;;  %12728 = vmatpush1.msk.msra.mxu0 %vm84_vm0, %v16048_v58  ;;  %v16379_v49 = vld [vmem:[%s16808_s1 + $0x18] sm:$0xff]  ;;  %v16439_v58 = vld [vmem:[%s16808_s1 + $0x68] sm:$0xff] }
 0x8d8   :  { %12718 = vmatmul.mubr.msk.f32.gmra.mrb[60].mxu0 %vm71_vm1, %v15746_v48  ;;  %12734 = vmatpush1.msk.msra.mxu1 %vm84_vm0, %v16062_v32  ;;  %v16487_v32 = vld [vmem:[%s16807_s0 + $0x88] sm:$0xff] }
 0x8d9   :  { %12724 = vmatmul.mubr.msk.f32.gmra.mrb[60].mxu1 %vm71_vm1, %v15746_v48  ;;  %9697 = vmatprep.mubr.f32.mxu0 %v16919_v42  ;;  %v16339_v48 = vld [vmem:[%s16807_s0 + $0x50] sm:$0xff] }
 0x8da   :  { %9786 = vmatprep.mubr.f32.mxu1 %v16919_v42  ;;  %12739 = vmatprep.subr.msk.mxu0 %vm84_vm0, %v14337_v56 }
 0x8db   :  { %12745 = vmatprep.subr.msk.mxu1 %vm84_vm0, %v14341_v57 }
 0x8dc   :  { %12719 = vmatmul.mubr.msk.f32.gmra.mrb[62].mxu0 %vm71_vm1, %v15763_v3 }
 0x8dd   :  { %12725 = vmatmul.mubr.msk.f32.gmra.mrb[62].mxu1 %vm71_vm1, %v15763_v3  ;;  %9703 = vmatprep.mubr.f32.mxu0 %v16919_v42  ;;  %v16346_v3 = vld [vmem:[%s16807_s0 + $0x58] sm:$0xff] }
 0x8de   :  { %9792 = vmatprep.mubr.f32.mxu1 %v16919_v42 }
 0x8e0   :  { %12720 = vmatmul.mubr.msk.f32.gmra.mrb[64].mxu0 %vm71_vm1, %v15774_v4 }
 0x8e1   :  { %12726 = vmatmul.mubr.msk.f32.gmra.mrb[64].mxu1 %vm71_vm1, %v15774_v4  ;;  %9863 = vmatprep.mubr.f32.mxu0 %v16919_v42  ;;  %v16355_v4 = vld [vmem:[%s16808_s1 + $0x8] sm:$0xff] }
 0x8e2   :  { %9952 = vmatprep.mubr.f32.mxu1 %v16919_v42 }
 0x8e4   :  { %12729 = vmatmul.mubr.msk.f32.vlgmr.msra.gmra.mrb[58].mxu0 %vm71_vm1, %v16328_v47 }
 0x8e5   :  { %12735 = vmatmul.mubr.msk.f32.vlgmr.msra.gmra.mrb[58].mxu1 %vm71_vm1, %v16328_v47  ;;  %9869 = vmatprep.mubr.f32.mxu0 %v16919_v42 }
 0x8e6   :  { %9958 = vmatprep.mubr.f32.mxu1 %v16919_v42  ;;  %12740 = vmatpush1.msk.msra.mxu0 %vm84_vm0, %v16339_v48 }
 0x8e7   :  { %12746 = vmatpush1.msk.msra.mxu1 %vm84_vm0, %v16346_v3  ;;  %12751 = vmatprep.subr.msk.mxu0 %vm84_vm0, %v16986_v0  ;;  %v16995_v0 = vld [vmem:[#allocation27_spill] sm:$0xff] }
 0x8e8   :  { %12730 = vmatmul.mubr.msk.f32.gmra.mrb[60].mxu0 %vm71_vm1, %v16355_v4  ;;  %12757 = vmatprep.subr.msk.mxu1 %vm84_vm0, %v16987_v7  ;;  %v16996_v7 = vld [vmem:[#allocation20_spill] sm:$0xff] }
 0x8e9   :  { %12736 = vmatmul.mubr.msk.f32.gmra.mrb[60].mxu1 %vm71_vm1, %v16355_v4  ;;  %9875 = vmatprep.mubr.f32.mxu0 %v16919_v42 }
 0x8ea   :  { %9964 = vmatprep.mubr.f32.mxu1 %v16919_v42 }
 0x8ec   :  { %12731 = vmatmul.mubr.msk.f32.gmra.mrb[62].mxu0 %vm71_vm1, %v16368_v46 }
 0x8ed   :  { %12737 = vmatmul.mubr.msk.f32.gmra.mrb[62].mxu1 %vm71_vm1, %v16368_v46  ;;  %9881 = vmatprep.mubr.f32.mxu0 %v16919_v42 }
 0x8ee   :  { %9970 = vmatprep.mubr.f32.mxu1 %v16919_v42 }
 0x8f0   :  { %12732 = vmatmul.mubr.msk.f32.gmra.mrb[64].mxu0 %vm71_vm1, %v16379_v49 }
 0x8f1   :  { %12738 = vmatmul.mubr.msk.f32.gmra.mrb[64].mxu1 %vm71_vm1, %v16379_v49  ;;  %10041 = vmatprep.mubr.f32.mxu0 %v16919_v42 }
 0x8f2   :  { %10130 = vmatprep.mubr.f32.mxu1 %v16919_v42 }
 0x8f4   :  { %12741 = vmatmul.mubr.msk.f32.vlgmr.msra.gmra.mrb[58].mxu0 %vm71_vm1, %v16033_v55 }
 0x8f5   :  { %12747 = vmatmul.mubr.msk.f32.vlgmr.msra.gmra.mrb[58].mxu1 %vm71_vm1, %v16033_v55  ;;  %10047 = vmatprep.mubr.f32.mxu0 %v16919_v42  ;;  %v16422_v55 = vld [vmem:[%s16808_s1 + $0x60] sm:$0xff] }
 0x8f6   :  { %10136 = vmatprep.mubr.f32.mxu1 %v16919_v42  ;;  %12752 = vmatpush1.msk.msra.mxu0 %vm84_vm0, %v16105_v40 }
 0x8f7   :  { %12758 = vmatpush1.msk.msra.mxu1 %vm84_vm0, %v16112_v52  ;;  %12763 = vmatprep.subr.msk.mxu0 %vm84_vm0, %v16948_v1 }
 0x8f8   :  { %12742 = vmatmul.mubr.msk.f32.gmra.mrb[60].mxu0 %vm71_vm1, %v16055_v16  ;;  %12769 = vmatprep.subr.msk.mxu1 %vm84_vm0, %v16950_v35 }
 0x8f9   :  { %12748 = vmatmul.mubr.msk.f32.gmra.mrb[60].mxu1 %vm71_vm1, %v16055_v16  ;;  %10053 = vmatprep.mubr.f32.mxu0 %v16919_v42  ;;  %v16480_v16 = vld [vmem:[%s16807_s0 + $0x80] sm:$0xff] }
 0x8fa   :  { %10142 = vmatprep.mubr.f32.mxu1 %v16919_v42 }
 0x8fc   :  { %12743 = vmatmul.mubr.msk.f32.gmra.mrb[62].mxu0 %vm71_vm1, %v16077_v13 }
 0x8fd   :  { %12749 = vmatmul.mubr.msk.f32.gmra.mrb[62].mxu1 %vm71_vm1, %v16077_v13  ;;  %10059 = vmatprep.mubr.f32.mxu0 %v16919_v42 }
 0x8fe   :  { %10148 = vmatprep.mubr.f32.mxu1 %v16919_v42 }
 0x900   :  { %12744 = vmatmul.mubr.msk.f32.gmra.mrb[64].mxu0 %vm71_vm1, %v16088_v11 }
 0x901   :  { %12750 = vmatmul.mubr.msk.f32.gmra.mrb[64].mxu1 %vm71_vm1, %v16088_v11  ;;  %10235 = vmatprep.mubr.f32.mxu0 %v16919_v42 }
 0x902   :  { %10324 = vmatprep.mubr.f32.mxu1 %v16919_v42 }
 0x904   :  { %12753 = vmatmul.mubr.msk.f32.vlgmr.msra.gmra.mrb[58].mxu0 %vm71_vm1, %v16422_v55 }
 0x905   :  { %12759 = vmatmul.mubr.msk.f32.vlgmr.msra.gmra.mrb[58].mxu1 %vm71_vm1, %v16422_v55  ;;  %10241 = vmatprep.mubr.f32.mxu0 %v16919_v42 }
 0x906   :  { %10330 = vmatprep.mubr.f32.mxu1 %v16919_v42  ;;  %12764 = vmatpush1.msk.msra.mxu0 %vm84_vm0, %v15860_v2  ;;  %v16452_v2 = vld [vmem:[%s16808_s1 + $0x70] sm:$0xff] }
 0x907   :  { %12770 = vmatpush1.msk.msra.mxu1 %vm84_vm0, %v15867_v44  ;;  %12775 = vmatprep.subr.msk.mxu0 %vm84_vm0, %v15524_v8  ;;  %v16463_v44 = vld [vmem:[%s16808_s1 + $0x78] sm:$0xff] }
 0x908   :  { %12754 = vmatmul.mubr.msk.f32.gmra.mrb[60].mxu0 %vm71_vm1, %v16439_v58  ;;  %12781 = vmatprep.subr.msk.mxu1 %vm84_vm0, %v15535_v37 }
 0x909   :  { %12760 = vmatmul.mubr.msk.f32.gmra.mrb[60].mxu1 %vm71_vm1, %v16439_v58  ;;  %10247 = vmatprep.mubr.f32.mxu0 %v16919_v42 }
 0x90a   :  { %10336 = vmatprep.mubr.f32.mxu1 %v16919_v42 }
 0x90c   :  { %12755 = vmatmul.mubr.msk.f32.gmra.mrb[62].mxu0 %vm71_vm1, %v16452_v2 }
 0x90d   :  { %12761 = vmatmul.mubr.msk.f32.gmra.mrb[62].mxu1 %vm71_vm1, %v16452_v2  ;;  %10253 = vmatprep.mubr.f32.mxu0 %v16919_v42 }
 0x90e   :  { %10342 = vmatprep.mubr.f32.mxu1 %v16919_v42 }
 0x910   :  { %12756 = vmatmul.mubr.msk.f32.gmra.mrb[64].mxu0 %vm71_vm1, %v16463_v44 }
 0x911   :  { %12762 = vmatmul.mubr.msk.f32.gmra.mrb[64].mxu1 %vm71_vm1, %v16463_v44  ;;  %10429 = vmatprep.mubr.f32.mxu0 %v16919_v42 }
 0x912   :  { %10518 = vmatprep.mubr.f32.mxu1 %v16919_v42 }
 0x914   :  { %12765 = vmatmul.mubr.msk.f32.vlgmr.msra.gmra.mrb[58].mxu0 %vm71_vm1, %v15849_v19 }
 0x915   :  { %12771 = vmatmul.mubr.msk.f32.vlgmr.msra.gmra.mrb[58].mxu1 %vm71_vm1, %v15849_v19  ;;  %10435 = vmatprep.mubr.f32.mxu0 %v16919_v42  ;;  %v16992_v19 = vld [vmem:[#allocation25_spill] sm:$0xff] }
 0x916   :  { %10524 = vmatprep.mubr.f32.mxu1 %v16919_v42  ;;  %12776 = vmatpush1.msk.msra.mxu0 %vm84_vm0, %v16480_v16 }
 0x917   :  { %12782 = vmatpush1.msk.msra.mxu1 %vm84_vm0, %v16487_v32 }
 0x918   :  { %12766 = vmatmul.mubr.msk.f32.gmra.mrb[60].mxu0 %vm71_vm1, %v15876_v24 }
 0x919   :  { %12772 = vmatmul.mubr.msk.f32.gmra.mrb[60].mxu1 %vm71_vm1, %v15876_v24  ;;  %10441 = vmatprep.mubr.f32.mxu0 %v16919_v42  ;;  %v16993_v24 = vld [vmem:[#allocation24_spill] sm:$0xff] }
 0x91a   :  { %10530 = vmatprep.mubr.f32.mxu1 %v16919_v42 }
 0x91c   :  { %12767 = vmatmul.mubr.msk.f32.gmra.mrb[62].mxu0 %vm71_vm1, %v15889_v33 }
 0x91d   :  { %12773 = vmatmul.mubr.msk.f32.gmra.mrb[62].mxu1 %vm71_vm1, %v15889_v33  ;;  %10447 = vmatprep.mubr.f32.mxu0 %v16919_v42  ;;  %v16994_v33 = vld [vmem:[#allocation26_spill] sm:$0xff] }
 0x91e   :  { %10536 = vmatprep.mubr.f32.mxu1 %v16919_v42 }
 0x920   :  { %12768 = vmatmul.mubr.msk.f32.gmra.mrb[64].mxu0 %vm71_vm1, %v16992_v19 }
 0x921   :  { %12774 = vmatmul.mubr.msk.f32.gmra.mrb[64].mxu1 %vm71_vm1, %v16992_v19  ;;  %10623 = vmatprep.mubr.f32.mxu0 %v16919_v42  ;;  %v17000_v19 = vld [vmem:[#allocation11_spill] sm:$0xff] }
 0x922   :  { %10712 = vmatprep.mubr.f32.mxu1 %v16919_v42 }
 0x924   :  { %12777 = vmatmul.mubr.msk.f32.vlgmr.msra.gmra.mrb[58].mxu0 %vm71_vm1, %v16993_v24 }
 0x925   :  { %12783 = vmatmul.mubr.msk.f32.vlgmr.msra.gmra.mrb[58].mxu1 %vm71_vm1, %v16993_v24  ;;  %10629 = vmatprep.mubr.f32.mxu0 %v16919_v42 }
 0x926   :  { %10718 = vmatprep.mubr.f32.mxu1 %v16919_v42 }
 0x928   :  { %12778 = vmatmul.mubr.msk.f32.gmra.mrb[60].mxu0 %vm71_vm1, %v16994_v33 }
 0x929   :  { %12784 = vmatmul.mubr.msk.f32.gmra.mrb[60].mxu1 %vm71_vm1, %v16994_v33  ;;  %10635 = vmatprep.mubr.f32.mxu0 %v16919_v42 }
 0x92a   :  { %10724 = vmatprep.mubr.f32.mxu1 %v16919_v42 }
 0x92c   :  { %12779 = vmatmul.mubr.msk.f32.gmra.mrb[62].mxu0 %vm71_vm1, %v16995_v0 }
 0x92d   :  { %12785 = vmatmul.mubr.msk.f32.gmra.mrb[62].mxu1 %vm71_vm1, %v16995_v0  ;;  %10641 = vmatprep.mubr.f32.mxu0 %v16919_v42 }
 0x92e   :  { %10730 = vmatprep.mubr.f32.mxu1 %v16919_v42 }
 0x930   :  { %12780 = vmatmul.mubr.msk.f32.gmra.mrb[64].mxu0 %vm71_vm1, %v16996_v7 }
 0x931   :  { %12786 = vmatmul.mubr.msk.f32.gmra.mrb[64].mxu1 %vm71_vm1, %v16996_v7  ;;  %10944 = vmatprep.mubr.f32.mxu0 %v16919_v42 }
 0x932   :  { %11015 = vmatprep.mubr.f32.mxu1 %v16919_v42 }
 0x9f7   :  { %v10625_v13 = vpop.f32.mrb[58].mxu0 }
 0x9f8   :  { %v10714_v11 = vpop.f32.mrb[58].mxu1  ;;  %v10627_v40 = vpop.f32.mrb[59].mxu0  ;;  %v10753_v63 = vadd.f32 %v10625_v13, %v16997_v60 }
 0x9f9   :  { %v10716_v52 = vpop.f32.mrb[59].mxu1  ;;  %v10755_v5 = vadd.f32 %v10714_v11, %v16997_v60  ;;  %v10754_v34 = vadd.f32 %v10627_v40, %v16997_v60 }
 0x9fa   :  { %v10756_v41 = vadd.f32 %v10716_v52, %v16997_v60  ;;  %v10769_v36 = vmul.f32 %v10753_v63, %v16979_v61 }
 0x9fb   :  { %v10631_v15 = vpop.f32.mrb[60].mxu0  ;;  %v10771_v29 = vmul.f32 %v10755_v5, %v16979_v61  ;;  %v10770_v59 = vmul.f32 %v10754_v34, %v16979_v61  ;;  %v17001_v5 = vld [vmem:[#allocation16_spill] sm:$0xff] }
 0x9fc   :  { %v10757_v9 = vadd.f32 %v10631_v15, %v16998_v31  ;;  %v10720_v28 = vpop.f32.mrb[60].mxu1  ;;  %v10633_v12 = vpop.f32.mrb[61].mxu0  ;;  %v10772_v51 = vmul.f32 %v10756_v41, %v16979_v61 }
 0x9fd   :  { %v10759_v25 = vadd.f32 %v10720_v28, %v16998_v31  ;;  %v10758_v10 = vadd.f32 %v10633_v12, %v16998_v31  ;;  %v10722_v23 = vpop.f32.mrb[61].mxu1 }
 0x9fe   :  { %v10773_v30 = vmul.f32 %v10757_v9, %v16999_v62  ;;  %v10760_v14 = vadd.f32 %v10722_v23, %v16998_v31 }
 0x9ff   :  { %v10775_v20 = vmul.f32 %v10759_v25, %v16999_v62  ;;  %v10774_v50 = vmul.f32 %v10758_v10, %v16999_v62  ;;  %v10637_v53 = vpop.f32.mrb[62].mxu0  ;;  %v17002_v10 = vld [vmem:[#allocation15_spill] sm:$0xff] }
 0xa00   :  { %v10785_v22 = vadd.f32 %v10773_v30, %v10769_v36  ;;  %v10776_v38 = vmul.f32 %v10760_v14, %v16999_v62  ;;  %v10761_v24 = vadd.f32 %v10637_v53, %v17000_v19  ;;  %v10726_v33 = vpop.f32.mrb[62].mxu1  ;;  %v10639_v0 = vpop.f32.mrb[63].mxu0 }
 0xa01   :  { %v10803_v7 = vadd.f32 %v10775_v20, %v10771_v29  ;;  %v10794_v13 = vadd.f32 %v10774_v50, %v10770_v59  ;;  %v10763_v11 = vadd.f32 %v10726_v33, %v17000_v19  ;;  %v10762_v40 = vadd.f32 %v10639_v0, %v17000_v19  ;;  %v10728_v52 = vpop.f32.mrb[63].mxu1 }
 0xa02   :  { %v10812_v63 = vadd.f32 %v10776_v38, %v10772_v51  ;;  %v10777_v34 = vmul.f32 %v10761_v24, %v17001_v5  ;;  %v10764_v15 = vadd.f32 %v10728_v52, %v17000_v19 }
 0xa03   :  { %v10779_v41 = vmul.f32 %v10763_v11, %v17001_v5  ;;  %v10778_v9 = vmul.f32 %v10762_v40, %v17001_v5  ;;  %v10643_v28 = vpop.f32.mrb[64].mxu0 }
 0xa04   :  { %v10786_v12 = vadd.f32 %v10785_v22, %v10777_v34  ;;  %v10780_v25 = vmul.f32 %v10764_v15, %v17001_v5  ;;  %v10765_v23 = vadd.f32 %v10643_v28, %v17002_v10  ;;  %v10732_v36 = vpop.f32.mrb[64].mxu1  ;;  %v10645_v30 = vpop.f32.mrb[65].mxu0 }
 0xa05   :  { %v10804_v14 = vadd.f32 %v10803_v7, %v10779_v41  ;;  %v10795_v29 = vadd.f32 %v10794_v13, %v10778_v9  ;;  %v10767_v59 = vadd.f32 %v10732_v36, %v17002_v10  ;;  %v10766_v20 = vadd.f32 %v10645_v30, %v17002_v10  ;;  %v10734_v50 = vpop.f32.mrb[65].mxu1 }
 0xa06   :  { %v10813_v53 = vadd.f32 %v10812_v63, %v10780_v25  ;;  %v10781_v51 = vmul.f32 %v10765_v23, %v14476_v21  ;;  %v10768_v38 = vadd.f32 %v10734_v50, %v17002_v10 }
 0xa07   :  { %v10783_v22 = vmul.f32 %v10767_v59, %v14476_v21  ;;  %v10782_v24 = vmul.f32 %v10766_v20, %v14476_v21 }
 0xa08   :  { %v10787_v33 = vadd.f32 %v10786_v12, %v10781_v51  ;;  %v10784_v0 = vmul.f32 %v10768_v38, %v14476_v21 }
 0xa09   :  { %v10805_v11 = vadd.f32 %v10804_v14, %v10783_v22  ;;  %v10796_v7 = vadd.f32 %v10795_v29, %v10782_v24 }
 0xa0a   :  { %v10788_v13 = vrot.slane %v10787_v33, 4  ;;  %v10814_v40 = vadd.f32 %v10813_v53, %v10784_v0 }
 0xa0b   :  { %v10806_v52 = vrot.slane %v10805_v11, 4  ;;  %v10797_v34 = vrot.slane %v10796_v7, 4 }
 0xa0c   :  { %v10789_v15 = vadd.f32 %v10788_v13, %v10787_v33  ;;  %v10815_v41 = vrot.slane %v10814_v40, 4 }
 0xa0d   :  { %v10807_v63 = vadd.f32 %v10806_v52, %v10805_v11  ;;  %v10798_v9 = vadd.f32 %v10797_v34, %v10796_v7 }
 0xa0e   :  { %v10790_v28 = vrot.slane %v10789_v15, 2  ;;  %v10816_v25 = vadd.f32 %v10815_v41, %v10814_v40 }
 0xa0f   :  { %v10808_v23 = vrot.slane %v10807_v63, 2  ;;  %v10799_v36 = vrot.slane %v10798_v9, 2 }
 0xa10   :  { %v10791_v30 = vadd.f32 %v10790_v28, %v10789_v15  ;;  %v10817_v59 = vrot.slane %v10816_v25, 2 }
 0xa11   :  { %v10809_v20 = vadd.f32 %v10808_v23, %v10807_v63  ;;  %v10800_v12 = vadd.f32 %v10799_v36, %v10798_v9 }
 0xa12   :  { %v10792_v50 = vrot.slane %v10791_v30, 1  ;;  %v10818_v51 = vadd.f32 %v10817_v59, %v10816_v25 }
 0xa13   :  { %v10810_v14 = vrot.slane %v10809_v20, 1  ;;  %v10801_v29 = vrot.slane %v10800_v12, 1 }
 0xa14   :  { %v10793_v38 = vadd.f32 %v10792_v50, %v10791_v30  ;;  %v10819_v53 = vrot.slane %v10818_v51, 1 }
 0xa15   :  { %v10811_v22 = vadd.f32 %v10810_v14, %v10809_v20  ;;  %v10802_v24 = vadd.f32 %v10801_v29, %v10800_v12 }
 0xa16   :  { %v10821_v33 = vadd.f32 %v10793_v38, %v14492_v18  ;;  %v10820_v0 = vadd.f32 %v10819_v53, %v10818_v51 }
 0xa17   :  { %v10823_v11 = vadd.f32 %v10811_v22, %v14492_v18  ;;  %v10822_v7 = vadd.f32 %v10802_v24, %v14492_v18 }
 0xa18   :  { %v12787_v13 = vmul.f32 -1.442695, %v10821_v33  ;;  %v10824_v40 = vadd.f32 %v10820_v0, %v14492_v18  ;;  %v13780_v0 = vld [vmem:[%s16807_s0 + $0x70] sm:$0xff] }
 0xa19   :  { %v12789_v52 = vmul.f32 -1.442695, %v10823_v11  ;;  %v12788_v34 = vmul.f32 -1.442695, %v10822_v7 }
 0xa1a   :  { %13664 = vpow2.f32 %v12787_v13  ;;  %v12790_v15 = vmul.f32 -1.442695, %v10824_v40 }
 0xa1b   :  { %13666 = vpow2.f32 %v12789_v52  ;;  %v13782_v52 = vld [vmem:[%s16808_s1 + $0x20] sm:$0xff] }
 0xa1c   :  { %13668 = vpow2.f32 %v12788_v34 }
 0xa1d   :  { %13670 = vpow2.f32 %v12790_v15 }
 0xa24   :  { %v13665_v41 = vpop.eup %13664 }
 0xa25   :  { %v13667_v63 = vpop.eup %13666  ;;  %v10837_v9 = vadd.f32 1.0, %v13665_v41 }
 0xa26   :  { %v13669_v28 = vpop.eup %13668  ;;  %v10839_v25 = vadd.f32 1.0, %v13667_v63 }
 0xa27   :  { %v13671_v23 = vpop.eup %13670  ;;  %13672 = vrcp.f32 %v10837_v9  ;;  %v10838_v36 = vadd.f32 1.0, %v13669_v28 }
 0xa28   :  { %13674 = vrcp.f32 %v10839_v25  ;;  %v10840_v30 = vadd.f32 1.0, %v13671_v23 }
 0xa29   :  { %13676 = vrcp.f32 %v10838_v36 }
 0xa2a   :  { %13678 = vrcp.f32 %v10840_v30 }
 0xa31   :  { %v13673_v59 = vpop.eup %13672 }
 0xa32   :  { %v13675_v20 = vpop.eup %13674  ;;  %v12093_v12 = vsel %vm12092_vm7, %v16247_v43, %v13673_v59  ;;  %v10849_v50 = vadd.f32 1.0, %v13673_v59 }
 0xa33   :  { %v13677_v51 = vpop.eup %13676  ;;  %12097 = vst [vmem:[%s16815_s8] sm:$0xff] %v12093_v12  ;;  %v12095_v14 = vsel %vm12092_vm7, %v16250_v45, %v13675_v20  ;;  %v10851_v29 = vadd.f32 1.0, %v13675_v20 }
 0xa34   :  { %v13679_v38 = vpop.eup %13678  ;;  %12099 = vst [vmem:[%s16815_s8 + $0x10] sm:$0xff] %v12095_v14  ;;  %v12094_v53 = vsel %vm12092_vm7, %v16253_v6, %v13677_v51  ;;  %v10850_v22 = vadd.f32 1.0, %v13677_v51  ;;  %v13781_v6 = vld [vmem:[%s16807_s0 + $0x78] sm:$0xff] }
 0xa35   :  { %12098 = vst [vmem:[%s16815_s8 + $0x8] sm:$0xff] %v12094_v53  ;;  %v12096_v43 = vsel %vm12092_vm7, %v16256_v39, %v13679_v38  ;;  %v10852_v24 = vadd.f32 1.0, %v13679_v38  ;;  %v12791_v39 = vld [vmem:[%s16812_s5 + $0x1c] sm:$0xf] }
 0xa36   :  { %12100 = vst [vmem:[%s16815_s8 + $0x18] sm:$0xff] %v12096_v43  ;;  %v10857_v45 = vcombine.low %v10849_v50, %v10850_v22 }
 0xa37   :  { %v10858_v33 = vcombine.low %v10851_v29, %v10852_v24 }
 0xa38   :  { %v10861_v11 = vmul.f32 %v13780_v0, %v10857_v45 }
 0xa39   :  { %v10862_v7 = vmul.f32 %v13781_v6, %v10858_v33 }
 0xa3a   :  { %v10867_v13 = vcombine.high %v10861_v11, %v10861_v11 }
 0xa3b   :  { %v10868_v40 = vcombine.high %v10862_v7, %v10862_v7 }
 0xa3c   :  { %12792 = vmatprep.subr.msk.mxu0 %vm84_vm0, %v10867_v13 }
 0xa3d   :  { %12795 = vmatprep.subr.msk.mxu1 %vm84_vm0, %v10868_v40  ;;  %12793 = vmatpush1.msk.msra.mxu0 %vm84_vm0, %v10861_v11 }
 0xa3e   :  { %12796 = vmatpush1.msk.msra.mxu1 %vm84_vm0, %v10862_v7  ;;  %12794 = vmatmul.mubr.msk.f32.vlgmr.msra.gmra.mrb[16].mxu0 %vm71_vm1, %v12791_v39 }
 0xa3f   :  { %12797 = vmatmul.mubr.msk.f32.vlgmr.msra.gmra.mrb[16].mxu1 %vm71_vm1, %v12791_v39  ;;  %12798 = vmatprep.subr.msk.mxu0 %vm84_vm0, %v14337_v56  ;;  %v13783_v56 = vld [vmem:[%s16808_s1 + $0x28] sm:$0xff] }
 0xa40   :  { %12804 = vmatprep.subr.msk.mxu1 %vm84_vm0, %v14341_v57  ;;  %12799 = vmatpush1.msk.msra.mxu0 %vm84_vm0, %v16339_v48  ;;  %v13786_v57 = vld [vmem:[%s16808_s1 + $0x80] sm:$0xff] }
 0xa41   :  { %11090 = vmatprep.mubr.f32.mxu0 %v16919_v42  ;;  %12805 = vmatpush1.msk.msra.mxu1 %vm84_vm0, %v16346_v3 }
 0xa42   :  { %11179 = vmatprep.mubr.f32.mxu1 %v16919_v42  ;;  %12800 = vmatmul.mubr.msk.f32.vlgmr.msra.gmra.mrb[66].mxu0 %vm71_vm1, %v13782_v52 }
 0xa43   :  { %12806 = vmatmul.mubr.msk.f32.vlgmr.msra.gmra.mrb[66].mxu1 %vm71_vm1, %v13782_v52  ;;  %11096 = vmatprep.mubr.f32.mxu0 %v16919_v42 }
 0xa44   :  { %11185 = vmatprep.mubr.f32.mxu1 %v16919_v42  ;;  %12810 = vmatprep.subr.msk.mxu0 %vm84_vm0, %v14014_v26  ;;  %v13784_v26 = vld [vmem:[%s16808_s1 + $0x30] sm:$0xff] }
 0xa45   :  { %12816 = vmatprep.subr.msk.mxu1 %vm84_vm0, %v14018_v27  ;;  %12811 = vmatpush1.msk.msra.mxu0 %vm84_vm0, %v16276_v17  ;;  %v13785_v27 = vld [vmem:[%s16808_s1 + $0x38] sm:$0xff] }
 0xa46   :  { %12801 = vmatmul.mubr.msk.f32.gmra.mrb[68].mxu0 %vm71_vm1, %v13783_v56  ;;  %12817 = vmatpush1.msk.msra.mxu1 %vm84_vm0, %v16284_v54 }
 0xa47   :  { %12807 = vmatmul.mubr.msk.f32.gmra.mrb[68].mxu1 %vm71_vm1, %v13783_v56  ;;  %11102 = vmatprep.mubr.f32.mxu0 %v16919_v42 }
 0xa48   :  { %11191 = vmatprep.mubr.f32.mxu1 %v16919_v42  ;;  %12822 = vmatprep.subr.msk.mxu0 %vm84_vm0, %v16948_v1  ;;  %v13787_v1 = vld [vmem:[%s16808_s1 + $0x88] sm:$0xff] }
 0xa49   :  { %12828 = vmatprep.subr.msk.mxu1 %vm84_vm0, %v16950_v35  ;;  %v13788_v35 = vld [vmem:[%s16808_s1 + $0x90] sm:$0xff] }
 0xa4a   :  { %12802 = vmatmul.mubr.msk.f32.gmra.mrb[70].mxu0 %vm71_vm1, %v13784_v26 }
 0xa4b   :  { %12808 = vmatmul.mubr.msk.f32.gmra.mrb[70].mxu1 %vm71_vm1, %v13784_v26  ;;  %11108 = vmatprep.mubr.f32.mxu0 %v16919_v42 }
 0xa4c   :  { %11197 = vmatprep.mubr.f32.mxu1 %v16919_v42 }
 0xa4e   :  { %12803 = vmatmul.mubr.msk.f32.gmra.mrb[72].mxu0 %vm71_vm1, %v13785_v27 }
 0xa4f   :  { %12809 = vmatmul.mubr.msk.f32.gmra.mrb[72].mxu1 %vm71_vm1, %v13785_v27  ;;  %11268 = vmatprep.mubr.f32.mxu0 %v16919_v42 }
 0xa50   :  { %11357 = vmatprep.mubr.f32.mxu1 %v16919_v42 }
 0xa52   :  { %12812 = vmatmul.mubr.msk.f32.vlgmr.msra.gmra.mrb[66].mxu0 %vm71_vm1, %v16328_v47 }
 0xa53   :  { %12818 = vmatmul.mubr.msk.f32.vlgmr.msra.gmra.mrb[66].mxu1 %vm71_vm1, %v16328_v47  ;;  %11274 = vmatprep.mubr.f32.mxu0 %v16919_v42 }
 0xa54   :  { %11363 = vmatprep.mubr.f32.mxu1 %v16919_v42  ;;  %12823 = vmatpush1.msk.msra.mxu0 %vm84_vm0, %v13780_v0 }
 0xa55   :  { %12829 = vmatpush1.msk.msra.mxu1 %vm84_vm0, %v13781_v6  ;;  %12834 = vmatprep.subr.msk.mxu0 %vm84_vm0, %v15524_v8  ;;  %v13789_v8 = vld [vmem:[%s16808_s1 + $0x98] sm:$0xff] }
 0xa56   :  { %12813 = vmatmul.mubr.msk.f32.gmra.mrb[68].mxu0 %vm71_vm1, %v16355_v4  ;;  %12840 = vmatprep.subr.msk.mxu1 %vm84_vm0, %v15535_v37 }
 0xa57   :  { %12819 = vmatmul.mubr.msk.f32.gmra.mrb[68].mxu1 %vm71_vm1, %v16355_v4  ;;  %11280 = vmatprep.mubr.f32.mxu0 %v16919_v42 }
 0xa58   :  { %11369 = vmatprep.mubr.f32.mxu1 %v16919_v42 }
 0xa5a   :  { %12814 = vmatmul.mubr.msk.f32.gmra.mrb[70].mxu0 %vm71_vm1, %v16368_v46 }
 0xa5b   :  { %12820 = vmatmul.mubr.msk.f32.gmra.mrb[70].mxu1 %vm71_vm1, %v16368_v46  ;;  %11286 = vmatprep.mubr.f32.mxu0 %v16919_v42 }
 0xa5c   :  { %11375 = vmatprep.mubr.f32.mxu1 %v16919_v42 }
 0xa5e   :  { %12815 = vmatmul.mubr.msk.f32.gmra.mrb[72].mxu0 %vm71_vm1, %v16379_v49 }
 0xa5f   :  { %12821 = vmatmul.mubr.msk.f32.gmra.mrb[72].mxu1 %vm71_vm1, %v16379_v49  ;;  %11446 = vmatprep.mubr.f32.mxu0 %v16919_v42 }
 0xa60   :  { %11535 = vmatprep.mubr.f32.mxu1 %v16919_v42 }
 0xa62   :  { %12824 = vmatmul.mubr.msk.f32.vlgmr.msra.gmra.mrb[66].mxu0 %vm71_vm1, %v16422_v55 }
 0xa63   :  { %12830 = vmatmul.mubr.msk.f32.vlgmr.msra.gmra.mrb[66].mxu1 %vm71_vm1, %v16422_v55  ;;  %11452 = vmatprep.mubr.f32.mxu0 %v16919_v42 }
 0xa64   :  { %11541 = vmatprep.mubr.f32.mxu1 %v16919_v42  ;;  %12835 = vmatpush1.msk.msra.mxu0 %vm84_vm0, %v16480_v16 }
 0xa65   :  { %12841 = vmatpush1.msk.msra.mxu1 %vm84_vm0, %v16487_v32 }
 0xa66   :  { %12825 = vmatmul.mubr.msk.f32.gmra.mrb[68].mxu0 %vm71_vm1, %v16439_v58 }
 0xa67   :  { %12831 = vmatmul.mubr.msk.f32.gmra.mrb[68].mxu1 %vm71_vm1, %v16439_v58  ;;  %11458 = vmatprep.mubr.f32.mxu0 %v16919_v42 }
 0xa68   :  { %11547 = vmatprep.mubr.f32.mxu1 %v16919_v42 }
 0xa6a   :  { %12826 = vmatmul.mubr.msk.f32.gmra.mrb[70].mxu0 %vm71_vm1, %v16452_v2 }
 0xa6b   :  { %12832 = vmatmul.mubr.msk.f32.gmra.mrb[70].mxu1 %vm71_vm1, %v16452_v2  ;;  %11464 = vmatprep.mubr.f32.mxu0 %v16919_v42 }
 0xa6c   :  { %11553 = vmatprep.mubr.f32.mxu1 %v16919_v42 }
 0xa6e   :  { %12827 = vmatmul.mubr.msk.f32.gmra.mrb[72].mxu0 %vm71_vm1, %v16463_v44 }
 0xa6f   :  { %12833 = vmatmul.mubr.msk.f32.gmra.mrb[72].mxu1 %vm71_vm1, %v16463_v44  ;;  %11640 = vmatprep.mubr.f32.mxu0 %v16919_v42 }
 0xa70   :  { %11729 = vmatprep.mubr.f32.mxu1 %v16919_v42 }
 0xa72   :  { %12836 = vmatmul.mubr.msk.f32.vlgmr.msra.gmra.mrb[66].mxu0 %vm71_vm1, %v13786_v57 }
 0xa73   :  { %12842 = vmatmul.mubr.msk.f32.vlgmr.msra.gmra.mrb[66].mxu1 %vm71_vm1, %v13786_v57  ;;  %11646 = vmatprep.mubr.f32.mxu0 %v16919_v42 }
 0xa74   :  { %11735 = vmatprep.mubr.f32.mxu1 %v16919_v42 }
 0xa76   :  { %12837 = vmatmul.mubr.msk.f32.gmra.mrb[68].mxu0 %vm71_vm1, %v13787_v1 }
 0xa77   :  { %12843 = vmatmul.mubr.msk.f32.gmra.mrb[68].mxu1 %vm71_vm1, %v13787_v1  ;;  %11652 = vmatprep.mubr.f32.mxu0 %v16919_v42 }
 0xa78   :  { %11741 = vmatprep.mubr.f32.mxu1 %v16919_v42 }
 0xa7a   :  { %12838 = vmatmul.mubr.msk.f32.gmra.mrb[70].mxu0 %vm71_vm1, %v13788_v35 }
 0xa7b   :  { %12844 = vmatmul.mubr.msk.f32.gmra.mrb[70].mxu1 %vm71_vm1, %v13788_v35  ;;  %11658 = vmatprep.mubr.f32.mxu0 %v16919_v42 }
 0xa7c   :  { %11747 = vmatprep.mubr.f32.mxu1 %v16919_v42 }
 0xa7e   :  { %12839 = vmatmul.mubr.msk.f32.gmra.mrb[72].mxu0 %vm71_vm1, %v13789_v8 }
 0xa7f   :  { %12845 = vmatmul.mubr.msk.f32.gmra.mrb[72].mxu1 %vm71_vm1, %v13789_v8  ;;  %11961 = vmatprep.mubr.f32.mxu0 %v16919_v42 }
 0xa80   :  { %12032 = vmatprep.mubr.f32.mxu1 %v16919_v42 }
 0xb45   :  { %v11642_v37 = vpop.f32.mrb[66].mxu0 }
 0xb46   :  { %v11731_v17 = vpop.f32.mrb[66].mxu1  ;;  %v11644_v54 = vpop.f32.mrb[67].mxu0  ;;  %v11770_v48 = vadd.f32 %v11642_v37, %v16997_v60 }
 0xb47   :  { %v11733_v47 = vpop.f32.mrb[67].mxu1  ;;  %v11772_v3 = vadd.f32 %v11731_v17, %v16997_v60  ;;  %v11771_v4 = vadd.f32 %v11644_v54, %v16997_v60 }
 0xb48   :  { %v11773_v49 = vadd.f32 %v11733_v47, %v16997_v60  ;;  %v11786_v15 = vmul.f32 %v11770_v48, %v16979_v61 }
 0xb49   :  { %v11648_v46 = vpop.f32.mrb[68].mxu0  ;;  %v11788_v9 = vmul.f32 %v11772_v3, %v16979_v61  ;;  %v11787_v28 = vmul.f32 %v11771_v4, %v16979_v61 }
 0xb4a   :  { %v11774_v55 = vadd.f32 %v11648_v46, %v16998_v31  ;;  %v11737_v58 = vpop.f32.mrb[68].mxu1  ;;  %v11650_v2 = vpop.f32.mrb[69].mxu0  ;;  %v11789_v36 = vmul.f32 %v11773_v49, %v16979_v61 }
 0xb4b   :  { %v11776_v44 = vadd.f32 %v11737_v58, %v16998_v31  ;;  %v11775_v42 = vadd.f32 %v11650_v2, %v16998_v31  ;;  %v11739_v34 = vpop.f32.mrb[69].mxu1 }
 0xb4c   :  { %v11790_v41 = vmul.f32 %v11774_v55, %v16999_v62  ;;  %v11777_v63 = vadd.f32 %v11739_v34, %v16998_v31 }
 0xb4d   :  { %v11792_v60 = vmul.f32 %v11776_v44, %v16999_v62  ;;  %v11791_v25 = vmul.f32 %v11775_v42, %v16999_v62  ;;  %v11654_v23 = vpop.f32.mrb[70].mxu0 }
 0xb4e   :  { %v11802_v30 = vadd.f32 %v11790_v41, %v11786_v15  ;;  %v11793_v59 = vmul.f32 %v11777_v63, %v16999_v62  ;;  %v11778_v20 = vadd.f32 %v11654_v23, %v17000_v19  ;;  %v11743_v12 = vpop.f32.mrb[70].mxu1  ;;  %v11656_v50 = vpop.f32.mrb[71].mxu0 }
 0xb4f   :  { %v11820_v51 = vadd.f32 %v11792_v60, %v11788_v9  ;;  %v11811_v31 = vadd.f32 %v11791_v25, %v11787_v28  ;;  %v11780_v14 = vadd.f32 %v11743_v12, %v17000_v19  ;;  %v11779_v29 = vadd.f32 %v11656_v50, %v17000_v19  ;;  %v11745_v38 = vpop.f32.mrb[71].mxu1 }
 0xb50   :  { %v11829_v53 = vadd.f32 %v11793_v59, %v11789_v36  ;;  %v11794_v22 = vmul.f32 %v11778_v20, %v17001_v5  ;;  %v11781_v43 = vadd.f32 %v11745_v38, %v17000_v19 }
 0xb51   :  { %v11796_v61 = vmul.f32 %v11780_v14, %v17001_v5  ;;  %v11795_v62 = vmul.f32 %v11779_v29, %v17001_v5  ;;  %v11660_v24 = vpop.f32.mrb[72].mxu0 }
 0xb52   :  { %v11803_v45 = vadd.f32 %v11802_v30, %v11794_v22  ;;  %v11797_v33 = vmul.f32 %v11781_v43, %v17001_v5  ;;  %v11782_v0 = vadd.f32 %v11660_v24, %v17002_v10  ;;  %v11749_v11 = vpop.f32.mrb[72].mxu1  ;;  %v11662_v6 = vpop.f32.mrb[73].mxu0 }
 0xb53   :  { %v11821_v7 = vadd.f32 %v11820_v51, %v11796_v61  ;;  %v11812_v13 = vadd.f32 %v11811_v31, %v11795_v62  ;;  %v11784_v40 = vadd.f32 %v11749_v11, %v17002_v10  ;;  %v11783_v39 = vadd.f32 %v11662_v6, %v17002_v10  ;;  %v11751_v52 = vpop.f32.mrb[73].mxu1 }
 0xb54   :  { %v11830_v19 = vadd.f32 %v11829_v53, %v11797_v33  ;;  %v11798_v56 = vmul.f32 %v11782_v0, %v14476_v21  ;;  %v11785_v26 = vadd.f32 %v11751_v52, %v17002_v10 }
 0xb55   :  { %v11800_v27 = vmul.f32 %v11784_v40, %v14476_v21  ;;  %v11799_v5 = vmul.f32 %v11783_v39, %v14476_v21 }
 0xb56   :  { %v11804_v57 = vadd.f32 %v11803_v45, %v11798_v56  ;;  %v11801_v1 = vmul.f32 %v11785_v26, %v14476_v21  ;;  %v12850_v26 = vld [vmem:[%s16812_s5 + $0x20] sm:$0xf]  ;;  %s13816_s5 = smov [#allocation3]  }
 0xb57   :  { %v11822_v35 = vadd.f32 %v11821_v7, %v11800_v27  ;;  %v11813_v8 = vadd.f32 %v11812_v13, %v11799_v5 }
 0xb58   :  { %v11805_v37 = vrot.slane %v11804_v57, 4  ;;  %v11831_v17 = vadd.f32 %v11830_v19, %v11801_v1 }
 0xb59   :  { %v11823_v54 = vrot.slane %v11822_v35, 4  ;;  %v11814_v47 = vrot.slane %v11813_v8, 4 }
 0xb5a   :  { %v11806_v48 = vadd.f32 %v11805_v37, %v11804_v57  ;;  %v11832_v3 = vrot.slane %v11831_v17, 4 }
 0xb5b   :  { %v11824_v4 = vadd.f32 %v11823_v54, %v11822_v35  ;;  %v11815_v46 = vadd.f32 %v11814_v47, %v11813_v8 }
 0xb5c   :  { %v11807_v49 = vrot.slane %v11806_v48, 2  ;;  %v11833_v55 = vadd.f32 %v11832_v3, %v11831_v17 }
 0xb5d   :  { %v11825_v10 = vrot.slane %v11824_v4, 2  ;;  %v11816_v58 = vrot.slane %v11815_v46, 2 }
 0xb5e   :  { %v11808_v2 = vadd.f32 %v11807_v49, %v11806_v48  ;;  %v11834_v44 = vrot.slane %v11833_v55, 2 }
 0xb5f   :  { %v11826_v42 = vadd.f32 %v11825_v10, %v11824_v4  ;;  %v11817_v34 = vadd.f32 %v11816_v58, %v11815_v46 }
 0xb60   :  { %v11809_v15 = vrot.slane %v11808_v2, 1  ;;  %v11835_v21 = vadd.f32 %v11834_v44, %v11833_v55 }
 0xb61   :  { %v11827_v41 = vrot.slane %v11826_v42, 1  ;;  %v11818_v63 = vrot.slane %v11817_v34, 1 }
 0xb62   :  { %v11810_v9 = vadd.f32 %v11809_v15, %v11808_v2  ;;  %v11836_v28 = vrot.slane %v11835_v21, 1 }
 0xb63   :  { %v11828_v60 = vadd.f32 %v11827_v41, %v11826_v42  ;;  %v11819_v25 = vadd.f32 %v11818_v63, %v11817_v34 }
 0xb64   :  { %v11838_v23 = vadd.f32 %v11810_v9, %v14492_v18  ;;  %v11837_v36 = vadd.f32 %v11836_v28, %v11835_v21 }
 0xb65   :  { %v11840_v30 = vadd.f32 %v11828_v60, %v14492_v18  ;;  %v11839_v59 = vadd.f32 %v11819_v25, %v14492_v18 }
 0xb66   :  { %v12846_v20 = vmul.f32 -1.442695, %v11838_v23  ;;  %v11841_v12 = vadd.f32 %v11837_v36, %v14492_v18 }
 0xb67   :  { %v12848_v50 = vmul.f32 -1.442695, %v11840_v30  ;;  %v12847_v51 = vmul.f32 -1.442695, %v11839_v59 }
 0xb68   :  { %13680 = vpow2.f32 %v12846_v20  ;;  %v12849_v31 = vmul.f32 -1.442695, %v11841_v12 }
 0xb69   :  { %13682 = vpow2.f32 %v12848_v50 }
 0xb6a   :  { %13684 = vpow2.f32 %v12847_v51 }
 0xb6b   :  { %13686 = vpow2.f32 %v12849_v31 }
 0xb72   :  { %v13681_v14 = vpop.eup %13680 }
 0xb73   :  { %v13683_v29 = vpop.eup %13682  ;;  %v11854_v38 = vadd.f32 1.0, %v13681_v14 }
 0xb74   :  { %v13685_v53 = vpop.eup %13684  ;;  %v11856_v22 = vadd.f32 1.0, %v13683_v29 }
 0xb75   :  { %v13687_v43 = vpop.eup %13686  ;;  %13688 = vrcp.f32 %v11854_v38  ;;  %v11855_v61 = vadd.f32 1.0, %v13685_v53 }
 0xb76   :  { %13690 = vrcp.f32 %v11856_v22  ;;  %v11857_v62 = vadd.f32 1.0, %v13687_v43 }
 0xb77   :  { %13692 = vrcp.f32 %v11855_v61 }
 0xb78   :  { %13694 = vrcp.f32 %v11857_v62 }
 0xb7f   :  { %v13689_v18 = vpop.eup %13688 }
 0xb80   :  { %v13691_v24 = vpop.eup %13690  ;;  %12101 = vst [vmem:[%s16815_s8 + $0x20] sm:$0x1] %v13689_v18  ;;  %v11866_v45 = vadd.f32 1.0, %v13689_v18 }
 0xb81   :  { %v13693_v33 = vpop.eup %13692  ;;  %12103 = vst [vmem:[%s16815_s8 + $0x30] sm:$0x1] %v13691_v24  ;;  %v11868_v0 = vadd.f32 1.0, %v13691_v24 }
 0xb82   :  { %v13695_v11 = vpop.eup %13694  ;;  %12102 = vst [vmem:[%s16815_s8 + $0x28] sm:$0x1] %v13693_v33  ;;  %v11867_v6 = vadd.f32 1.0, %v13693_v33 }
 0xb83   :  { %12104 = vst [vmem:[%s16815_s8 + $0x38] sm:$0x1] %v13695_v11  ;;  %v11869_v7 = vadd.f32 1.0, %v13695_v11  ;;  %s12111_s8 = sshll.u32 %s13816_s5, 4  ;;  %s12112_s8 = int_to_ptr.vmem [resolvable:$true] %s12111_s8 }
 0xb84   :  { %v11874_v13 = vcombine.low %v11866_v45, %v11867_v6  ;;  %s13790_s17 = scalar_lea.vmem %s12112_s8, 256  ;;  %p13795_p1 = scmp.lt.s32.totalorder %s12112_s8, %s12112_s8 }
 0xb85   :  { %v11875_v40 = vcombine.low %v11868_v0, %v11869_v7  ;;  %p13791_p0 = scmp.ne.s32.totalorder %s12112_s8, %s13790_s17  ;;  %p13796_p2 = scmp.lt.s32.totalorder %s13790_s17, %s13790_s17 }
 0xb86   :  { %v11878_v39 = vmul.f32 %v16480_v16, %v11874_v13  ;;  %v12047_v16 = vpop.permute.xlu1 %12046 }
 0xb87   :  { %v11879_v52 = vmul.f32 %v16487_v32, %v11875_v40  ;;  %p13797_p3 = por %p13796_p2, %p13795_p1 }
 0xb88   :  { %v11884_v19 = vcombine.high %v11878_v39, %v11878_v39 }
 0xb89   :  { %v11885_v56 = vcombine.high %v11879_v52, %v11879_v52  ;;  %p13798_p4 = pnand %p13797_p3, %p13791_p0 }
 0xb8a   :  { %12851 = vmatprep.subr.msk.mxu0 %vm84_vm0, %v11884_v19 }
 0xb8b   :  { %12854 = vmatprep.subr.msk.mxu1 %vm84_vm0, %v11885_v56  ;;  %12852 = vmatpush1.msk.msra.mxu0 %vm84_vm0, %v11878_v39 }
 0xb8c   :  { %12855 = vmatpush1.msk.msra.mxu1 %vm84_vm0, %v11879_v52  ;;  %12853 = vmatmul.mubr.msk.f32.vlgmr.msra.gmra.mrb[16].mxu0 %vm71_vm1, %v12850_v26 }
 0xb8d   :  { %12856 = vmatmul.mubr.msk.f32.vlgmr.msra.gmra.mrb[16].mxu1 %vm71_vm1, %v12850_v26 }
 0xc5f   :  { %v11963_v32 = vpop.f32.mrb[16].mxu0 }
 0xc60   :  { %v12049_v27 = vadd.f32 %v12047_v16, %v11963_v32  ;;  %v12034_v5 = vpop.f32.mrb[16].mxu1  ;;  %v11965_v57 = vpop.f32.mrb[17].mxu0 }
 0xc61   :  { %v12051_v1 = vadd.f32 %v12047_v16, %v12034_v5  ;;  %v12050_v35 = vadd.f32 %v12047_v16, %v11965_v57  ;;  %v12036_v8 = vpop.f32.mrb[17].mxu1 }
 0xc62   :  { %v12052_v37 = vadd.f32 %v12047_v16, %v12036_v8 }
 0xc63   :  { %v12057_v17 = vcombine.low %v12049_v27, %v12050_v35 }
 0xc64   :  { %v12058_v54 = vcombine.low %v12051_v1, %v12052_v37 }
 0xc65   :  { %12061 = vst [vmem:[#allocation3] sm:$0xff] %v12057_v17 }
 0xc66   :  { %12062 = vst [vmem:[#allocation3 + $0x8] sm:$0xff] %v12058_v54 }
 0xc67   :  { %13801 = shalt.err (!%p13798_p4)
}
 0xc68   :  { %s13802_s19 = scalar_lea.hbm %s16814_s7, 256 }
 0xc69   :  { %p13803_p5 = scmp.ne.s32.totalorder %s16814_s7, %s13802_s19  ;;  %p13806_p6 = scmp.lt.u32.totalorder %s13802_s19, %s16814_s7 }
 0xc6b   :  { %p13808_p7 = pnand %p13806_p6, %p13803_p5 }
 0xc6d   :  { %13811 = shalt.err (!%p13808_p7)
}
 0xc6e   :  { %12114 = dma.vmem_to_hbm [thread:$0]  %s12112_s8, 256, %s16814_s7, [#allocation4]  }
 0xc6f   :  { %13812 = dma.done.wait [#allocation4], 256  }
 0xc70   :  { %13813 = vsyncadd [#allocation4], 4294967040 }
 0xc71   :  { %12122 = vsyncpa [#allocation4], 1 }

</bundles_post_ra>
